<compile_context>
chip_gen: v7x
topology: tpu7x:2x2x1
jax: 0.10.0
libtpu: 0.0.40
codegen_flags: <defaults>
</compile_context>

<pallas_src>
import math

import jax
import jax.numpy as jnp
from jax.experimental import pallas as pl
from jax.experimental.pallas import tpu as pltpu


def make_text_encoder_kernel(BT, S, D_in, D, H, VA, D_pad):
    dk = D // H
    f32 = jnp.float32
    bf16 = jnp.bfloat16

    def kernel(x_ref, mself_ref, mattn_ref, wqkv_ref, wtv_ref, wtq_ref, out_ref):
        # ---- fused (pre-scaled) Q|K|V projection ---------------------------
        # x arrives as bf16; the 1/sqrt(dk) scale is already folded into the
        # Wq columns of wqkv, so the scores need no extra multiply.
        x2 = x_ref[...].reshape(BT * S, D_in)                        # bf16
        qkv = jnp.dot(x2, wqkv_ref[...], preferred_element_type=f32)  # (BT*S, 3D)
        qkv_bf = qkv.astype(bf16)                                    # single cast

        # Key-padding mask, computed/broadcast once and reused by every head.
        pad_keys = jnp.broadcast_to(mself_ref[...] == 0.0, (BT, S, S))

        wtv = wtv_ref[...]                                           # (H, dk, VA) bf16
        wtq = wtq_ref[...]                                           # (1, VA) f32

        # ---- multi-head scaled dot-product attention -----------------------
        # Static head loop.  Each head's context stays in registers and its
        # contribution to the pooling pre-activation (ctx_h @ Wv_pool[h]) is
        # accumulated immediately, so no (BT,S,D) slab or lane-concat exists.
        ctxs = []
        t_pre = jnp.zeros((BT * S, VA), f32)
        for h in range(H):
            # dk-wide lane slices (cheap relayouts); padding each head group
            # to 128 lanes would blow up the projection matmul width instead.
            q_h = qkv_bf[:, h * dk:(h + 1) * dk].reshape(BT, S, dk)
            k_h = qkv_bf[:, D + h * dk:D + (h + 1) * dk].reshape(BT, S, dk)
            v_h = qkv_bf[:, 2 * D + h * dk:2 * D + (h + 1) * dk].reshape(BT, S, dk)

            s = jnp.einsum("bqd,bkd->bqk", q_h, k_h,
                           preferred_element_type=f32)               # (BT,S,S)
            # NRMS quirk: masked (padding) keys get score +1e-9, NOT -1e9.
            s = jnp.where(pad_keys, 1e-9, s)
            s = s - jnp.max(s, axis=-1, keepdims=True)
            e = jnp.exp(s)
            p = e * pl.reciprocal(jnp.sum(e, axis=-1, keepdims=True), approx=True)
            ctx = jnp.einsum("bqk,bkd->bqd", p.astype(bf16), v_h,
                             preferred_element_type=f32)             # (BT,S,dk) f32
            ctxs.append(ctx)
            t_pre = t_pre + jnp.dot(ctx.reshape(BT * S, dk).astype(bf16), wtv[h],
                                    preferred_element_type=f32)      # (BT*S, VA)

        # ---- additive-attention pooling -------------------------------------
        t = jnp.tanh(t_pre)
        # (BT*S,VA)@(VA,1) would be a 1-lane MXU output; VPU mul + lane reduce.
        sc = jnp.sum(t * wtq, axis=-1, keepdims=True).reshape(BT, S, 1)

        mattn = mattn_ref[...]                                       # (BT,S,1)
        sc = jnp.where(mattn == 0.0, -1e9, sc)
        sc = sc - jnp.max(sc, axis=1, keepdims=True)
        e = jnp.exp(sc)
        attend = e * pl.reciprocal(jnp.sum(e, axis=1, keepdims=True), approx=True)
        allz = jnp.sum(mattn, axis=1, keepdims=True)                 # (BT,1,1)
        attend = jnp.where(allz == 0.0, 0.0, attend)                 # all-zero-mask fixup

        # Final pooled embedding, written per head (tiny BTxdk stores).  The
        # lane-pad columns [D, D_pad) are never read back (wrapper slices).
        for h in range(H):
            out_ref[:, h * dk:(h + 1) * dk] = jnp.sum(ctxs[h] * attend, axis=1)

    return kernel


def text_encoder_forward(x, mask_selfattn, mask_attn, params, *, block_batch=None):
    """x: (B,S,D_in); mask_selfattn: key-pad mask reshapeable to (B,1,S);
    mask_attn: pooling mask reshapeable to (B,S). Returns (B, D)."""
    B, S, D_in = x.shape
    H = params["num_heads"]
    wq, wk, wv = params["weight_query"], params["weight_key"], params["weight_value"]
    wtv, wtq = params["trans_weight_v"], params["trans_weight_q"]
    D = wq.shape[1]
    VA = wtv.shape[1]
    dk = D // H
    scale = 1.0 / math.sqrt(dk)

    LANE = 128
    D_pad = max(LANE, ((D + LANE - 1) // LANE) * LANE)   # lane-dense output width

    # Batch tile: >= 512 flattened rows per projection matmul (v5e 4x128 MXU
    # rows / v6e-v7x 256-row MXU); whenever B exceeds one tile the grid has
    # >= 2 steps so the "parallel" axis can shard across v7x's two TCs.
    if block_batch is None:
        block_batch = max(1, 512 // S)
    BT = max(8, 8 * ((min(block_batch, max(B, 1)) + 7) // 8))

    # Cheap per-step VMEM estimate (double-buffered inputs + live temporaries);
    # keeps demo/production tiles under every generation's scoped default.
    def _step_bytes(bt):
        rows = bt * S
        return (2 * rows * D_in * 2            # bf16 x tile, double-buffered
                + rows * 3 * D * (4 + 2)       # qkv f32 + bf16 copy
                + rows * D * 4                 # live per-head contexts
                + 4 * bt * S * S * 4           # score/prob temporaries
                + 2 * bt * D_pad * 4)          # output block
    while BT > 8 and _step_bytes(BT) > 12 * 2**20:
        BT -= 8
    B_pad = ((B + BT - 1) // BT) * BT

    # Fused Q|K|V weight, with the attention scale folded into the Wq columns;
    # all matmul weights pre-cast to bf16 in the wrapper.
    wqkv = jnp.concatenate([wq.astype(jnp.float32) * scale, wk.astype(jnp.float32),
                            wv.astype(jnp.float32)], axis=1).astype(jnp.bfloat16)
    wtv_h = wtv.astype(jnp.float32).reshape(H, dk, VA).astype(jnp.bfloat16)
    wtq_row = wtq.reshape(1, VA).astype(jnp.float32)

    xf = x.astype(jnp.bfloat16)                               # bf16 DMA for x
    mself = mask_selfattn.reshape(B, 1, S).astype(jnp.float32)
    mattn = mask_attn.reshape(B, S, 1).astype(jnp.float32)

    if B_pad != B:                     # pad batch; padded rows come out as zeros
        pad = B_pad - B
        xf = jnp.pad(xf, ((0, pad), (0, 0), (0, 0)))
        mself = jnp.pad(mself, ((0, pad), (0, 0), (0, 0)))
        mattn = jnp.pad(mattn, ((0, pad), (0, 0), (0, 0)))

    kernel = make_text_encoder_kernel(BT, S, D_in, D, H, VA, D_pad)

    out = pl.pallas_call(
        kernel,
        out_shape=jax.ShapeDtypeStruct((B_pad, D_pad), jnp.float32),
        grid_spec=pltpu.PrefetchScalarGridSpec(
            num_scalar_prefetch=0,
            grid=(B_pad // BT,),
            in_specs=[
                pl.BlockSpec((BT, S, D_in), lambda b: (b, 0, 0)),   # x tile (bf16)
                pl.BlockSpec((BT, 1, S), lambda b: (b, 0, 0)),      # key-pad mask
                pl.BlockSpec((BT, S, 1), lambda b: (b, 0, 0)),      # pooling mask
                pl.BlockSpec((D_in, 3 * D), lambda b: (0, 0)),      # fused Wq|Wk|Wv
                pl.BlockSpec((H, dk, VA), lambda b: (0, 0, 0)),     # pooling Wv per head
                pl.BlockSpec((1, VA), lambda b: (0, 0)),            # pooling Wq row
            ],
            out_specs=pl.BlockSpec((BT, D_pad), lambda b: (b, 0)),
        ),
        compiler_params=pltpu.CompilerParams(
            dimension_semantics=("parallel",)),       # independent batch tiles
    )(xf, mself, mattn, wqkv, wtv_h, wtq_row)

    return out[:B, :D]


def init_params(key, D_in, H, VA):
    """Mirrors TextEncoder.parameters_init(): uniform(-1, 1)."""
    D = (D_in // H) * H
    ks = jax.random.split(key, 5)
    u = lambda k, shape: jax.random.uniform(k, shape, jnp.float32, -1.0, 1.0)
    return {
        "num_heads": H,
        "weight_query": u(ks[0], (D_in, D)),
        "weight_key": u(ks[1], (D_in, D)),
        "weight_value": u(ks[2], (D_in, D)),
        "trans_weight_v": u(ks[3], (D, VA)),
        "trans_weight_q": u(ks[4], (VA, 1)),
    }


def ref_forward(x, mask_selfattn, mask_attn, params):
    """Pure-JAX reference mirroring the PyTorch forward semantics and the
    kernel's numerics discipline (bf16 matmul inputs / f32 accumulation, with
    the 1/sqrt(d_k) attention scale folded into W_q before the bf16 cast --
    identical to PyTorch's scores / sqrt(d_k) in exact arithmetic)."""
    B, S, D_in = x.shape
    H = params["num_heads"]
    wq, wk, wv = params["weight_query"], params["weight_key"], params["weight_value"]
    wtv, wtq = params["trans_weight_v"], params["trans_weight_q"]
    D = wq.shape[1]
    dk = D // H
    bf, f32 = jnp.bfloat16, jnp.float32
    dot = lambda a, b: jnp.matmul(a.astype(bf), b.astype(bf), preferred_element_type=f32)

    q = dot(x, wq * (1.0 / math.sqrt(dk)))                            # folded scale
    k, v = dot(x, wk), dot(x, wv)                                     # (B,S,D)
    qh = q.reshape(B, S, H, dk).transpose(0, 2, 1, 3)
    kh = k.reshape(B, S, H, dk).transpose(0, 2, 1, 3)
    vh = v.reshape(B, S, H, dk).transpose(0, 2, 1, 3)
    s = jnp.einsum("bhqd,bhkd->bhqk", qh.astype(bf), kh.astype(bf),
                   preferred_element_type=f32)
    s = jnp.where(mask_selfattn.reshape(B, 1, 1, S) == 0, 1e-9, s)    # NRMS: fill = 1e-9
    p = jax.nn.softmax(s, axis=-1)
    ctx = jnp.einsum("bhqk,bhkd->bhqd", p.astype(bf), vh.astype(bf),
                     preferred_element_type=f32)
    xo = ctx.transpose(0, 2, 1, 3).reshape(B, S, D)

    t = jnp.tanh(dot(xo, wtv))                                        # (B,S,VA)
    sc = jnp.einsum("bsv,v->bs", t, wtq[:, 0].astype(f32))            # (B,S)
    sc = jnp.where(mask_attn.reshape(B, S) == 0, -1e9, sc)
    attend = jax.nn.softmax(sc, axis=1)
    allz = jnp.sum(mask_attn.reshape(B, S), axis=1, keepdims=True)
    attend = jnp.where(allz == 0, 0.0, attend)
    return jnp.einsum("bsd,bs->bd", xo, attend)


if __name__ == "__main__":
    B, S, D_in, H, VA = 12, 8, 32, 4, 32
    key = jax.random.PRNGKey(0)
    kx, kp = jax.random.split(key, 2)
    x = jax.random.normal(kx, (B, S, D_in), jnp.float32)
    params = init_params(kp, D_in, H, VA)

    # masks: 1 = real token, 0 = padding; row 4 has an all-zero pooling mask
    lengths = jnp.array([8, 6, 4, 8, 2, 8, 5, 8, 7, 3, 8, 1])
    pos = jnp.arange(S)[None, :]
    key_mask = (pos < lengths[:, None]).astype(jnp.float32)          # (B, S)
    mask_attn = key_mask.at[4].set(0.0)                              # exercises the fixup
    mask_selfattn = key_mask[:, None, :]                             # (B, 1, S)

    # block_batch=8 chosen to exercise multi-step tiling + batch padding at
    # this tiny demo size (B=12 -> padded to 16, grid of 2 tiles).
    out = text_encoder_forward(x, mask_selfattn, mask_attn, params, block_batch=8)
    out = jax.block_until_ready(out)

    ref = ref_forward(x, mask_selfattn, mask_attn, params)
    assert out.shape == (B, params["weight_query"].shape[1])
    assert jnp.allclose(out, ref, atol=5e-2, rtol=5e-2), \
        float(jnp.max(jnp.abs(out - ref)))
    print("KERNEL_OK")
</pallas_src>

<mosaic_0001>
module attributes {stable_mosaic.version = 11 : i64} {
  func.func @kernel(%arg0: i32, %arg1: memref<8x8x32xbf16, #tpu.memory_space<vmem>>, %arg2: memref<8x1x8xf32, #tpu.memory_space<vmem>>, %arg3: memref<8x8x1xf32, #tpu.memory_space<vmem>>, %arg4: memref<32x96xbf16, #tpu.memory_space<vmem>>, %arg5: memref<4x8x32xbf16, #tpu.memory_space<vmem>>, %arg6: memref<1x32xf32, #tpu.memory_space<vmem>>, %arg7: memref<8x128xf32, #tpu.memory_space<vmem>>) attributes {dimension_semantics = [#tpu.dimension_semantics<parallel>], iteration_bounds = array<i64: 2>, scalar_prefetch = 0 : i64, scratch_operands = 0 : i64, tpu.core_type = #tpu.core_type<tc>, window_params = [{transform_indices = @transform_0, window_bounds = array<i64: 8, 8, 32>}, {transform_indices = @transform_1, window_bounds = array<i64: 8, 1, 8>}, {transform_indices = @transform_2, window_bounds = array<i64: 8, 8, 1>}, {pipeline_mode = #tpu.pipeline_mode<synchronous>, transform_indices = @transform_3, window_bounds = array<i64: 32, 96>}, {pipeline_mode = #tpu.pipeline_mode<synchronous>, transform_indices = @transform_4, window_bounds = array<i64: 4, 8, 32>}, {pipeline_mode = #tpu.pipeline_mode<synchronous>, transform_indices = @transform_5, window_bounds = array<i64: 1, 32>}, {transform_indices = @transform_6, window_bounds = array<i64: 8, 128>}]} {
    %c0 = arith.constant 0 : index
    %c0_0 = arith.constant 0 : index
    %c0_1 = arith.constant 0 : index
    %0 = vector.load %arg1[%c0, %c0_0, %c0_1] : memref<8x8x32xbf16, #tpu.memory_space<vmem>>, vector<8x8x32xbf16>
    %1 = vector.shape_cast %0 : vector<8x8x32xbf16> to vector<64x32xbf16>
    %c0_2 = arith.constant 0 : index
    %c0_3 = arith.constant 0 : index
    %2 = vector.load %arg4[%c0_2, %c0_3] : memref<32x96xbf16, #tpu.memory_space<vmem>>, vector<32x96xbf16>
    %cst = arith.constant dense<0.000000e+00> : vector<64x96xf32>
    %3 = tpu.matmul %1, %2, %cst {dimension_numbers = #tpu.dot_dimension_numbers<[1], [0], [0], [1], [0, 0, 1, 1], [], []>} : vector<64x32xbf16>, vector<32x96xbf16>, vector<64x96xf32> -> vector<64x96xf32>
    %4 = arith.truncf %3 : vector<64x96xf32> to vector<64x96xbf16>
    %c0_4 = arith.constant 0 : index
    %c0_5 = arith.constant 0 : index
    %c0_6 = arith.constant 0 : index
    %5 = vector.load %arg2[%c0_4, %c0_5, %c0_6] : memref<8x1x8xf32, #tpu.memory_space<vmem>>, vector<8x1x8xf32>
    %cst_7 = arith.constant 0.000000e+00 : f32
    %6 = vector.broadcast %cst_7 : f32 to vector<8x1x8xf32>
    %7 = arith.cmpf oeq, %5, %6 : vector<8x1x8xf32>
    %8 = vector.shape_cast %7 : vector<8x1x8xi1> to vector<8x1x8xi1>
    %9 = vector.broadcast %8 : vector<8x1x8xi1> to vector<8x8x8xi1>
    %c0_8 = arith.constant 0 : index
    %c0_9 = arith.constant 0 : index
    %c0_10 = arith.constant 0 : index
    %10 = vector.load %arg5[%c0_8, %c0_9, %c0_10] : memref<4x8x32xbf16, #tpu.memory_space<vmem>>, vector<4x8x32xbf16>
    %c0_11 = arith.constant 0 : index
    %c0_12 = arith.constant 0 : index
    %11 = vector.load %arg6[%c0_11, %c0_12] : memref<1x32xf32, #tpu.memory_space<vmem>>, vector<1x32xf32>
    %cst_13 = arith.constant 0.000000e+00 : f32
    %12 = vector.broadcast %cst_13 : f32 to vector<64x32xf32>
    %13 = vector.extract_strided_slice %4 {offsets = [0, 0], sizes = [64, 8], strides = [1, 1]} : vector<64x96xbf16> to vector<64x8xbf16>
    %14 = vector.shape_cast %13 : vector<64x8xbf16> to vector<8x8x8xbf16>
    %15 = vector.extract_strided_slice %4 {offsets = [0, 32], sizes = [64, 8], strides = [1, 1]} : vector<64x96xbf16> to vector<64x8xbf16>
    %16 = vector.shape_cast %15 : vector<64x8xbf16> to vector<8x8x8xbf16>
    %17 = vector.extract_strided_slice %4 {offsets = [0, 64], sizes = [64, 8], strides = [1, 1]} : vector<64x96xbf16> to vector<64x8xbf16>
    %18 = vector.shape_cast %17 : vector<64x8xbf16> to vector<8x8x8xbf16>
    "tpu.trace_start"() <{level = 10 : i32, message = "bqd,bkd->bqk"}> : () -> ()
    %cst_14 = arith.constant dense<0.000000e+00> : vector<8x8x8xf32>
    %19 = tpu.matmul %14, %16, %cst_14 {dimension_numbers = #tpu.dot_dimension_numbers<[2], [2], [1], [1], [0, 0, 0, 1, 1, 1], [0], [0]>} : vector<8x8x8xbf16>, vector<8x8x8xbf16>, vector<8x8x8xf32> -> vector<8x8x8xf32>
    %cst_15 = arith.constant 9.99999971E-10 : f32
    "tpu.trace_stop"() : () -> ()
    %20 = vector.broadcast %cst_15 : f32 to vector<8x8x8xf32>
    %21 = arith.select %9, %20, %19 : vector<8x8x8xi1>, vector<8x8x8xf32>
    %cst_16 = arith.constant dense<0xFF800000> : vector<8x8xf32>
    %22 = vector.multi_reduction <maximumf>, %21, %cst_16 [2] : vector<8x8x8xf32> to vector<8x8xf32>
    %23 = vector.shape_cast %22 : vector<8x8xf32> to vector<8x8x1xf32>
    %24 = vector.broadcast %23 : vector<8x8x1xf32> to vector<8x8x8xf32>
    %25 = arith.subf %21, %24 : vector<8x8x8xf32>
    %26 = math.exp %25 : vector<8x8x8xf32>
    %cst_17 = arith.constant dense<0.000000e+00> : vector<8x8xf32>
    %27 = vector.multi_reduction <add>, %26, %cst_17 [2] : vector<8x8x8xf32> to vector<8x8xf32>
    %28 = vector.shape_cast %27 : vector<8x8xf32> to vector<8x8x1xf32>
    %29 = tpu.reciprocal %28 {approx = true} : vector<8x8x1xf32> -> vector<8x8x1xf32>
    %30 = vector.broadcast %29 : vector<8x8x1xf32> to vector<8x8x8xf32>
    %31 = arith.mulf %26, %30 : vector<8x8x8xf32>
    %32 = arith.truncf %31 : vector<8x8x8xf32> to vector<8x8x8xbf16>
    "tpu.trace_start"() <{level = 10 : i32, message = "bqk,bkd->bqd"}> : () -> ()
    %cst_18 = arith.constant dense<0.000000e+00> : vector<8x8x8xf32>
    %33 = tpu.matmul %32, %18, %cst_18 {dimension_numbers = #tpu.dot_dimension_numbers<[2], [1], [1], [2], [0, 0, 0, 1, 1, 2], [0], [0]>} : vector<8x8x8xbf16>, vector<8x8x8xbf16>, vector<8x8x8xf32> -> vector<8x8x8xf32>
    "tpu.trace_stop"() : () -> ()
    %34 = vector.shape_cast %33 : vector<8x8x8xf32> to vector<64x8xf32>
    %35 = arith.truncf %34 : vector<64x8xf32> to vector<64x8xbf16>
    %36 = vector.extract_strided_slice %10 {offsets = [0, 0, 0], sizes = [1, 8, 32], strides = [1, 1, 1]} : vector<4x8x32xbf16> to vector<1x8x32xbf16>
    %37 = vector.shape_cast %36 : vector<1x8x32xbf16> to vector<8x32xbf16>
    %cst_19 = arith.constant dense<0.000000e+00> : vector<64x32xf32>
    %38 = tpu.matmul %35, %37, %cst_19 {dimension_numbers = #tpu.dot_dimension_numbers<[1], [0], [0], [1], [0, 0, 1, 1], [], []>} : vector<64x8xbf16>, vector<8x32xbf16>, vector<64x32xf32> -> vector<64x32xf32>
    %39 = arith.addf %12, %38 : vector<64x32xf32>
    %40 = vector.extract_strided_slice %4 {offsets = [0, 8], sizes = [64, 8], strides = [1, 1]} : vector<64x96xbf16> to vector<64x8xbf16>
    %41 = vector.shape_cast %40 : vector<64x8xbf16> to vector<8x8x8xbf16>
    %42 = vector.extract_strided_slice %4 {offsets = [0, 40], sizes = [64, 8], strides = [1, 1]} : vector<64x96xbf16> to vector<64x8xbf16>
    %43 = vector.shape_cast %42 : vector<64x8xbf16> to vector<8x8x8xbf16>
    %44 = vector.extract_strided_slice %4 {offsets = [0, 72], sizes = [64, 8], strides = [1, 1]} : vector<64x96xbf16> to vector<64x8xbf16>
    %45 = vector.shape_cast %44 : vector<64x8xbf16> to vector<8x8x8xbf16>
    "tpu.trace_start"() <{level = 10 : i32, message = "bqd,bkd->bqk"}> : () -> ()
    %cst_20 = arith.constant dense<0.000000e+00> : vector<8x8x8xf32>
    %46 = tpu.matmul %41, %43, %cst_20 {dimension_numbers = #tpu.dot_dimension_numbers<[2], [2], [1], [1], [0, 0, 0, 1, 1, 1], [0], [0]>} : vector<8x8x8xbf16>, vector<8x8x8xbf16>, vector<8x8x8xf32> -> vector<8x8x8xf32>
    %cst_21 = arith.constant 9.99999971E-10 : f32
    "tpu.trace_stop"() : () -> ()
    %47 = vector.broadcast %cst_21 : f32 to vector<8x8x8xf32>
    %48 = arith.select %9, %47, %46 : vector<8x8x8xi1>, vector<8x8x8xf32>
    %cst_22 = arith.constant dense<0xFF800000> : vector<8x8xf32>
    %49 = vector.multi_reduction <maximumf>, %48, %cst_22 [2] : vector<8x8x8xf32> to vector<8x8xf32>
    %50 = vector.shape_cast %49 : vector<8x8xf32> to vector<8x8x1xf32>
    %51 = vector.broadcast %50 : vector<8x8x1xf32> to vector<8x8x8xf32>
    %52 = arith.subf %48, %51 : vector<8x8x8xf32>
    %53 = math.exp %52 : vector<8x8x8xf32>
    %cst_23 = arith.constant dense<0.000000e+00> : vector<8x8xf32>
    %54 = vector.multi_reduction <add>, %53, %cst_23 [2] : vector<8x8x8xf32> to vector<8x8xf32>
    %55 = vector.shape_cast %54 : vector<8x8xf32> to vector<8x8x1xf32>
    %56 = tpu.reciprocal %55 {approx = true} : vector<8x8x1xf32> -> vector<8x8x1xf32>
    %57 = vector.broadcast %56 : vector<8x8x1xf32> to vector<8x8x8xf32>
    %58 = arith.mulf %53, %57 : vector<8x8x8xf32>
    %59 = arith.truncf %58 : vector<8x8x8xf32> to vector<8x8x8xbf16>
    "tpu.trace_start"() <{level = 10 : i32, message = "bqk,bkd->bqd"}> : () -> ()
    %cst_24 = arith.constant dense<0.000000e+00> : vector<8x8x8xf32>
    %60 = tpu.matmul %59, %45, %cst_24 {dimension_numbers = #tpu.dot_dimension_numbers<[2], [1], [1], [2], [0, 0, 0, 1, 1, 2], [0], [0]>} : vector<8x8x8xbf16>, vector<8x8x8xbf16>, vector<8x8x8xf32> -> vector<8x8x8xf32>
    "tpu.trace_stop"() : () -> ()
    %61 = vector.shape_cast %60 : vector<8x8x8xf32> to vector<64x8xf32>
    %62 = arith.truncf %61 : vector<64x8xf32> to vector<64x8xbf16>
    %63 = vector.extract_strided_slice %10 {offsets = [1, 0, 0], sizes = [1, 8, 32], strides = [1, 1, 1]} : vector<4x8x32xbf16> to vector<1x8x32xbf16>
    %64 = vector.shape_cast %63 : vector<1x8x32xbf16> to vector<8x32xbf16>
    %cst_25 = arith.constant dense<0.000000e+00> : vector<64x32xf32>
    %65 = tpu.matmul %62, %64, %cst_25 {dimension_numbers = #tpu.dot_dimension_numbers<[1], [0], [0], [1], [0, 0, 1, 1], [], []>} : vector<64x8xbf16>, vector<8x32xbf16>, vector<64x32xf32> -> vector<64x32xf32>
    %66 = arith.addf %39, %65 : vector<64x32xf32>
    %67 = vector.extract_strided_slice %4 {offsets = [0, 16], sizes = [64, 8], strides = [1, 1]} : vector<64x96xbf16> to vector<64x8xbf16>
    %68 = vector.shape_cast %67 : vector<64x8xbf16> to vector<8x8x8xbf16>
    %69 = vector.extract_strided_slice %4 {offsets = [0, 48], sizes = [64, 8], strides = [1, 1]} : vector<64x96xbf16> to vector<64x8xbf16>
    %70 = vector.shape_cast %69 : vector<64x8xbf16> to vector<8x8x8xbf16>
    %71 = vector.extract_strided_slice %4 {offsets = [0, 80], sizes = [64, 8], strides = [1, 1]} : vector<64x96xbf16> to vector<64x8xbf16>
    %72 = vector.shape_cast %71 : vector<64x8xbf16> to vector<8x8x8xbf16>
    "tpu.trace_start"() <{level = 10 : i32, message = "bqd,bkd->bqk"}> : () -> ()
    %cst_26 = arith.constant dense<0.000000e+00> : vector<8x8x8xf32>
    %73 = tpu.matmul %68, %70, %cst_26 {dimension_numbers = #tpu.dot_dimension_numbers<[2], [2], [1], [1], [0, 0, 0, 1, 1, 1], [0], [0]>} : vector<8x8x8xbf16>, vector<8x8x8xbf16>, vector<8x8x8xf32> -> vector<8x8x8xf32>
    %cst_27 = arith.constant 9.99999971E-10 : f32
    "tpu.trace_stop"() : () -> ()
    %74 = vector.broadcast %cst_27 : f32 to vector<8x8x8xf32>
    %75 = arith.select %9, %74, %73 : vector<8x8x8xi1>, vector<8x8x8xf32>
    %cst_28 = arith.constant dense<0xFF800000> : vector<8x8xf32>
    %76 = vector.multi_reduction <maximumf>, %75, %cst_28 [2] : vector<8x8x8xf32> to vector<8x8xf32>
    %77 = vector.shape_cast %76 : vector<8x8xf32> to vector<8x8x1xf32>
    %78 = vector.broadcast %77 : vector<8x8x1xf32> to vector<8x8x8xf32>
    %79 = arith.subf %75, %78 : vector<8x8x8xf32>
    %80 = math.exp %79 : vector<8x8x8xf32>
    %cst_29 = arith.constant dense<0.000000e+00> : vector<8x8xf32>
    %81 = vector.multi_reduction <add>, %80, %cst_29 [2] : vector<8x8x8xf32> to vector<8x8xf32>
    %82 = vector.shape_cast %81 : vector<8x8xf32> to vector<8x8x1xf32>
    %83 = tpu.reciprocal %82 {approx = true} : vector<8x8x1xf32> -> vector<8x8x1xf32>
    %84 = vector.broadcast %83 : vector<8x8x1xf32> to vector<8x8x8xf32>
    %85 = arith.mulf %80, %84 : vector<8x8x8xf32>
    %86 = arith.truncf %85 : vector<8x8x8xf32> to vector<8x8x8xbf16>
    "tpu.trace_start"() <{level = 10 : i32, message = "bqk,bkd->bqd"}> : () -> ()
    %cst_30 = arith.constant dense<0.000000e+00> : vector<8x8x8xf32>
    %87 = tpu.matmul %86, %72, %cst_30 {dimension_numbers = #tpu.dot_dimension_numbers<[2], [1], [1], [2], [0, 0, 0, 1, 1, 2], [0], [0]>} : vector<8x8x8xbf16>, vector<8x8x8xbf16>, vector<8x8x8xf32> -> vector<8x8x8xf32>
    "tpu.trace_stop"() : () -> ()
    %88 = vector.shape_cast %87 : vector<8x8x8xf32> to vector<64x8xf32>
    %89 = arith.truncf %88 : vector<64x8xf32> to vector<64x8xbf16>
    %90 = vector.extract_strided_slice %10 {offsets = [2, 0, 0], sizes = [1, 8, 32], strides = [1, 1, 1]} : vector<4x8x32xbf16> to vector<1x8x32xbf16>
    %91 = vector.shape_cast %90 : vector<1x8x32xbf16> to vector<8x32xbf16>
    %cst_31 = arith.constant dense<0.000000e+00> : vector<64x32xf32>
    %92 = tpu.matmul %89, %91, %cst_31 {dimension_numbers = #tpu.dot_dimension_numbers<[1], [0], [0], [1], [0, 0, 1, 1], [], []>} : vector<64x8xbf16>, vector<8x32xbf16>, vector<64x32xf32> -> vector<64x32xf32>
    %93 = arith.addf %66, %92 : vector<64x32xf32>
    %94 = vector.extract_strided_slice %4 {offsets = [0, 24], sizes = [64, 8], strides = [1, 1]} : vector<64x96xbf16> to vector<64x8xbf16>
    %95 = vector.shape_cast %94 : vector<64x8xbf16> to vector<8x8x8xbf16>
    %96 = vector.extract_strided_slice %4 {offsets = [0, 56], sizes = [64, 8], strides = [1, 1]} : vector<64x96xbf16> to vector<64x8xbf16>
    %97 = vector.shape_cast %96 : vector<64x8xbf16> to vector<8x8x8xbf16>
    %98 = vector.extract_strided_slice %4 {offsets = [0, 88], sizes = [64, 8], strides = [1, 1]} : vector<64x96xbf16> to vector<64x8xbf16>
    %99 = vector.shape_cast %98 : vector<64x8xbf16> to vector<8x8x8xbf16>
    "tpu.trace_start"() <{level = 10 : i32, message = "bqd,bkd->bqk"}> : () -> ()
    %cst_32 = arith.constant dense<0.000000e+00> : vector<8x8x8xf32>
    %100 = tpu.matmul %95, %97, %cst_32 {dimension_numbers = #tpu.dot_dimension_numbers<[2], [2], [1], [1], [0, 0, 0, 1, 1, 1], [0], [0]>} : vector<8x8x8xbf16>, vector<8x8x8xbf16>, vector<8x8x8xf32> -> vector<8x8x8xf32>
    %cst_33 = arith.constant 9.99999971E-10 : f32
    "tpu.trace_stop"() : () -> ()
    %101 = vector.broadcast %cst_33 : f32 to vector<8x8x8xf32>
    %102 = arith.select %9, %101, %100 : vector<8x8x8xi1>, vector<8x8x8xf32>
    %cst_34 = arith.constant dense<0xFF800000> : vector<8x8xf32>
    %103 = vector.multi_reduction <maximumf>, %102, %cst_34 [2] : vector<8x8x8xf32> to vector<8x8xf32>
    %104 = vector.shape_cast %103 : vector<8x8xf32> to vector<8x8x1xf32>
    %105 = vector.broadcast %104 : vector<8x8x1xf32> to vector<8x8x8xf32>
    %106 = arith.subf %102, %105 : vector<8x8x8xf32>
    %107 = math.exp %106 : vector<8x8x8xf32>
    %cst_35 = arith.constant dense<0.000000e+00> : vector<8x8xf32>
    %108 = vector.multi_reduction <add>, %107, %cst_35 [2] : vector<8x8x8xf32> to vector<8x8xf32>
    %109 = vector.shape_cast %108 : vector<8x8xf32> to vector<8x8x1xf32>
    %110 = tpu.reciprocal %109 {approx = true} : vector<8x8x1xf32> -> vector<8x8x1xf32>
    %111 = vector.broadcast %110 : vector<8x8x1xf32> to vector<8x8x8xf32>
    %112 = arith.mulf %107, %111 : vector<8x8x8xf32>
    %113 = arith.truncf %112 : vector<8x8x8xf32> to vector<8x8x8xbf16>
    "tpu.trace_start"() <{level = 10 : i32, message = "bqk,bkd->bqd"}> : () -> ()
    %cst_36 = arith.constant dense<0.000000e+00> : vector<8x8x8xf32>
    %114 = tpu.matmul %113, %99, %cst_36 {dimension_numbers = #tpu.dot_dimension_numbers<[2], [1], [1], [2], [0, 0, 0, 1, 1, 2], [0], [0]>} : vector<8x8x8xbf16>, vector<8x8x8xbf16>, vector<8x8x8xf32> -> vector<8x8x8xf32>
    "tpu.trace_stop"() : () -> ()
    %115 = vector.shape_cast %114 : vector<8x8x8xf32> to vector<64x8xf32>
    %116 = arith.truncf %115 : vector<64x8xf32> to vector<64x8xbf16>
    %117 = vector.extract_strided_slice %10 {offsets = [3, 0, 0], sizes = [1, 8, 32], strides = [1, 1, 1]} : vector<4x8x32xbf16> to vector<1x8x32xbf16>
    %118 = vector.shape_cast %117 : vector<1x8x32xbf16> to vector<8x32xbf16>
    %cst_37 = arith.constant dense<0.000000e+00> : vector<64x32xf32>
    %119 = tpu.matmul %116, %118, %cst_37 {dimension_numbers = #tpu.dot_dimension_numbers<[1], [0], [0], [1], [0, 0, 1, 1], [], []>} : vector<64x8xbf16>, vector<8x32xbf16>, vector<64x32xf32> -> vector<64x32xf32>
    %120 = arith.addf %93, %119 : vector<64x32xf32>
    %121 = math.tanh %120 : vector<64x32xf32>
    %122 = vector.broadcast %11 : vector<1x32xf32> to vector<64x32xf32>
    %123 = arith.mulf %121, %122 : vector<64x32xf32>
    %cst_38 = arith.constant dense<0.000000e+00> : vector<64xf32>
    %124 = vector.multi_reduction <add>, %123, %cst_38 [1] : vector<64x32xf32> to vector<64xf32>
    %125 = vector.shape_cast %124 : vector<64xf32> to vector<64x1xf32>
    %126 = vector.shape_cast %125 : vector<64x1xf32> to vector<8x8x1xf32>
    %c0_39 = arith.constant 0 : index
    %c0_40 = arith.constant 0 : index
    %c0_41 = arith.constant 0 : index
    %127 = vector.load %arg3[%c0_39, %c0_40, %c0_41] : memref<8x8x1xf32, #tpu.memory_space<vmem>>, vector<8x8x1xf32>
    %cst_42 = arith.constant 0.000000e+00 : f32
    %128 = vector.broadcast %cst_42 : f32 to vector<8x8x1xf32>
    %129 = arith.cmpf oeq, %127, %128 : vector<8x8x1xf32>
    %cst_43 = arith.constant -1.000000e+09 : f32
    %130 = vector.broadcast %cst_43 : f32 to vector<8x8x1xf32>
    %131 = arith.select %129, %130, %126 : vector<8x8x1xi1>, vector<8x8x1xf32>
    %cst_44 = arith.constant dense<0xFF800000> : vector<8x1xf32>
    %132 = vector.multi_reduction <maximumf>, %131, %cst_44 [1] : vector<8x8x1xf32> to vector<8x1xf32>
    %133 = vector.shape_cast %132 : vector<8x1xf32> to vector<8x1x1xf32>
    %134 = vector.broadcast %133 : vector<8x1x1xf32> to vector<8x8x1xf32>
    %135 = arith.subf %131, %134 : vector<8x8x1xf32>
    %136 = math.exp %135 : vector<8x8x1xf32>
    %cst_45 = arith.constant dense<0.000000e+00> : vector<8x1xf32>
    %137 = vector.multi_reduction <add>, %136, %cst_45 [1] : vector<8x8x1xf32> to vector<8x1xf32>
    %138 = vector.shape_cast %137 : vector<8x1xf32> to vector<8x1x1xf32>
    %139 = tpu.reciprocal %138 {approx = true} : vector<8x1x1xf32> -> vector<8x1x1xf32>
    %140 = vector.broadcast %139 : vector<8x1x1xf32> to vector<8x8x1xf32>
    %141 = arith.mulf %136, %140 : vector<8x8x1xf32>
    %cst_46 = arith.constant dense<0.000000e+00> : vector<8x1xf32>
    %142 = vector.multi_reduction <add>, %127, %cst_46 [1] : vector<8x8x1xf32> to vector<8x1xf32>
    %143 = vector.shape_cast %142 : vector<8x1xf32> to vector<8x1x1xf32>
    %cst_47 = arith.constant 0.000000e+00 : f32
    %144 = vector.broadcast %cst_47 : f32 to vector<8x1x1xf32>
    %145 = arith.cmpf oeq, %143, %144 : vector<8x1x1xf32>
    %cst_48 = arith.constant 0.000000e+00 : f32
    %146 = vector.shape_cast %145 : vector<8x1x1xi1> to vector<8x1x1xi1>
    %147 = vector.broadcast %146 : vector<8x1x1xi1> to vector<8x8x1xi1>
    %148 = vector.broadcast %cst_48 : f32 to vector<8x8x1xf32>
    %149 = arith.select %147, %148, %141 : vector<8x8x1xi1>, vector<8x8x1xf32>
    %150 = vector.broadcast %149 : vector<8x8x1xf32> to vector<8x8x8xf32>
    %151 = arith.mulf %33, %150 : vector<8x8x8xf32>
    %cst_49 = arith.constant dense<0.000000e+00> : vector<8x8xf32>
    %152 = vector.multi_reduction <add>, %151, %cst_49 [1] : vector<8x8x8xf32> to vector<8x8xf32>
    %c0_50 = arith.constant 0 : index
    %c0_51 = arith.constant 0 : index
    %153 = vector.load %arg7[%c0_50, %c0_51] : memref<8x128xf32, #tpu.memory_space<vmem>>, vector<8x8xf32>
    tpu.vector_store %arg7[%c0_50, %c0_51], %152 {strides = array<i32>} : memref<8x128xf32, #tpu.memory_space<vmem>>, vector<8x8xf32>,
    %154 = vector.broadcast %149 : vector<8x8x1xf32> to vector<8x8x8xf32>
    %155 = arith.mulf %60, %154 : vector<8x8x8xf32>
    %cst_52 = arith.constant dense<0.000000e+00> : vector<8x8xf32>
    %156 = vector.multi_reduction <add>, %155, %cst_52 [1] : vector<8x8x8xf32> to vector<8x8xf32>
    %c0_53 = arith.constant 0 : index
    %c8 = arith.constant 8 : index
    %157 = vector.load %arg7[%c0_53, %c8] : memref<8x128xf32, #tpu.memory_space<vmem>>, vector<8x8xf32>
    tpu.vector_store %arg7[%c0_53, %c8], %156 {strides = array<i32>} : memref<8x128xf32, #tpu.memory_space<vmem>>, vector<8x8xf32>,
    %158 = vector.broadcast %149 : vector<8x8x1xf32> to vector<8x8x8xf32>
    %159 = arith.mulf %87, %158 : vector<8x8x8xf32>
    %cst_54 = arith.constant dense<0.000000e+00> : vector<8x8xf32>
    %160 = vector.multi_reduction <add>, %159, %cst_54 [1] : vector<8x8x8xf32> to vector<8x8xf32>
    %c0_55 = arith.constant 0 : index
    %c16 = arith.constant 16 : index
    %161 = vector.load %arg7[%c0_55, %c16] : memref<8x128xf32, #tpu.memory_space<vmem>>, vector<8x8xf32>
    tpu.vector_store %arg7[%c0_55, %c16], %160 {strides = array<i32>} : memref<8x128xf32, #tpu.memory_space<vmem>>, vector<8x8xf32>,
    %162 = vector.broadcast %149 : vector<8x8x1xf32> to vector<8x8x8xf32>
    %163 = arith.mulf %114, %162 : vector<8x8x8xf32>
    %cst_56 = arith.constant dense<0.000000e+00> : vector<8x8xf32>
    %164 = vector.multi_reduction <add>, %163, %cst_56 [1] : vector<8x8x8xf32> to vector<8x8xf32>
    %c0_57 = arith.constant 0 : index
    %c24 = arith.constant 24 : index
    %165 = vector.load %arg7[%c0_57, %c24] : memref<8x128xf32, #tpu.memory_space<vmem>>, vector<8x8xf32>
    tpu.vector_store %arg7[%c0_57, %c24], %164 {strides = array<i32>} : memref<8x128xf32, #tpu.memory_space<vmem>>, vector<8x8xf32>,
    return
  }
  func.func @transform_0(%arg0: i32) -> (i32, i32, i32) {
    %c0_i32 = arith.constant 0 : i32
    %c0_i32_0 = arith.constant 0 : i32
    %c0_i32_1 = arith.constant 0 : i32
    return %arg0, %c0_i32, %c0_i32_0 : i32, i32, i32
  }
  func.func @transform_1(%arg0: i32) -> (i32, i32, i32) {
    %c0_i32 = arith.constant 0 : i32
    %c0_i32_0 = arith.constant 0 : i32
    %c0_i32_1 = arith.constant 0 : i32
    return %arg0, %c0_i32, %c0_i32_0 : i32, i32, i32
  }
  func.func @transform_2(%arg0: i32) -> (i32, i32, i32) {
    %c0_i32 = arith.constant 0 : i32
    %c0_i32_0 = arith.constant 0 : i32
    %c0_i32_1 = arith.constant 0 : i32
    return %arg0, %c0_i32, %c0_i32_0 : i32, i32, i32
  }
  func.func @transform_3(%arg0: i32) -> (i32, i32) {
    %c0_i32 = arith.constant 0 : i32
    %c0_i32_0 = arith.constant 0 : i32
    %c0_i32_1 = arith.constant 0 : i32
    return %c0_i32, %c0_i32_0 : i32, i32
  }
  func.func @transform_4(%arg0: i32) -> (i32, i32, i32) {
    %c0_i32 = arith.constant 0 : i32
    %c0_i32_0 = arith.constant 0 : i32
    %c0_i32_1 = arith.constant 0 : i32
    %c0_i32_2 = arith.constant 0 : i32
    return %c0_i32, %c0_i32_0, %c0_i32_1 : i32, i32, i32
  }
  func.func @transform_5(%arg0: i32) -> (i32, i32) {
    %c0_i32 = arith.constant 0 : i32
    %c0_i32_0 = arith.constant 0 : i32
    %c0_i32_1 = arith.constant 0 : i32
    return %c0_i32, %c0_i32_0 : i32, i32
  }
  func.func @transform_6(%arg0: i32) -> (i32, i32) {
    %c0_i32 = arith.constant 0 : i32
    %c0_i32_0 = arith.constant 0 : i32
    return %arg0, %c0_i32 : i32, i32
  }
}

</mosaic_0001>

<bundles_post_ra>
// kernel: tpu_custom_call.1
= control target key start
LH: loop header
LB: loop body
LE: loop exit
PB: predicated region body
PF: predicated region fallthrough
CT: control target
= control target key end

     0   :  { %11 = vsyncpa [#allocation3], 0  ;;  %s7679_s0 = inlined_call_operand.vmem [shape: bf16[16,8,32], index: 0, kind: input, shape index: {}]   ;;  %s7680_s1 = inlined_call_operand.vmem [shape: f32[16,1,8], index: 1, kind: input, shape index: {}]   ;;  %s7681_s2 = inlined_call_operand.vmem [shape: f32[16,8,1], index: 2, kind: input, shape index: {}]   ;;  %s7682_s3 = inlined_call_operand.vmem [shape: bf16[32,96], index: 3, kind: input, shape index: {}]   ;;  %s7683_s4 = inlined_call_operand.vmem [shape: bf16[4,8,32], index: 4, kind: input, shape index: {}]   ;;  %s7684_s5 = inlined_call_operand.vmem [shape: f32[1,32], index: 5, kind: input, shape index: {}]   ;;  %s7685_s6 = inlined_call_operand.hbm [shape: f32[16,128], index: 6, kind: output, shape index: {}]  }
   0x1   :  { %13 = vsyncpa [#allocation3 + $0x1], 0  ;;  %s6284_s21 = smov 0   ;;  %s6286_s22 = smov 0  }
   0x2   :  { %s6288_s23 = smov 0   ;;  %s6290_s24 = smov 0  }
   0x3 LB: > { %s6305_s25 = sadd.s32 4294967295, %s6229_s24   ;;  %s5184_s26 = sadd.s32 4294967294, %s6229_s24   ;;  %s6229_s24 = sphi %s6290_s24, %s7734_s24   ;;  %s6225_s23 = sphi %s6288_s23, %s7733_s23   ;;  %s6221_s22 = sphi %s6286_s22, %s7732_s22   ;;  %s6217_s21 = sphi %s6284_s21, %s7731_s21  }
   0x4   : > { %s6309_s27 = sadd.s32 1, %s6229_s24   ;;  %s167_s28 = sadd.s32 1, %s6225_s23 }
   0x5   : > { %s164_s29 = ssub.s32 %s6229_s24, %s6309_s27  ;;  %p177_p0 = scmp.ne.s32.totalorder %s6225_s23, %s6221_s22 }
   0x6   : > { %p165_p1 = scmp.eq.s32.totalorder %s164_s29, 0  ;;  %p178_p2 = scmp.eq.s32.totalorder %s6305_s25, 1 }
   0x7   : > { %p183_p3 = scmp.ne.s32.totalorder %s6221_s22, %s6217_s21  ;;  %p184_p4 = scmp.eq.s32.totalorder %s5184_s26, 1 }
   0x8   : > { %s6320_s30 = scalar_select %p165_p1, %s6225_s23, %s167_s28  }
   0x9   : > { %p6322_p5 = por %p178_p2, %p177_p0  ;;  %p6326_p6 = por %p184_p4, %p183_p3 }
   0xa   : > { %p5187_p7 = scmp.ge.s32.totalorder %s6229_s24, 1  ;;  %p237_p8 = scmp.lt.s32.totalorder %s6229_s24, 3 }
   0xc   : > { %p238_p9 = pnand %p5187_p7, %p237_p8 }
   0xe   : > { %241 = sbr.rel (%p238_p9) target bundleno = 4128 (0x1020), region = 44 }
  0x15   : > { %v5985_v0 = vld [vmem:[%s7682_s3] sm:$0xff]   ;;  %s5189_s11 = sshll.u32 %s6305_s25, 3  ;;  %v5986_v1 = vld [vmem:[%s7682_s3 + $0x8] sm:$0xff]   ;;  %vm338_vm0 = vcmask 261120   ;;  %v6231_v6 = vmov 0.0   ;;  %vm6232_vm1 = vmmov 0   ;;  %v444_v40 = vlaneseq }
  0x16   : > { %p277_p10 = scmp.lt.s32.totalorder %s5189_s11, 15  ;;  %5459 = vmatprep.subr.bf16.mxu0 %v5985_v0  ;;  %5895 = vmatprep.subr.bf16.mxu1 %v5985_v0  ;;  %s6233_s18 = smov 96   ;;  %v6234_v23 = vmov 0   ;;  %vm511_vm2 = vcmask 64512  }
  0x17   : > { %5460 = vmatpush3.bf16.msra.mxu0 %v5985_v0  ;;  %5897 = vmatpush3.bf16.msra.mxu1 %v5985_v0  ;;  %v445_v42 = vshrl.u32 %v444_v40, 7  ;;  %s6235_s28 = smov 64   ;;  %s6236_s29 = smov 88  }
  0x18   : > { %s7736_s11 = smov (!%p277_p10, %s5189_s11), 15  ;;  %5461 = vmatprep.subr.bf16.mxu0 %v5986_v1  ;;  %5896 = vmatprep.subr.bf16.mxu1 %v5986_v1  ;;  %s6237_s9 = smov 120  }
  0x19   : > { %s5190_s14 = sshll.u32 %s7736_s11, 2  ;;  %5984 = vset.pattern.permute.xlu0 %v6234_v23  ;;  %5983 = vset.pattern.permute.xlu1 %v6234_v23  ;;  %s6433_s26 = scalar_lea.vmem %s7680_s1, %s7736_s11  ;;  %v6437_v44 = vsub.s32 0, %v445_v42 }
  0x1a   : > { %s280_s17 = scalar_lea.vmem %s7679_s0, %s5190_s14  ;;  %v422_v41 = vld [vmem:[%s6433_s26 + $0x2] sm:$0x1]  ;;  %v420_v43 = vld [vmem:[%s6433_s26] sm:$0x1]  ;;  %v424_v48 = vld [vmem:[%s6433_s26 + $0x4] sm:$0x1] }
  0x1b   : > { %5462 = vmatpush3.bf16.msra.mxu0 %v5986_v1  ;;  %v5987_v2 = vld [vmem:[%s280_s17] sm:$0xff]   ;;  %5898 = vmatpush3.bf16.msra.mxu1 %v5986_v1  ;;  %v5988_v3 = vld [vmem:[%s280_s17 + $0x8] sm:$0xff]   ;;  %v5989_v4 = vld [vmem:[%s280_s17 + $0x10] sm:$0xff]   ;;  %vm430_vm3 = vcmp.eq.f32.partialorder %v422_v41, 0.0  ;;  %vm428_vm4 = vcmp.eq.f32.partialorder %v420_v43, 0.0  ;;  %vm432_vm5 = vcmp.eq.f32.partialorder %v424_v48, 0.0 }
  0x1c   : > { %5463 = vmatprep.mubr.msk.bf16.mxu0 %vm338_vm0, %v5987_v2  ;;  %v5990_v5 = vld [vmem:[%s280_s17 + $0x18] sm:$0xff]   ;;  %5467 = vmatprep.mubr.msk.bf16.mxu1 %vm338_vm0, %v5989_v4  ;;  %v438_v45 = vsel %vm430_vm3, 1, %v6234_v23  ;;  %v436_v46 = vsel %vm428_vm4, 1, %v6234_v23  ;;  %v421_v50 = vld [vmem:[%s6433_s26 + $0x1] sm:$0x1]  ;;  %v440_v54 = vsel %vm432_vm5, 1, %v6234_v23 }
  0x1d   : > { %5483 = vmatprep.subr.bf16.mxu0 %v6231_v6  ;;  %5471 = vmatprep.subr.bf16.mxu1 %v6231_v6  ;;  %v455_v47 = vrot.slane %v438_v45, %v6437_v44  ;;  %v447_v49 = vrot.slane %v436_v46, %v6437_v44  ;;  %vm429_vm7 = vcmp.eq.f32.partialorder %v421_v50, 0.0  ;;  %v463_v1 = vrot.slane %v440_v54, %v6437_v44  ;;  %v423_v46 = vld [vmem:[%s6433_s26 + $0x3] sm:$0x1]  ;;  %s6238_s10 = smov 56   ;;  %s6239_s12 = smov 112  }
  0x1e   : > { %5464 = vmatmul.mubr.msk.bf16.vlgmr.msra.gmra.mrb[0].mxu0 %vm338_vm0, %v5988_v3  ;;  %5468 = vmatmul.mubr.msk.bf16.vlgmr.msra.gmra.mrb[0].mxu1 %vm338_vm0, %v5990_v5  ;;  %v437_v61 = vsel %vm429_vm7, 1, %v6234_v23  ;;  %vm431_vm11 = vcmp.eq.f32.partialorder %v423_v46, 0.0  ;;  %vm1003_vm7 = vcmask 1043456   ;;  %s6240_s13 = smov 80   ;;  %s6242_s19 = smov 72  }
  0x1f   : > { %5485 = vmatprep.mubr.msk.bf16.mxu0 %vm6232_vm1, %v6231_v6  ;;  %5473 = vmatprep.mubr.msk.bf16.mxu1 %vm6232_vm1, %v6231_v6  ;;  %vm6445_vm6 = vcmp.eq.s32.totalorder %v455_v47, 1  ;;  %vm6449_vm8 = vcmp.eq.s32.totalorder %v447_v49, 1  ;;  %v451_v3 = vrot.slane %v437_v61, %v6437_v44  ;;  %vm6469_vm9 = vcmp.eq.s32.totalorder %v463_v1, 1  ;;  %v425_v47 = vld [vmem:[%s6433_s26 + $0x5] sm:$0x1]  ;;  %s6243_s20 = smov 104  }
  0x20   : > { %v439_v48 = vsel %vm431_vm11, 1, %v6234_v23  ;;  %vm433_vm12 = vcmp.eq.f32.partialorder %v425_v47, 0.0  ;;  %v427_v49 = vld [vmem:[%s6433_s26 + $0x7] sm:$0x1]  ;;  %s5193_s14 = sshll.u32 %s7736_s11, 3  ;;  %s273_s11 = sand.u32 1, %s6221_s22  }
  0x21   : > { %vm6473_vm10 = vcmp.eq.s32.totalorder %v451_v3, 1  ;;  %v459_v50 = vrot.slane %v439_v48, %v6437_v44  ;;  %v441_v54 = vsel %vm433_vm12, 1, %v6234_v23  ;;  %vm435_vm13 = vcmp.eq.f32.partialorder %v427_v49, 0.0  ;;  %s7353_s17 = scalar_lea.vmem %s7681_s2, %s5193_s14  ;;  %s5091_s14 = scalar_lea.sflag [#allocation3], %s273_s11 }
  0x22   : > { %s6248_s15 = smov [#allocation2]  }
  0x23   : > { %vm6500_vm15 = vcmp.eq.s32.totalorder %v459_v50, 1  ;;  %s6171_s16 = sshll.u32 %s6248_s15, 4  ;;  %s6172_s16 = int_to_ptr.vmem [resolvable:$false] %s6171_s16 }
  0xf1   : > { %v5465_v7 = vpop.f32.mrb[0].mxu0  ;;  %v5469_v12 = vpop.f32.mrb[0].mxu1 }
  0xf2   : > { %v6355_v8 = vpack.c.bf16 %v5465_v7, %v5465_v7  ;;  %v385_v9 = vpop.f32.mrb[1].mxu0  ;;  %v401_v14 = vpop.f32.mrb[1].mxu1  ;;  %v6374_v22 = vpack.c.bf16 %v5469_v12, %v5469_v12 }
  0xf3   : > { %v6357_v10 = vpack.c.bf16 %v385_v9, %v385_v9  ;;  %v5466_v11 = vpop.f32.mrb[2].mxu0  ;;  %v5470_v15 = vpop.f32.mrb[2].mxu1  ;;  %v6369_v20 = vpack.c.bf16 %v401_v14, %v401_v14 }
  0xf4   : > { %606 = vrot.lane.b32.xlu1 %v6355_v8, %s6233_s18  ;;  %v388_v13 = vpop.f32.mrb[3].mxu0  ;;  %v6361_v16 = vpack.c.bf16 %v5466_v11, %v5466_v11  ;;  %v404_v17 = vpop.f32.mrb[3].mxu1  ;;  %v6371_v21 = vpack.c.bf16 %v5470_v15, %v5470_v15 }
  0xf5   : > { %509 = vrot.lane.b32.xlu0 %v6357_v10, %s6233_s18  ;;  %v6363_v18 = vpack.c.bf16 %v388_v13, %v388_v13  ;;  %v6366_v19 = vpack.c.bf16 %v404_v17, %v404_v17 }
  0xf8   : > { %654 = vrot.lane.b32.xlu1 %v6361_v16, %s6233_s18 }
  0xf9   : > { %558 = vrot.lane.b32.xlu0 %v6363_v18, %s6233_s18 }
  0xfc   : > { %750 = vrot.lane.b32.xlu1 %v6366_v19, %s6233_s18 }
  0xfd   : > { %702 = vrot.lane.b32.xlu0 %v6369_v20, %s6233_s18 }
 0x100   : > { %846 = vrot.lane.b32.xlu1 %v6371_v21, %s6233_s18 }
 0x101   : > { %798 = vrot.lane.b32.xlu0 %v6374_v22, %s6233_s18  ;;  %s6241_s18 = smov 48  }
 0x166   : > { %v607_v24 = vpop.permute.xlu1 %606 }
 0x167   : > { %v612_v25 = vsel %vm511_vm2, %v607_v24, 0  ;;  %v510_v26 = vpop.permute.xlu0 %509 }
 0x168   : > { %v516_v27 = vsel %vm511_vm2, %v510_v26, 0  ;;  %5484 = vmatpush3.bf16.xpose.msra.mxu0 %v612_v25 }
 0x169   : > { %5472 = vmatpush3.bf16.xpose.msra.mxu1 %v516_v27  ;;  %5495 = vmatprep.subr.bf16.mxu0 %v6231_v6 }
 0x16a   : > { %5477 = vmatprep.subr.bf16.mxu1 %v6231_v6  ;;  %v655_v33 = vpop.permute.xlu1 %654 }
 0x16b   : > { %v559_v28 = vpop.permute.xlu0 %558  ;;  %v660_v35 = vsel %vm511_vm2, %v655_v33, 0 }
 0x16c   : > { %v564_v30 = vsel %vm511_vm2, %v559_v28, 0 }
 0x16e   : > { %v751_v36 = vpop.permute.xlu1 %750 }
 0x16f   : > { %5486 = vmatmul.mubr.msk.bf16.vlgmr.msra.gmra.mrb[4].mxu0 %vm511_vm2, %v6355_v8  ;;  %v703_v29 = vpop.permute.xlu0 %702  ;;  %v756_v37 = vsel %vm511_vm2, %v751_v36, 0 }
 0x170   : > { %v708_v31 = vsel %vm511_vm2, %v703_v29, 0  ;;  %5474 = vmatmul.mubr.msk.bf16.vlgmr.msra.gmra.mrb[4].mxu1 %vm511_vm2, %v6357_v10  ;;  %5497 = vmatprep.mubr.msk.bf16.mxu0 %vm6232_vm1, %v6231_v6 }
 0x171   : > { %5478 = vmatpush3.bf16.xpose.msra.mxu1 %v564_v30  ;;  %5496 = vmatpush3.bf16.xpose.msra.mxu0 %v708_v31 }
 0x172   : > { %5479 = vmatprep.mubr.msk.bf16.mxu1 %vm6232_vm1, %v6231_v6  ;;  %5489 = vmatprep.subr.bf16.mxu1 %v6231_v6  ;;  %v847_v38 = vpop.permute.xlu1 %846 }
 0x173   : > { %v799_v32 = vpop.permute.xlu0 %798  ;;  %5507 = vmatprep.subr.bf16.mxu0 %v6231_v6  ;;  %v852_v39 = vsel %vm511_vm2, %v847_v38, 0 }
 0x174   : > { %v804_v34 = vsel %vm511_vm2, %v799_v32, 0 }
 0x178   : > { %5480 = vmatmul.mubr.msk.bf16.vlgmr.msra.gmra.mrb[8].mxu1 %vm511_vm2, %v6363_v18  ;;  %5498 = vmatmul.mubr.msk.bf16.vlgmr.msra.gmra.mrb[8].mxu0 %vm511_vm2, %v6369_v20 }
 0x179   : > { %5490 = vmatpush3.bf16.xpose.msra.mxu1 %v660_v35  ;;  %5508 = vmatpush3.bf16.xpose.msra.mxu0 %v804_v34 }
 0x17a   : > { %5491 = vmatprep.mubr.msk.bf16.mxu1 %vm6232_vm1, %v6231_v6  ;;  %5509 = vmatprep.mubr.msk.bf16.mxu0 %vm6232_vm1, %v6231_v6 }
 0x17b   : > { %5501 = vmatprep.subr.bf16.mxu1 %v6231_v6  ;;  %5519 = vmatprep.subr.bf16.mxu0 %v6231_v6 }
 0x180   : > { %5492 = vmatmul.mubr.msk.bf16.vlgmr.msra.gmra.mrb[12].mxu1 %vm511_vm2, %v6361_v16  ;;  %5510 = vmatmul.mubr.msk.bf16.vlgmr.msra.gmra.mrb[12].mxu0 %vm511_vm2, %v6374_v22 }
 0x181   : > { %5502 = vmatpush3.bf16.xpose.msra.mxu1 %v756_v37  ;;  %5503 = vmatprep.mubr.msk.bf16.mxu1 %vm6232_vm1, %v6231_v6 }
 0x182   : > { %5513 = vmatprep.subr.bf16.mxu1 %v6231_v6  ;;  %5521 = vmatprep.mubr.msk.bf16.mxu0 %vm6232_vm1, %v6231_v6 }
 0x188   : > { %5504 = vmatmul.mubr.msk.bf16.vlgmr.msra.gmra.mrb[16].mxu1 %vm511_vm2, %v6366_v19 }
 0x189   : > { %5514 = vmatpush3.bf16.xpose.msra.mxu1 %v852_v39  ;;  %5515 = vmatprep.mubr.msk.bf16.mxu1 %vm6232_vm1, %v6231_v6 }
 0x18a   : > { %5525 = vmatprep.subr.bf16.mxu1 %v6231_v6 }
 0x190   : > { %5516 = vmatmul.mubr.msk.bf16.vlgmr.msra.gmra.mrb[20].mxu1 %vm511_vm2, %v6371_v21 }
 0x191   : > { %5527 = vmatprep.mubr.msk.bf16.mxu1 %vm6232_vm1, %v6231_v6 }
 0x242   : > { %v648_v52 = vpop.f32.mrb[4].mxu0 }
 0x243   : > { %v6456_v55 = vsel %vm6445_vm6, 1e-09, %v648_v52  ;;  %v552_v56 = vpop.f32.mrb[4].mxu1  ;;  %v5487_v57 = vpop.f32.mrb[5].mxu0  ;;  %v426_v52 = vld [vmem:[%s6433_s26 + $0x6] sm:$0x1] }
 0x244   : > { %v5475_v58 = vpop.f32.mrb[5].mxu1  ;;  %v651_v59 = vpop.f32.mrb[6].mxu0  ;;  %v908_v60 = vsel %vm511_vm2, %v6456_v55, -inf  ;;  %v6463_v62 = vsel %vm6449_vm8, 1e-09, %v552_v56  ;;  %vm434_vm14 = vcmp.eq.f32.partialorder %v426_v52, 0.0  ;;  %v467_v57 = vrot.slane %v441_v54, %v6437_v44 }
 0x245   : > { %v555_v63 = vpop.f32.mrb[6].mxu1  ;;  %v5488_v0 = vpop.f32.mrb[7].mxu0  ;;  %909 = vmax.xlane.f32.xlu0 %v908_v60  ;;  %v902_v4 = vsel %vm511_vm2, %v6463_v62, -inf  ;;  %v443_v58 = vsel %vm435_vm13, 1, %v6234_v23  ;;  %v442_v59 = vsel %vm434_vm14, 1, %v6234_v23  ;;  %s6247_s26 = smov 16  }
 0x246   : > { %v5476_v2 = vpop.f32.mrb[7].mxu1  ;;  %vm6509_vm3 = vcmp.eq.s32.totalorder %v467_v57, 1  ;;  %v475_v63 = vrot.slane %v443_v58, %v6437_v44  ;;  %v471_v0 = vrot.slane %v442_v59, %v6437_v44 }
 0x248   : > { %vm6518_vm4 = vcmp.eq.s32.totalorder %v475_v63, 1  ;;  %vm6522_vm5 = vcmp.eq.s32.totalorder %v471_v0, 1 }
 0x249   : > { %903 = vmax.xlane.f32.xlu0 %v902_v4 }
 0x24b   : > { %v600_v9 = vpop.f32.mrb[8].mxu1  ;;  %v744_v11 = vpop.f32.mrb[8].mxu0 }
 0x24c   : > { %v6479_v12 = vsel %vm6469_vm9, 1e-09, %v744_v11  ;;  %v5481_v13 = vpop.f32.mrb[9].mxu1  ;;  %v5499_v14 = vpop.f32.mrb[9].mxu0  ;;  %v6485_v25 = vsel %vm6473_vm10, 1e-09, %v600_v9 }
 0x24d   : > { %v603_v15 = vpop.f32.mrb[10].mxu1  ;;  %v747_v17 = vpop.f32.mrb[10].mxu0  ;;  %v914_v24 = vsel %vm511_vm2, %v6479_v12, -inf  ;;  %v905_v28 = vsel %vm511_vm2, %v6485_v25, -inf }
 0x24e   : > { %v5482_v26 = vpop.f32.mrb[11].mxu1  ;;  %915 = vmax.xlane.f32.xlu1 %v914_v24  ;;  %v5500_v27 = vpop.f32.mrb[11].mxu0 }
 0x252   : > { %906 = vmax.xlane.f32.xlu1 %v905_v28 }
 0x253   : > { %v696_v29 = vpop.f32.mrb[12].mxu1  ;;  %v840_v30 = vpop.f32.mrb[12].mxu0 }
 0x254   : > { %v5493_v31 = vpop.f32.mrb[13].mxu1  ;;  %v5511_v32 = vpop.f32.mrb[13].mxu0  ;;  %v897_v60 = vsel %vm6500_vm15, 1e-09, %v696_v29  ;;  %v900_v44 = vsel %vm6522_vm5, 1e-09, %v840_v30 }
 0x255   : > { %v699_v33 = vpop.f32.mrb[14].mxu1  ;;  %v843_v34 = vpop.f32.mrb[14].mxu0  ;;  %v911_v1 = vsel %vm511_vm2, %v897_v60, -inf  ;;  %v920_v13 = vsel %vm511_vm2, %v900_v44, -inf }
 0x256   : > { %v5494_v35 = vpop.f32.mrb[15].mxu1  ;;  %v5512_v36 = vpop.f32.mrb[15].mxu0 }
 0x25b   : > { %v792_v37 = vpop.f32.mrb[16].mxu1 }
 0x25c   : > { %v5505_v38 = vpop.f32.mrb[17].mxu1  ;;  %v899_v2 = vsel %vm6509_vm3, 1e-09, %v792_v37 }
 0x25d   : > { %v795_v39 = vpop.f32.mrb[18].mxu1  ;;  %v917_v4 = vsel %vm511_vm2, %v899_v2, -inf }
 0x25e   : > { %v5506_v40 = vpop.f32.mrb[19].mxu1 }
 0x25f   : > { %1047 = vrot.lane.b32.xlu0 %v6363_v18, %s6235_s28 }
 0x263   : > { %v888_v41 = vpop.f32.mrb[20].mxu1  ;;  %998 = vrot.lane.b32.xlu1 %v6357_v10, %s6235_s28 }
 0x264   : > { %v5517_v42 = vpop.f32.mrb[21].mxu1  ;;  %v6529_v9 = vsel %vm6518_vm4, 1e-09, %v888_v41 }
 0x265   : > { %v891_v43 = vpop.f32.mrb[22].mxu1  ;;  %v923_v11 = vsel %vm511_vm2, %v6529_v9, -inf }
 0x266   : > { %v5518_v45 = vpop.f32.mrb[23].mxu1 }
 0x27e   : > { %912 = vmax.xlane.f32.xlu0 %v911_v1 }
 0x282   : > { %918 = vmax.xlane.f32.xlu0 %v917_v4 }
 0x286   : > { %924 = vmax.xlane.f32.xlu0 %v923_v11 }
 0x287   : > { %921 = vmax.xlane.f32.xlu1 %v920_v13 }
 0x298   : > { %1095 = vrot.lane.b32.xlu1 %v6355_v8, %s6235_s28 }
 0x29c   : > { %1191 = vrot.lane.b32.xlu0 %v6369_v20, %s6235_s28  ;;  %1143 = vrot.lane.b32.xlu1 %v6361_v16, %s6235_s28 }
 0x2a0   : > { %1239 = vrot.lane.b32.xlu1 %v6366_v19, %s6235_s28 }
 0x2d2   : > { %v910_v14 = vpop.xlane.xlu0 %909 }
 0x2d3   : > { %v928_v15 = vsub.f32 %v6456_v55, %v910_v14 }
 0x2d5   : > { %v938_v17 = vmul.f32 1.442695, %v928_v15 }
 0x2d6   : > { %v904_v24 = vpop.xlane.xlu0 %903 }
 0x2d7   : > { %5991 = vpow2.f32 %v938_v17  ;;  %v926_v26 = vsub.f32 %v6463_v62, %v904_v24 }
 0x2d9   : > { %v934_v27 = vmul.f32 1.442695, %v926_v26 }
 0x2da   : > { %v1048_v28 = vpop.permute.xlu0 %1047 }
 0x2db   : > { %5993 = vpow2.f32 %v934_v27  ;;  %v1053_v29 = vsel %vm1003_vm7, %v1048_v28, 0  ;;  %v916_v30 = vpop.xlane.xlu1 %915 }
 0x2dc   : > { %v930_v31 = vsub.f32 %v6479_v12, %v916_v30  ;;  %5526 = vmatpush3.bf16.msra.mxu1 %v1053_v29 }
 0x2dd   : > { %5537 = vmatprep.subr.bf16.mxu1 %v6231_v6 }
 0x2de   : > { %v942_v32 = vmul.f32 1.442695, %v930_v31 }
 0x2df   : > { %v907_v33 = vpop.xlane.xlu1 %906 }
 0x2e0   : > { %5995 = vpow2.f32 %v942_v32  ;;  %v927_v55 = vsub.f32 %v6485_v25, %v907_v33 }
 0x2e1   : > { %v6550_v34 = vpop.eup %5991 }
 0x2e2   : > { %v936_v62 = vmul.f32 1.442695, %v927_v55  ;;  %v956_v35 = vsel %vm511_vm2, %v6550_v34, 0.0 }
 0x2e3   : > { %v999_v36 = vpop.permute.xlu1 %998  ;;  %957 = vadd.xlane.f32.xlu1 %v956_v35 }
 0x2e4   : > { %5997 = vpow2.f32 %v936_v62  ;;  %v1005_v37 = vsel %vm1003_vm7, %v999_v36, 0 }
 0x2e5   : > { %v6555_v12 = vpop.eup %5993  ;;  %5520 = vmatpush3.bf16.msra.mxu0 %v1005_v37 }
 0x2e6   : > { %v950_v38 = vsel %vm511_vm2, %v6555_v12, 0.0  ;;  %5531 = vmatprep.subr.bf16.mxu0 %v6231_v6 }
 0x2e7   : > { %951 = vadd.xlane.f32.xlu1 %v950_v38 }
 0x2ea   : > { %v6560_v25 = vpop.eup %5995 }
 0x2eb   : > { %v962_v39 = vsel %vm511_vm2, %v6560_v25, 0.0 }
 0x2ec   : > { %963 = vadd.xlane.f32.xlu1 %v962_v39 }
 0x2ee   : > { %v6564_v40 = vpop.eup %5997 }
 0x2ef   : > { %v953_v41 = vsel %vm511_vm2, %v6564_v40, 0.0 }
 0x2f0   : > { %954 = vadd.xlane.f32.xlu0 %v953_v41 }
 0x30b   : > { %v913_v42 = vpop.xlane.xlu0 %912 }
 0x30c   : > { %v929_v43 = vsub.f32 %v897_v60, %v913_v42 }
 0x30e   : > { %v940_v45 = vmul.f32 1.442695, %v929_v43 }
 0x30f   : > { %v919_v46 = vpop.xlane.xlu0 %918 }
 0x310   : > { %5999 = vpow2.f32 %v940_v45  ;;  %v931_v47 = vsub.f32 %v899_v2, %v919_v46 }
 0x312   : > { %v944_v48 = vmul.f32 1.442695, %v931_v47 }
 0x313   : > { %v925_v0 = vpop.xlane.xlu0 %924 }
 0x314   : > { %6001 = vpow2.f32 %v944_v48  ;;  %v922_v49 = vpop.xlane.xlu1 %921  ;;  %v933_v1 = vsub.f32 %v6529_v9, %v925_v0 }
 0x315   : > { %v932_v50 = vsub.f32 %v900_v44, %v922_v49 }
 0x316   : > { %v948_v2 = vmul.f32 1.442695, %v933_v1 }
 0x317   : > { %v946_v52 = vmul.f32 1.442695, %v932_v50  ;;  %v1192_v17 = vpop.permute.xlu0 %1191 }
 0x318   : > { %v1096_v44 = vpop.permute.xlu1 %1095  ;;  %v1197_v37 = vsel %vm1003_vm7, %v1192_v17, 0 }
 0x319   : > { %6003 = vpow2.f32 %v946_v52  ;;  %v1101_v31 = vsel %vm1003_vm7, %v1096_v44, 0 }
 0x31a   : > { %v6568_v54 = vpop.eup %5999  ;;  %6005 = vpow2.f32 %v948_v2 }
 0x31b   : > { %v959_v57 = vsel %vm511_vm2, %v6568_v54, 0.0 }
 0x31c   : > { %960 = vadd.xlane.f32.xlu0 %v959_v57  ;;  %v1144_v11 = vpop.permute.xlu1 %1143 }
 0x31e   : > { %v6572_v58 = vpop.eup %6001 }
 0x31f   : > { %v965_v59 = vsel %vm511_vm2, %v6572_v58, 0.0 }
 0x320   : > { %966 = vadd.xlane.f32.xlu0 %v965_v59  ;;  %v1240_v13 = vpop.permute.xlu1 %1239 }
 0x321   : > { %v1245_v48 = vsel %vm1003_vm7, %v1240_v13, 0 }
 0x323   : > { %v6576_v60 = vpop.eup %6003 }
 0x324   : > { %v968_v63 = vsel %vm511_vm2, %v6576_v60, 0.0  ;;  %v6597_v4 = vpop.eup %6005 }
 0x325   : > { %969 = vadd.xlane.f32.xlu1 %v968_v63  ;;  %v971_v9 = vsel %vm511_vm2, %v6597_v4, 0.0 }
 0x336   : > { %1335 = vrot.lane.b32.xlu1 %v6371_v21, %s6235_s28  ;;  %1287 = vrot.lane.b32.xlu0 %v6374_v22, %s6235_s28 }
 0x33a   : > { %1439 = vrot.lane.b32.xlu1 %v6363_v18, %s6236_s29 }
 0x33e   : > { %1437 = vrot.lane.b32.xlu1 %v6363_v18, %s6237_s9 }
 0x342   : > { %1539 = vrot.lane.b32.xlu1 %v6361_v16, %s6236_s29 }
 0x346   : > { %1537 = vrot.lane.b32.xlu1 %v6361_v16, %s6237_s9 }
 0x34a   : > { %1639 = vrot.lane.b32.xlu1 %v6366_v19, %s6236_s29 }
 0x34e   : > { %1637 = vrot.lane.b32.xlu1 %v6366_v19, %s6237_s9 }
 0x352   : > { %1739 = vrot.lane.b32.xlu1 %v6371_v21, %s6236_s29 }
 0x355   : > { %972 = vadd.xlane.f32.xlu0 %v971_v9 }
 0x356   : > { %1737 = vrot.lane.b32.xlu1 %v6371_v21, %s6237_s9 }
 0x35a   : > { %1891 = vrot.lane.b32.xlu1 %v6357_v10, %s6238_s10 }
 0x36b   : > { %1389 = vrot.lane.b32.xlu0 %v6357_v10, %s6236_s29 }
 0x36f   : > { %1387 = vrot.lane.b32.xlu0 %v6357_v10, %s6237_s9 }
 0x370   : > { %v958_v14 = vpop.xlane.xlu1 %957 }
 0x373   : > { %1489 = vrot.lane.b32.xlu0 %v6355_v8, %s6236_s29 }
 0x374   : > { %v952_v15 = vpop.xlane.xlu1 %951 }
 0x375   : > { %6007 = vrcp.f32 %v952_v15 }
 0x376   : > { %6009 = vrcp.f32 %v958_v14 }
 0x377   : > { %1487 = vrot.lane.b32.xlu0 %v6355_v8, %s6237_s9 }
 0x379   : > { %v964_v26 = vpop.xlane.xlu1 %963 }
 0x37b   : > { %1589 = vrot.lane.b32.xlu0 %v6369_v20, %s6236_s29 }
 0x37d   : > { %v955_v24 = vpop.xlane.xlu0 %954 }
 0x37e   : > { %6011 = vrcp.f32 %v955_v24 }
 0x37f   : > { %v6008_v27 = vpop.eup %6007  ;;  %1587 = vrot.lane.b32.xlu0 %v6369_v20, %s6237_s9  ;;  %6013 = vrcp.f32 %v964_v26 }
 0x380   : > { %v982_v28 = vmul.f32 %v6008_v27, %v6555_v12  ;;  %v6010_v30 = vpop.eup %6009  ;;  %v1149_v12 = vsel %vm1003_vm7, %v1144_v11, 0 }
 0x381   : > { %v984_v32 = vmul.f32 %v6010_v30, %v6550_v34 }
 0x382   : > { %v990_v29 = vpack.c.bf16 %v982_v28, %v982_v28 }
 0x383   : > { %1689 = vrot.lane.b32.xlu0 %v6374_v22, %s6236_s29  ;;  %v992_v62 = vpack.c.bf16 %v984_v32, %v984_v32  ;;  %s6244_s29 = smov 40  }
 0x384   : > { %5522 = vmatmul.mubr.msk.bf16.vlgmr.msra.gmra.mrb[16].mxu0 %vm511_vm2, %v990_v29 }
 0x385   : > { %5532 = vmatpush3.bf16.msra.mxu0 %v1101_v31  ;;  %5533 = vmatprep.mubr.msk.bf16.mxu0 %vm6232_vm1, %v6231_v6 }
 0x386   : > { %5543 = vmatprep.subr.bf16.mxu0 %v6231_v6 }
 0x387   : > { %1687 = vrot.lane.b32.xlu0 %v6374_v22, %s6237_s9 }
 0x388   : > { %v6012_v33 = vpop.eup %6011 }
 0x389   : > { %v983_v55 = vmul.f32 %v6012_v33, %v6564_v40  ;;  %v6014_v35 = vpop.eup %6013 }
 0x38a   : > { %v986_v34 = vmul.f32 %v6014_v35, %v6560_v25 }
 0x38b   : > { %v991_v36 = vpack.c.bf16 %v983_v55, %v983_v55 }
 0x38c   : > { %5534 = vmatmul.mubr.msk.bf16.vlgmr.msra.gmra.mrb[20].mxu0 %vm511_vm2, %v992_v62  ;;  %v994_v38 = vpack.c.bf16 %v986_v34, %v986_v34 }
 0x38d   : > { %5544 = vmatpush3.bf16.msra.mxu0 %v1197_v37  ;;  %5528 = vmatmul.mubr.msk.bf16.vlgmr.msra.gmra.mrb[24].mxu1 %vm511_vm2, %v991_v36 }
 0x38e   : > { %5538 = vmatpush3.bf16.msra.mxu1 %v1149_v12  ;;  %5545 = vmatprep.mubr.msk.bf16.mxu0 %vm6232_vm1, %v6231_v6 }
 0x38f   : > { %5555 = vmatprep.subr.bf16.mxu0 %v6231_v6  ;;  %5539 = vmatprep.mubr.msk.bf16.mxu1 %vm6232_vm1, %v6231_v6 }
 0x390   : > { %5549 = vmatprep.subr.bf16.mxu1 %v6231_v6 }
 0x394   : > { %5546 = vmatmul.mubr.msk.bf16.vlgmr.msra.gmra.mrb[24].mxu0 %vm511_vm2, %v994_v38 }
 0x395   : > { %5557 = vmatprep.mubr.msk.bf16.mxu0 %vm6232_vm1, %v6231_v6 }
 0x3a9   : > { %v961_v39 = vpop.xlane.xlu0 %960 }
 0x3aa   : > { %6015 = vrcp.f32 %v961_v39 }
 0x3ad   : > { %v967_v40 = vpop.xlane.xlu0 %966 }
 0x3ae   : > { %6017 = vrcp.f32 %v967_v40 }
 0x3b1   : > { %v1288_v41 = vpop.permute.xlu0 %1287 }
 0x3b2   : > { %v1293_v25 = vsel %vm1003_vm7, %v1288_v41, 0  ;;  %v970_v42 = vpop.xlane.xlu1 %969 }
 0x3b3   : > { %6019 = vrcp.f32 %v970_v42  ;;  %5556 = vmatpush3.bf16.msra.mxu0 %v1293_v25 }
 0x3b4   : > { %v6016_v43 = vpop.eup %6015  ;;  %5567 = vmatprep.subr.bf16.mxu0 %v6231_v6 }
 0x3b5   : > { %v985_v45 = vmul.f32 %v6016_v43, %v6568_v54 }
 0x3b6   : > { %v1336_v52 = vpop.permute.xlu1 %1335 }
 0x3b7   : > { %v993_v46 = vpack.c.bf16 %v985_v45, %v985_v45  ;;  %v1341_v63 = vsel %vm1003_vm7, %v1336_v52, 0 }
 0x3b8   : > { %v6018_v47 = vpop.eup %6017 }
 0x3b9   : > { %5540 = vmatmul.mubr.msk.bf16.vlgmr.msra.gmra.mrb[28].mxu1 %vm511_vm2, %v993_v46  ;;  %v987_v49 = vmul.f32 %v6018_v47, %v6572_v58 }
 0x3ba   : > { %5550 = vmatpush3.bf16.msra.mxu1 %v1245_v48  ;;  %5551 = vmatprep.mubr.msk.bf16.mxu1 %vm6232_vm1, %v6231_v6  ;;  %v1440_v58 = vpop.permute.xlu1 %1439 }
 0x3bb   : > { %5561 = vmatprep.subr.bf16.mxu1 %v6231_v6  ;;  %v995_v59 = vpack.c.bf16 %v987_v49, %v987_v49  ;;  %v1445_v27 = vsel %vm511_vm2, %v1440_v58, 0 }
 0x3bd   : > { %v6020_v50 = vpop.eup %6019 }
 0x3be   : > { %v988_v57 = vmul.f32 %v6020_v50, %v6576_v60  ;;  %v1438_v0 = vpop.permute.xlu1 %1437 }
 0x3c0   : > { %v996_v54 = vpack.c.bf16 %v988_v57, %v988_v57 }
 0x3c1   : > { %5552 = vmatmul.mubr.msk.bf16.vlgmr.msra.gmra.mrb[32].mxu1 %vm511_vm2, %v995_v59 }
 0x3c2   : > { %5562 = vmatpush3.bf16.msra.mxu1 %v1341_v63  ;;  %5558 = vmatmul.mubr.msk.bf16.vlgmr.msra.gmra.mrb[28].mxu0 %vm511_vm2, %v996_v54  ;;  %v1540_v60 = vpop.permute.xlu1 %1539 }
 0x3c3   : > { %5569 = vmatprep.mubr.msk.bf16.mxu0 %vm6232_vm1, %v6231_v6  ;;  %5563 = vmatprep.mubr.msk.bf16.mxu1 %vm6232_vm1, %v6231_v6  ;;  %v1545_v32 = vsel %vm511_vm2, %v1540_v60, 0 }
 0x3c4   : > { %5573 = vmatprep.subr.bf16.mxu1 %v6231_v6 }
 0x3c6   : > { %v1538_v2 = vpop.permute.xlu1 %1537 }
 0x3ca   : > { %v1640_v13 = vpop.permute.xlu1 %1639 }
 0x3cb   : > { %v1645_v36 = vsel %vm511_vm2, %v1640_v13, 0 }
 0x3ce   : > { %v1638_v28 = vpop.permute.xlu1 %1637 }
 0x3d2   : > { %v1740_v31 = vpop.permute.xlu1 %1739 }
 0x3d3   : > { %v1745_v38 = vsel %vm511_vm2, %v1740_v31, 0 }
 0x3d6   : > { %v1738_v55 = vpop.permute.xlu1 %1737 }
 0x3da   : > { %v1892_v37 = vpop.permute.xlu1 %1891 }
 0x3db   : > { %v1897_v34 = vsel %vm1003_vm7, %v1892_v37, 0 }
 0x3e2   : > { %v973_v1 = vpop.xlane.xlu0 %972 }
 0x3e3   : > { %6021 = vrcp.f32 %v973_v1 }
 0x3e6   : > { %v1390_v9 = vpop.permute.xlu0 %1389 }
 0x3e7   : > { %v1395_v44 = vsel %vm511_vm2, %v1390_v9, 0 }
 0x3e8   : > { %5568 = vmatpush3.bf16.xpose.msra.mxu0 %v1395_v44 }
 0x3e9   : > { %5579 = vmatprep.subr.bf16.mxu0 %v6231_v6 }
 0x3ea   : > { %v1388_v11 = vpop.permute.xlu0 %1387 }
 0x3ed   : > { %v6022_v14 = vpop.eup %6021 }
 0x3ee   : > { %v1490_v15 = vpop.permute.xlu0 %1489  ;;  %v989_v17 = vmul.f32 %v6022_v14, %v6597_v4 }
 0x3ef   : > { %v1495_v24 = vsel %vm511_vm2, %v1490_v15, 0  ;;  %5570 = vmatmul.mubr.msk.bf16.vlgmr.msra.gmra.mrb[32].mxu0 %vm511_vm2, %v1388_v11 }
 0x3f0   : > { %5580 = vmatpush3.bf16.xpose.msra.mxu0 %v1495_v24  ;;  %v997_v26 = vpack.c.bf16 %v989_v17, %v989_v17  ;;  %5581 = vmatprep.mubr.msk.bf16.mxu0 %vm6232_vm1, %v6231_v6 }
 0x3f1   : > { %5591 = vmatprep.subr.bf16.mxu0 %v6231_v6 }
 0x3f2   : > { %5564 = vmatmul.mubr.msk.bf16.vlgmr.msra.gmra.mrb[36].mxu1 %vm511_vm2, %v997_v26  ;;  %v1488_v29 = vpop.permute.xlu0 %1487 }
 0x3f3   : > { %5574 = vmatpush3.bf16.xpose.msra.mxu1 %v1445_v27  ;;  %5575 = vmatprep.mubr.msk.bf16.mxu1 %vm6232_vm1, %v6231_v6 }
 0x3f4   : > { %5585 = vmatprep.subr.bf16.mxu1 %v6231_v6 }
 0x3f6   : > { %v1590_v4 = vpop.permute.xlu0 %1589 }
 0x3f7   : > { %v1595_v30 = vsel %vm511_vm2, %v1590_v4, 0  ;;  %5582 = vmatmul.mubr.msk.bf16.vlgmr.msra.gmra.mrb[36].mxu0 %vm511_vm2, %v1488_v29 }
 0x3f8   : > { %5592 = vmatpush3.bf16.xpose.msra.mxu0 %v1595_v30  ;;  %5593 = vmatprep.mubr.msk.bf16.mxu0 %vm6232_vm1, %v6231_v6 }
 0x3f9   : > { %5603 = vmatprep.subr.bf16.mxu0 %v6231_v6 }
 0x3fa   : > { %5576 = vmatmul.mubr.msk.bf16.vlgmr.msra.gmra.mrb[40].mxu1 %vm511_vm2, %v1438_v0  ;;  %v1588_v33 = vpop.permute.xlu0 %1587 }
 0x3fb   : > { %5586 = vmatpush3.bf16.xpose.msra.mxu1 %v1545_v32  ;;  %5587 = vmatprep.mubr.msk.bf16.mxu1 %vm6232_vm1, %v6231_v6 }
 0x3fc   : > { %5597 = vmatprep.subr.bf16.mxu1 %v6231_v6 }
 0x3fe   : > { %v1690_v62 = vpop.permute.xlu0 %1689 }
 0x3ff   : > { %v1695_v35 = vsel %vm511_vm2, %v1690_v62, 0  ;;  %5594 = vmatmul.mubr.msk.bf16.vlgmr.msra.gmra.mrb[40].mxu0 %vm511_vm2, %v1588_v33 }
 0x400   : > { %5604 = vmatpush3.bf16.xpose.msra.mxu0 %v1695_v35  ;;  %5605 = vmatprep.mubr.msk.bf16.mxu0 %vm6232_vm1, %v6231_v6 }
 0x401   : > { %5615 = vmatprep.subr.bf16.mxu0 %v6231_v6 }
 0x402   : > { %5588 = vmatmul.mubr.msk.bf16.vlgmr.msra.gmra.mrb[44].mxu1 %vm511_vm2, %v1538_v2  ;;  %v1688_v12 = vpop.permute.xlu0 %1687 }
 0x403   : > { %5598 = vmatpush3.bf16.xpose.msra.mxu1 %v1645_v36  ;;  %5599 = vmatprep.mubr.msk.bf16.mxu1 %vm6232_vm1, %v6231_v6 }
 0x404   : > { %5609 = vmatprep.subr.bf16.mxu1 %v6231_v6 }
 0x407   : > { %5606 = vmatmul.mubr.msk.bf16.vlgmr.msra.gmra.mrb[44].mxu0 %vm511_vm2, %v1688_v12 }
 0x408   : > { %5616 = vmatpush3.bf16.msra.mxu0 %v1897_v34  ;;  %5617 = vmatprep.mubr.msk.bf16.mxu0 %vm6232_vm1, %v6231_v6 }
 0x409   : > { %5627 = vmatprep.subr.bf16.mxu0 %v6231_v6 }
 0x40a   : > { %5600 = vmatmul.mubr.msk.bf16.vlgmr.msra.gmra.mrb[48].mxu1 %vm511_vm2, %v1638_v28 }
 0x40b   : > { %5610 = vmatpush3.bf16.xpose.msra.mxu1 %v1745_v38  ;;  %5611 = vmatprep.mubr.msk.bf16.mxu1 %vm6232_vm1, %v6231_v6 }
 0x40c   : > { %5621 = vmatprep.subr.bf16.mxu1 %v6231_v6 }
 0x412   : > { %5612 = vmatmul.mubr.msk.bf16.vlgmr.msra.gmra.mrb[52].mxu1 %vm511_vm2, %v1738_v55 }
 0x413   : > { %5623 = vmatprep.mubr.msk.bf16.mxu1 %vm6232_vm1, %v6231_v6 }
 0x457   : > { %v6709_v39 = vpop.f32.mrb[16].mxu0 }
 0x458   : > { %v5523_v40 = vpop.f32.mrb[17].mxu0 }
 0x459   : > { %v1044_v41 = vpop.f32.mrb[18].mxu0 }
 0x45a   : > { %v5524_v25 = vpop.f32.mrb[19].mxu0 }
 0x45f   : > { %v6711_v42 = vpop.f32.mrb[20].mxu0 }
 0x460   : > { %v6713_v43 = vpop.f32.mrb[24].mxu1  ;;  %v5535_v45 = vpop.f32.mrb[21].mxu0 }
 0x461   : > { %v1383_v46 = vpack.c.bf16 %v6713_v43, %v6709_v39  ;;  %v5529_v47 = vpop.f32.mrb[25].mxu1  ;;  %v1140_v48 = vpop.f32.mrb[22].mxu0 }
 0x462   : > { %v1092_v49 = vpop.f32.mrb[26].mxu1  ;;  %v5536_v50 = vpop.f32.mrb[23].mxu0 }
 0x463   : > { %v5530_v52 = vpop.f32.mrb[27].mxu1 }
 0x467   : > { %v6717_v57 = vpop.f32.mrb[24].mxu0 }
 0x468   : > { %v5547_v59 = vpop.f32.mrb[25].mxu0 }
 0x469   : > { %v1236_v54 = vpop.f32.mrb[26].mxu0 }
 0x46a   : > { %v5548_v63 = vpop.f32.mrb[27].mxu0 }
 0x48c   : > { %v6719_v58 = vpop.f32.mrb[28].mxu1 }
 0x48d   : > { %v1384_v0 = vpack.c.bf16 %v6719_v58, %v6711_v42  ;;  %v5541_v60 = vpop.f32.mrb[29].mxu1 }
 0x48e   : > { %v1188_v1 = vpop.f32.mrb[30].mxu1 }
 0x48f   : > { %v5542_v2 = vpop.f32.mrb[31].mxu1 }
 0x494   : > { %v6723_v9 = vpop.f32.mrb[32].mxu1 }
 0x495   : > { %7713 = vst [vmem:[#allocation5_spill] sm:$0xff] %v6723_v9  ;;  %v1385_v44 = vpack.c.bf16 %v6723_v9, %v6717_v57  ;;  %v5553_v11 = vpop.f32.mrb[33].mxu1  ;;  %v6727_v13 = vpop.f32.mrb[28].mxu0 }
 0x496   : > { %v1284_v14 = vpop.f32.mrb[34].mxu1  ;;  %v5559_v15 = vpop.f32.mrb[29].mxu0 }
 0x497   : > { %v5554_v17 = vpop.f32.mrb[35].mxu1  ;;  %v1332_v24 = vpop.f32.mrb[30].mxu0 }
 0x498   : > { %v5560_v26 = vpop.f32.mrb[31].mxu0 }
 0x4c2   : > { %v1431_v27 = vpop.f32.mrb[32].mxu0 }
 0x4c3   : > { %v6731_v28 = vsel %vm6449_vm8, 1e-09, %v1431_v27  ;;  %v5571_v29 = vpop.f32.mrb[33].mxu0 }
 0x4c4   : > { %v1434_v4 = vpop.f32.mrb[34].mxu0  ;;  %v1795_v30 = vsel %vm511_vm2, %v6731_v28, -inf }
 0x4c5   : > { %v6735_v31 = vpop.f32.mrb[36].mxu1  ;;  %1796 = vmax.xlane.f32.xlu0 %v1795_v30  ;;  %v5572_v32 = vpop.f32.mrb[35].mxu0 }
 0x4c6   : > { %7714 = vst [vmem:[#allocation6_spill] sm:$0xff] %v6735_v31  ;;  %v1386_v33 = vpack.c.bf16 %v6735_v31, %v6727_v13  ;;  %v5565_v55 = vpop.f32.mrb[37].mxu1 }
 0x4c7   : > { %v1380_v62 = vpop.f32.mrb[38].mxu1 }
 0x4c8   : > { %v5566_v35 = vpop.f32.mrb[39].mxu1 }
 0x4ca   : > { %v1531_v36 = vpop.f32.mrb[36].mxu0 }
 0x4cb   : > { %v1789_v37 = vsel %vm6445_vm6, 1e-09, %v1531_v36  ;;  %v5583_v12 = vpop.f32.mrb[37].mxu0 }
 0x4cc   : > { %v1534_v34 = vpop.f32.mrb[38].mxu0  ;;  %v1801_v38 = vsel %vm511_vm2, %v1789_v37, -inf }
 0x4cd   : > { %v1481_v40 = vpop.f32.mrb[40].mxu1  ;;  %1802 = vmax.xlane.f32.xlu0 %v1801_v38  ;;  %v5584_v41 = vpop.f32.mrb[39].mxu0 }
 0x4ce   : > { %v1788_v25 = vsel %vm6473_vm10, 1e-09, %v1481_v40  ;;  %v5577_v45 = vpop.f32.mrb[41].mxu1 }
 0x4cf   : > { %v1484_v47 = vpop.f32.mrb[42].mxu1  ;;  %v1798_v48 = vsel %vm511_vm2, %v1788_v25, -inf }
 0x4d0   : > { %1799 = vmax.xlane.f32.xlu1 %v1798_v48  ;;  %v5578_v49 = vpop.f32.mrb[43].mxu1 }
 0x4d2   : > { %v1631_v50 = vpop.f32.mrb[40].mxu0 }
 0x4d3   : > { %v6747_v52 = vsel %vm6469_vm9, 1e-09, %v1631_v50  ;;  %v5595_v59 = vpop.f32.mrb[41].mxu0 }
 0x4d4   : > { %v1634_v54 = vpop.f32.mrb[42].mxu0  ;;  %v1807_v63 = vsel %vm511_vm2, %v6747_v52, -inf }
 0x4d5   : > { %v1581_v60 = vpop.f32.mrb[44].mxu1  ;;  %1808 = vmax.xlane.f32.xlu1 %v1807_v63  ;;  %v5596_v1 = vpop.f32.mrb[43].mxu0 }
 0x4d6   : > { %v1790_v2 = vsel %vm6500_vm15, 1e-09, %v1581_v60  ;;  %v5589_v11 = vpop.f32.mrb[45].mxu1 }
 0x4d7   : > { %v1584_v14 = vpop.f32.mrb[46].mxu1  ;;  %v1804_v15 = vsel %vm511_vm2, %v1790_v2, -inf }
 0x4d8   : > { %v5590_v17 = vpop.f32.mrb[47].mxu1  ;;  %1805 = vmax.xlane.f32.xlu0 %v1804_v15 }
 0x4da   : > { %v1731_v24 = vpop.f32.mrb[44].mxu0 }
 0x4db   : > { %v6756_v26 = vsel %vm6522_vm5, 1e-09, %v1731_v24  ;;  %v5607_v27 = vpop.f32.mrb[45].mxu0 }
 0x4dc   : > { %v1734_v29 = vpop.f32.mrb[46].mxu0  ;;  %v1813_v4 = vsel %vm511_vm2, %v6756_v26, -inf }
 0x4dd   : > { %v1681_v30 = vpop.f32.mrb[48].mxu1  ;;  %1814 = vmax.xlane.f32.xlu1 %v1813_v4  ;;  %v5608_v32 = vpop.f32.mrb[47].mxu0 }
 0x4de   : > { %v1792_v55 = vsel %vm6509_vm3, 1e-09, %v1681_v30  ;;  %v5601_v62 = vpop.f32.mrb[49].mxu1 }
 0x4df   : > { %v1684_v35 = vpop.f32.mrb[50].mxu1  ;;  %v1810_v36 = vsel %vm511_vm2, %v1792_v55, -inf }
 0x4e0   : > { %v5602_v12 = vpop.f32.mrb[51].mxu1  ;;  %1811 = vmax.xlane.f32.xlu0 %v1810_v36 }
 0x4e5   : > { %v1781_v34 = vpop.f32.mrb[52].mxu1 }
 0x4e6   : > { %v1794_v38 = vsel %vm6518_vm4, 1e-09, %v1781_v34  ;;  %v5613_v40 = vpop.f32.mrb[53].mxu1 }
 0x4e7   : > { %v1784_v41 = vpop.f32.mrb[54].mxu1  ;;  %v1816_v45 = vsel %vm511_vm2, %v1794_v38, -inf }
 0x4e8   : > { %v5614_v47 = vpop.f32.mrb[55].mxu1  ;;  %1817 = vmax.xlane.f32.xlu0 %v1816_v45 }
 0x4ee   : > { %1987 = vrot.lane.b32.xlu1 %v6355_v8, %s6238_s10 }
 0x4f2   : > { %2035 = vrot.lane.b32.xlu1 %v6361_v16, %s6238_s10 }
 0x4fe   : > { %1939 = vrot.lane.b32.xlu0 %v6363_v18, %s6238_s10 }
 0x552   : > { %v1797_v48 = vpop.xlane.xlu0 %1796 }
 0x553   : > { %v1819_v49 = vsub.f32 %v6731_v28, %v1797_v48 }
 0x555   : > { %v1827_v50 = vmul.f32 1.442695, %v1819_v49 }
 0x557   : > { %6023 = vpow2.f32 %v1827_v50 }
 0x55a   : > { %v1803_v59 = vpop.xlane.xlu0 %1802 }
 0x55b   : > { %v1821_v54 = vsub.f32 %v1789_v37, %v1803_v59 }
 0x55d   : > { %v1831_v63 = vmul.f32 1.442695, %v1821_v54  ;;  %v1800_v60 = vpop.xlane.xlu1 %1799 }
 0x55e   : > { %v1820_v1 = vsub.f32 %v1788_v25, %v1800_v60 }
 0x55f   : > { %6025 = vpow2.f32 %v1831_v63 }
 0x560   : > { %v1829_v11 = vmul.f32 1.442695, %v1820_v1 }
 0x561   : > { %v6773_v14 = vpop.eup %6023 }
 0x562   : > { %6027 = vpow2.f32 %v1829_v11  ;;  %v1843_v15 = vsel %vm511_vm2, %v6773_v14, 0.0  ;;  %v1809_v36 = vpop.xlane.xlu1 %1808 }
 0x563   : > { %1844 = vadd.xlane.f32.xlu1 %v1843_v15  ;;  %v1823_v12 = vsub.f32 %v6747_v52, %v1809_v36 }
 0x565   : > { %v1806_v17 = vpop.xlane.xlu0 %1805  ;;  %v1835_v40 = vmul.f32 1.442695, %v1823_v12 }
 0x566   : > { %v1822_v24 = vsub.f32 %v1790_v2, %v1806_v17 }
 0x568   : > { %v1833_v27 = vmul.f32 1.442695, %v1822_v24 }
 0x569   : > { %v6777_v28 = vpop.eup %6025 }
 0x56a   : > { %6029 = vpow2.f32 %v1833_v27  ;;  %v1849_v37 = vsel %vm511_vm2, %v6777_v28, 0.0  ;;  %v1815_v34 = vpop.xlane.xlu1 %1814 }
 0x56b   : > { %1850 = vadd.xlane.f32.xlu1 %v1849_v37  ;;  %v1825_v41 = vsub.f32 %v6756_v26, %v1815_v34  ;;  %6031 = vpow2.f32 %v1835_v40 }
 0x56c   : > { %v6781_v25 = vpop.eup %6027 }
 0x56d   : > { %v1846_v29 = vsel %vm511_vm2, %v6781_v25, 0.0  ;;  %v1812_v4 = vpop.xlane.xlu0 %1811  ;;  %v1839_v45 = vmul.f32 1.442695, %v1825_v41 }
 0x56e   : > { %1847 = vadd.xlane.f32.xlu0 %v1846_v29  ;;  %v1824_v47 = vsub.f32 %v1792_v55, %v1812_v4  ;;  %v1988_v1 = vpop.permute.xlu1 %1987 }
 0x56f   : > { %6033 = vpow2.f32 %v1839_v45  ;;  %v1993_v4 = vsel %vm1003_vm7, %v1988_v1, 0 }
 0x570   : > { %v1837_v48 = vmul.f32 1.442695, %v1824_v47 }
 0x572   : > { %6035 = vpow2.f32 %v1837_v48  ;;  %v2036_v11 = vpop.permute.xlu1 %2035 }
 0x573   : > { %v2041_v41 = vsel %vm1003_vm7, %v2036_v11, 0 }
 0x574   : > { %v6785_v30 = vpop.eup %6029 }
 0x575   : > { %v1818_v32 = vpop.xlane.xlu0 %1817  ;;  %v1852_v2 = vsel %vm511_vm2, %v6785_v30, 0.0  ;;  %v6797_v50 = vpop.eup %6031 }
 0x576   : > { %1853 = vadd.xlane.f32.xlu0 %v1852_v2  ;;  %v1826_v49 = vsub.f32 %v1794_v38, %v1818_v32  ;;  %v1855_v52 = vsel %vm511_vm2, %v6797_v50, 0.0 }
 0x578   : > { %v1841_v59 = vmul.f32 1.442695, %v1826_v49 }
 0x579   : > { %v1940_v62 = vpop.permute.xlu0 %1939  ;;  %v6801_v54 = vpop.eup %6033 }
 0x57a   : > { %v1945_v35 = vsel %vm1003_vm7, %v1940_v62, 0  ;;  %6037 = vpow2.f32 %v1841_v59  ;;  %v1861_v26 = vsel %vm511_vm2, %v6801_v54, 0.0 }
 0x57b   : > { %5622 = vmatpush3.bf16.msra.mxu1 %v1945_v35 }
 0x57c   : > { %2131 = vrot.lane.b32.xlu1 %v6366_v19, %s6238_s10  ;;  %5633 = vmatprep.subr.bf16.mxu1 %v6231_v6  ;;  %v6805_v63 = vpop.eup %6035 }
 0x57d   : > { %v1858_v55 = vsel %vm511_vm2, %v6805_v63, 0.0 }
 0x584   : > { %v6809_v38 = vpop.eup %6037 }
 0x585   : > { %v1864_v60 = vsel %vm511_vm2, %v6809_v38, 0.0 }
 0x58c   : > { %2083 = vrot.lane.b32.xlu0 %v6369_v20, %s6238_s10 }
 0x5a0   : > { %1856 = vadd.xlane.f32.xlu1 %v1855_v52 }
 0x5a4   : > { %1862 = vadd.xlane.f32.xlu1 %v1861_v26 }
 0x5ab   : > { %1859 = vadd.xlane.f32.xlu0 %v1858_v55 }
 0x5af   : > { %1865 = vadd.xlane.f32.xlu0 %v1864_v60 }
 0x5b5   : > { %2227 = vrot.lane.b32.xlu1 %v6371_v21, %s6238_s10 }
 0x5b9   : > { %2439 = vrot.lane.b32.xlu1 %v6357_v10, %s6239_s12 }
 0x5bd   : > { %2489 = vrot.lane.b32.xlu1 %v6363_v18, %s6239_s12 }
 0x5c1   : > { %2539 = vrot.lane.b32.xlu1 %v6355_v8, %s6239_s12 }
 0x5c5   : > { %2589 = vrot.lane.b32.xlu1 %v6361_v16, %s6239_s12  ;;  %2179 = vrot.lane.b32.xlu0 %v6374_v22, %s6238_s10 }
 0x5c9   : > { %2691 = vrot.lane.b32.xlu1 %v6366_v19, %s6240_s13  ;;  %2441 = vrot.lane.b32.xlu0 %v6357_v10, %s6240_s13 }
 0x5cd   : > { %2689 = vrot.lane.b32.xlu1 %v6366_v19, %s6239_s12  ;;  %2491 = vrot.lane.b32.xlu0 %v6363_v18, %s6240_s13 }
 0x5d1   : > { %2791 = vrot.lane.b32.xlu1 %v6371_v21, %s6240_s13  ;;  %2541 = vrot.lane.b32.xlu0 %v6355_v8, %s6240_s13 }
 0x5d5   : > { %2789 = vrot.lane.b32.xlu1 %v6371_v21, %s6239_s12  ;;  %2591 = vrot.lane.b32.xlu0 %v6361_v16, %s6240_s13 }
 0x5d9   : > { %2641 = vrot.lane.b32.xlu0 %v6369_v20, %s6240_s13 }
 0x5dd   : > { %2639 = vrot.lane.b32.xlu0 %v6369_v20, %s6239_s12 }
 0x5e1   : > { %2741 = vrot.lane.b32.xlu0 %v6374_v22, %s6240_s13 }
 0x5e5   : > { %2739 = vrot.lane.b32.xlu0 %v6374_v22, %s6239_s12 }
 0x5f0   : > { %v1845_v15 = vpop.xlane.xlu1 %1844 }
 0x5f1   : > { %6039 = vrcp.f32 %v1845_v15 }
 0x5f8   : > { %v1851_v17 = vpop.xlane.xlu1 %1850 }
 0x5f9   : > { %6041 = vrcp.f32 %v1851_v17 }
 0x5fb   : > { %v6040_v24 = vpop.eup %6039  ;;  %v1848_v27 = vpop.xlane.xlu0 %1847 }
 0x5fc   : > { %6043 = vrcp.f32 %v1848_v27  ;;  %v1875_v37 = vmul.f32 %v6040_v24, %v6773_v14  ;;  %v2132_v45 = vpop.permute.xlu1 %2131 }
 0x5fd   : > { %v2137_v48 = vsel %vm1003_vm7, %v2132_v45, 0 }
 0x5fe   : > { %v1883_v29 = vpack.c.bf16 %v1875_v37, %v1875_v37 }
 0x600   : > { %5618 = vmatmul.mubr.msk.bf16.vlgmr.msra.gmra.mrb[48].mxu0 %vm511_vm2, %v1883_v29 }
 0x601   : > { %5628 = vmatpush3.bf16.msra.mxu0 %v1993_v4  ;;  %5629 = vmatprep.mubr.msk.bf16.mxu0 %vm6232_vm1, %v6231_v6 }
 0x602   : > { %5639 = vmatprep.subr.bf16.mxu0 %v6231_v6 }
 0x603   : > { %v6042_v32 = vpop.eup %6041  ;;  %v1854_v2 = vpop.xlane.xlu0 %1853 }
 0x604   : > { %6045 = vrcp.f32 %v1854_v2  ;;  %v1877_v62 = vmul.f32 %v6042_v32, %v6777_v28 }
 0x606   : > { %v6044_v35 = vpop.eup %6043  ;;  %v1885_v36 = vpack.c.bf16 %v1877_v62, %v1877_v62 }
 0x607   : > { %v2084_v12 = vpop.permute.xlu0 %2083  ;;  %v1876_v14 = vmul.f32 %v6044_v35, %v6781_v25 }
 0x608   : > { %v2089_v34 = vsel %vm1003_vm7, %v2084_v12, 0  ;;  %5630 = vmatmul.mubr.msk.bf16.vlgmr.msra.gmra.mrb[52].mxu0 %vm511_vm2, %v1885_v36 }
 0x609   : > { %5640 = vmatpush3.bf16.msra.mxu0 %v2089_v34  ;;  %v1884_v40 = vpack.c.bf16 %v1876_v14, %v1876_v14  ;;  %5641 = vmatprep.mubr.msk.bf16.mxu0 %vm6232_vm1, %v6231_v6 }
 0x60a   : > { %5651 = vmatprep.subr.bf16.mxu0 %v6231_v6 }
 0x60b   : > { %5624 = vmatmul.mubr.msk.bf16.vlgmr.msra.gmra.mrb[56].mxu1 %vm511_vm2, %v1884_v40 }
 0x60c   : > { %5634 = vmatpush3.bf16.msra.mxu1 %v2041_v41  ;;  %5635 = vmatprep.mubr.msk.bf16.mxu1 %vm6232_vm1, %v6231_v6  ;;  %v485_v41 = vld [vmem:[%s7683_s4 + $0x4] sm:$0xf] }
 0x60d   : > { %5645 = vmatprep.subr.bf16.mxu1 %v6231_v6  ;;  %v2292_v45 = vsel %vm1003_vm7, %v485_v41, 0 }
 0x60e   : > { %v6046_v28 = vpop.eup %6045 }
 0x60f   : > { %v1878_v25 = vmul.f32 %v6046_v28, %v6785_v30 }
 0x611   : > { %v1886_v47 = vpack.c.bf16 %v1878_v25, %v1878_v25 }
 0x613   : > { %5636 = vmatmul.mubr.msk.bf16.vlgmr.msra.gmra.mrb[60].mxu1 %vm511_vm2, %v1886_v47 }
 0x614   : > { %5646 = vmatpush3.bf16.msra.mxu1 %v2137_v48  ;;  %5647 = vmatprep.mubr.msk.bf16.mxu1 %vm6232_vm1, %v6231_v6 }
 0x615   : > { %5657 = vmatprep.subr.bf16.mxu1 %v6231_v6 }
 0x62d   : > { %v1857_v49 = vpop.xlane.xlu1 %1856 }
 0x62e   : > { %6047 = vrcp.f32 %v1857_v49 }
 0x631   : > { %v1863_v59 = vpop.xlane.xlu1 %1862 }
 0x632   : > { %6049 = vrcp.f32 %v1863_v59 }
 0x638   : > { %v6048_v52 = vpop.eup %6047  ;;  %v1860_v26 = vpop.xlane.xlu0 %1859 }
 0x639   : > { %6051 = vrcp.f32 %v1860_v26  ;;  %v1879_v30 = vmul.f32 %v6048_v52, %v6797_v50  ;;  %v2228_v50 = vpop.permute.xlu1 %2227 }
 0x63a   : > { %v2233_v32 = vsel %vm1003_vm7, %v2228_v50, 0 }
 0x63b   : > { %v1887_v55 = vpack.c.bf16 %v1879_v30, %v1879_v30 }
 0x63c   : > { %v6050_v60 = vpop.eup %6049  ;;  %v1866_v1 = vpop.xlane.xlu0 %1865 }
 0x63d   : > { %6053 = vrcp.f32 %v1866_v1  ;;  %5642 = vmatmul.mubr.msk.bf16.vlgmr.msra.gmra.mrb[56].mxu0 %vm511_vm2, %v1887_v55  ;;  %v1881_v11 = vmul.f32 %v6050_v60, %v6801_v54  ;;  %v2440_v35 = vpop.permute.xlu1 %2439  ;;  %v484_v55 = vld [vmem:[%s7683_s4] sm:$0xf] }
 0x63e   : > { %5653 = vmatprep.mubr.msk.bf16.mxu0 %vm6232_vm1, %v6231_v6 }
 0x63f   : > { %v1889_v27 = vpack.c.bf16 %v1881_v11, %v1881_v11 }
 0x640   : > { %v2180_v15 = vpop.permute.xlu0 %2179 }
 0x641   : > { %v2185_v17 = vsel %vm1003_vm7, %v2180_v15, 0  ;;  %v2490_v12 = vpop.permute.xlu1 %2489 }
 0x642   : > { %5652 = vmatpush3.bf16.msra.mxu0 %v2185_v17 }
 0x643   : > { %v6052_v24 = vpop.eup %6051  ;;  %5923 = vmatprep.subr.msk.bf16.mxu0 %vm1003_vm7, %v485_v41 }
 0x644   : > { %v1880_v37 = vmul.f32 %v6052_v24, %v6805_v63  ;;  %v2442_v2 = vpop.permute.xlu0 %2441 }
 0x645   : > { %5654 = vmatmul.mubr.msk.bf16.vlgmr.msra.gmra.mrb[60].mxu0 %vm511_vm2, %v1889_v27  ;;  %v2447_v63 = vsel %vm511_vm2, %v2442_v2, 0 }
 0x646   : > { %v1888_v29 = vpack.c.bf16 %v1880_v37, %v1880_v37  ;;  %5664 = vmatpush3.bf16.msra.mxu0 %v2292_v45 }
 0x647   : > { %v6054_v4 = vpop.eup %6053  ;;  %5924 = vmatprep.subr.msk.bf16.mxu0 %vm1003_vm7, %v484_v55 }
 0x648   : > { %5648 = vmatmul.mubr.msk.bf16.vlgmr.msra.gmra.mrb[64].mxu1 %vm511_vm2, %v1888_v29  ;;  %v1882_v54 = vmul.f32 %v6054_v4, %v6809_v38  ;;  %v2492_v36 = vpop.permute.xlu0 %2491  ;;  %v2540_v38 = vpop.permute.xlu1 %2539 }
 0x649   : > { %5658 = vmatpush3.bf16.msra.mxu1 %v2233_v32  ;;  %5659 = vmatprep.mubr.msk.bf16.mxu1 %vm6232_vm1, %v6231_v6  ;;  %v2497_v14 = vsel %vm511_vm2, %v2492_v36, 0 }
 0x64a   : > { %5683 = vmatprep.subr.bf16.mxu1 %v6231_v6  ;;  %v1890_v62 = vpack.c.bf16 %v1882_v54, %v1882_v54 }
 0x64c   : > { %v2542_v34 = vpop.permute.xlu0 %2541  ;;  %v2590_v28 = vpop.permute.xlu1 %2589 }
 0x64d   : > { %v2547_v40 = vsel %vm511_vm2, %v2542_v34, 0 }
 0x650   : > { %5660 = vmatmul.mubr.msk.bf16.vlgmr.msra.gmra.mrb[68].mxu1 %vm511_vm2, %v1890_v62  ;;  %v2592_v25 = vpop.permute.xlu0 %2591  ;;  %v2692_v48 = vpop.permute.xlu1 %2691 }
 0x651   : > { %5685 = vmatprep.mubr.msk.bf16.mxu1 %vm6232_vm1, %v6231_v6  ;;  %v2597_v47 = vsel %vm511_vm2, %v2592_v25, 0  ;;  %v2697_v59 = vsel %vm511_vm2, %v2692_v48, 0 }
 0x652   : > { %5684 = vmatpush3.bf16.xpose.msra.mxu1 %v2447_v63 }
 0x653   : > { %5689 = vmatprep.subr.bf16.mxu1 %v6231_v6 }
 0x654   : > { %v2690_v49 = vpop.permute.xlu1 %2689 }
 0x658   : > { %v2792_v52 = vpop.permute.xlu1 %2791 }
 0x659   : > { %5686 = vmatmul.mubr.msk.bf16.vlgmr.msra.gmra.mrb[72].mxu1 %vm511_vm2, %v2440_v35  ;;  %v2797_v26 = vsel %vm511_vm2, %v2792_v52, 0  ;;  %v2372_v35 = vsel %vm1003_vm7, %v484_v55, 0 }
 0x65a   : > { %5690 = vmatpush3.bf16.xpose.msra.mxu1 %v2497_v14  ;;  %5691 = vmatprep.mubr.msk.bf16.mxu1 %vm6232_vm1, %v6231_v6 }
 0x65b   : > { %5695 = vmatprep.subr.bf16.mxu1 %v6231_v6 }
 0x65c   : > { %v2790_v30 = vpop.permute.xlu1 %2789 }
 0x661   : > { %5692 = vmatmul.mubr.msk.bf16.vlgmr.msra.gmra.mrb[76].mxu1 %vm511_vm2, %v2490_v12 }
 0x662   : > { %5696 = vmatpush3.bf16.xpose.msra.mxu1 %v2547_v40  ;;  %5697 = vmatprep.mubr.msk.bf16.mxu1 %vm6232_vm1, %v6231_v6 }
 0x663   : > { %5701 = vmatprep.subr.bf16.mxu1 %v6231_v6 }
 0x669   : > { %5698 = vmatmul.mubr.msk.bf16.vlgmr.msra.gmra.mrb[80].mxu1 %vm511_vm2, %v2540_v38 }
 0x66a   : > { %5702 = vmatpush3.bf16.xpose.msra.mxu1 %v2597_v47  ;;  %5703 = vmatprep.mubr.msk.bf16.mxu1 %vm6232_vm1, %v6231_v6 }
 0x66b   : > { %5713 = vmatprep.subr.bf16.mxu1 %v6231_v6 }
 0x671   : > { %5704 = vmatmul.mubr.msk.bf16.vlgmr.msra.gmra.mrb[84].mxu1 %vm511_vm2, %v2590_v28 }
 0x672   : > { %5714 = vmatpush3.bf16.xpose.msra.mxu1 %v2697_v59  ;;  %5715 = vmatprep.mubr.msk.bf16.mxu1 %vm6232_vm1, %v6231_v6 }
 0x673   : > { %5725 = vmatprep.subr.bf16.mxu1 %v6231_v6 }
 0x679   : > { %5716 = vmatmul.mubr.msk.bf16.vlgmr.msra.gmra.mrb[88].mxu1 %vm511_vm2, %v2690_v49 }
 0x67a   : > { %5726 = vmatpush3.bf16.xpose.msra.mxu1 %v2797_v26  ;;  %5727 = vmatprep.mubr.msk.bf16.mxu1 %vm6232_vm1, %v6231_v6 }
 0x67b   : > { %5737 = vmatprep.subr.bf16.mxu1 %v6231_v6 }
 0x681   : > { %5728 = vmatmul.mubr.msk.bf16.vlgmr.msra.gmra.mrb[92].mxu1 %vm511_vm2, %v2790_v30 }
 0x682   : > { %5739 = vmatprep.mubr.msk.bf16.mxu1 %vm6232_vm1, %v6231_v6 }
 0x6d3   : > { %v6913_v60 = vpop.f32.mrb[48].mxu0 }
 0x6d4   : > { %v5619_v1 = vpop.f32.mrb[49].mxu0 }
 0x6d5   : > { %v1936_v11 = vpop.f32.mrb[50].mxu0 }
 0x6d6   : > { %v5620_v15 = vpop.f32.mrb[51].mxu0 }
 0x6d7   : > { %v2642_v15 = vpop.permute.xlu0 %2641 }
 0x6db   : > { %v6915_v17 = vpop.f32.mrb[52].mxu0 }
 0x6dc   : > { %v5631_v24 = vpop.f32.mrb[53].mxu0 }
 0x6dd   : > { %v2032_v27 = vpop.f32.mrb[54].mxu0 }
 0x6de   : > { %v6917_v37 = vpop.f32.mrb[56].mxu1  ;;  %v5632_v50 = vpop.f32.mrb[55].mxu0 }
 0x6df   : > { %v2275_v29 = vpack.c.bf16 %v6917_v37, %v6913_v60  ;;  %v5625_v4 = vpop.f32.mrb[57].mxu1 }
 0x6e0   : > { %v1984_v32 = vpop.f32.mrb[58].mxu1 }
 0x6e1   : > { %v5626_v54 = vpop.f32.mrb[59].mxu1  ;;  %5665 = vmatprep.mubr.msk.bf16.mxu0 %vm511_vm2, %v2275_v29  ;;  %v2647_v29 = vsel %vm511_vm2, %v2642_v15, 0 }
 0x6e6   : > { %v6922_v2 = vpop.f32.mrb[60].mxu1 }
 0x6e7   : > { %v2276_v62 = vpack.c.bf16 %v6922_v2, %v6915_v17  ;;  %v5637_v63 = vpop.f32.mrb[61].mxu1 }
 0x6e8   : > { %v2080_v36 = vpop.f32.mrb[62].mxu1 }
 0x6e9   : > { %v5638_v12 = vpop.f32.mrb[63].mxu1  ;;  %5666 = vmatmul.mubr.msk.bf16.vlgmr.msra.gmra.mrb[64].mxu0 %vm511_vm2, %v2276_v62  ;;  %v2640_v62 = vpop.permute.xlu0 %2639 }
 0x6ea   : > { %5674 = vmatpush3.bf16.msra.mxu0 %v2372_v35 }
 0x6eb   : > { %5707 = vmatprep.subr.bf16.mxu0 %v6231_v6 }
 0x710   : > { %v6929_v14 = vpop.f32.mrb[56].mxu0 }
 0x711   : > { %v5643_v38 = vpop.f32.mrb[57].mxu0 }
 0x712   : > { %v2128_v34 = vpop.f32.mrb[58].mxu0 }
 0x713   : > { %v5644_v40 = vpop.f32.mrb[59].mxu0 }
 0x718   : > { %v6931_v41 = vpop.f32.mrb[60].mxu0 }
 0x719   : > { %v5655_v28 = vpop.f32.mrb[61].mxu0 }
 0x71a   : > { %v2224_v25 = vpop.f32.mrb[62].mxu0 }
 0x71b   : > { %v6933_v45 = vpop.f32.mrb[64].mxu1  ;;  %v5656_v47 = vpop.f32.mrb[63].mxu0 }
 0x71c   : > { %7715 = vst [vmem:[#allocation7_spill] sm:$0xff] %v6933_v45  ;;  %v2277_v48 = vpack.c.bf16 %v6933_v45, %v6929_v14  ;;  %v5649_v49 = vpop.f32.mrb[65].mxu1 }
 0x71d   : > { %v2176_v59 = vpop.f32.mrb[66].mxu1 }
 0x71e   : > { %v5650_v52 = vpop.f32.mrb[67].mxu1  ;;  %5669 = vmatprep.mubr.msk.bf16.mxu0 %vm511_vm2, %v2277_v48 }
 0x723   : > { %v6938_v26 = vpop.f32.mrb[68].mxu1 }
 0x724   : > { %7716 = vst [vmem:[#allocation8_spill] sm:$0xff] %v6938_v26  ;;  %v2278_v30 = vpack.c.bf16 %v6938_v26, %v6931_v41  ;;  %v5661_v55 = vpop.f32.mrb[69].mxu1 }
 0x725   : > { %v2272_v1 = vpop.f32.mrb[70].mxu1 }
 0x726   : > { %v5662_v11 = vpop.f32.mrb[71].mxu1  ;;  %5670 = vmatmul.mubr.msk.bf16.gmra.mrb[68].mxu0 %vm511_vm2, %v2278_v30 }
 0x727   : > { %5675 = vmatprep.mubr.msk.bf16.mxu0 %vm511_vm2, %v1383_v46 }
 0x72c   : > { %v2483_v24 = vpop.f32.mrb[72].mxu1 }
 0x72d   : > { %v6949_v27 = vsel %vm6449_vm8, 1e-09, %v2483_v24  ;;  %v5687_v50 = vpop.f32.mrb[73].mxu1 }
 0x72e   : > { %v2486_v4 = vpop.f32.mrb[74].mxu1  ;;  %5676 = vmatmul.mubr.msk.bf16.vlgmr.msra.gmra.mrb[64].mxu0 %vm511_vm2, %v1384_v0  ;;  %v2847_v32 = vsel %vm511_vm2, %v6949_v27, -inf }
 0x72f   : > { %2848 = vmax.xlane.f32.xlu0 %v2847_v32  ;;  %v5688_v46 = vpop.f32.mrb[75].mxu1  ;;  %5708 = vmatpush3.bf16.xpose.msra.mxu0 %v2647_v29 }
 0x730   : > { %5679 = vmatprep.mubr.msk.bf16.mxu0 %vm511_vm2, %v1385_v44  ;;  %5719 = vmatprep.subr.bf16.mxu0 %v6231_v6  ;;  %v2742_v44 = vpop.permute.xlu0 %2741 }
 0x731   : > { %v2747_v28 = vsel %vm511_vm2, %v2742_v44, 0 }
 0x734   : > { %v2533_v54 = vpop.f32.mrb[76].mxu1  ;;  %v2740_v49 = vpop.permute.xlu0 %2739 }
 0x735   : > { %v2840_v63 = vsel %vm6473_vm10, 1e-09, %v2533_v54  ;;  %v5693_v35 = vpop.f32.mrb[77].mxu1 }
 0x736   : > { %v2536_v0 = vpop.f32.mrb[78].mxu1  ;;  %5680 = vmatmul.mubr.msk.bf16.gmra.mrb[68].mxu0 %vm511_vm2, %v1386_v33  ;;  %v2850_v36 = vsel %vm511_vm2, %v2840_v63, -inf }
 0x737   : > { %2851 = vmax.xlane.f32.xlu1 %v2850_v36  ;;  %v5694_v12 = vpop.f32.mrb[79].mxu1  ;;  %5709 = vmatprep.mubr.msk.bf16.mxu0 %vm6232_vm1, %v6231_v6 }
 0x73c   : > { %v2583_v38 = vpop.f32.mrb[80].mxu1 }
 0x73d   : > { %v6974_v34 = vsel %vm6445_vm6, 1e-09, %v2583_v38  ;;  %v5699_v40 = vpop.f32.mrb[81].mxu1 }
 0x73e   : > { %v2586_v25 = vpop.f32.mrb[82].mxu1  ;;  %v2853_v33 = vsel %vm511_vm2, %v6974_v34, -inf  ;;  %5710 = vmatmul.mubr.msk.bf16.vlgmr.msra.gmra.mrb[72].mxu0 %vm511_vm2, %v2640_v62 }
 0x73f   : > { %2854 = vmax.xlane.f32.xlu0 %v2853_v33  ;;  %v5700_v47 = vpop.f32.mrb[83].mxu1  ;;  %5720 = vmatpush3.bf16.xpose.msra.mxu0 %v2747_v28 }
 0x740   : > { %5721 = vmatprep.mubr.msk.bf16.mxu0 %vm6232_vm1, %v6231_v6  ;;  %5731 = vmatprep.subr.bf16.mxu0 %v6231_v6 }
 0x744   : > { %v2633_v48 = vpop.f32.mrb[84].mxu1 }
 0x745   : > { %v2842_v59 = vsel %vm6500_vm15, 1e-09, %v2633_v48  ;;  %v5705_v52 = vpop.f32.mrb[85].mxu1 }
 0x746   : > { %v2636_v30 = vpop.f32.mrb[86].mxu1  ;;  %v2856_v55 = vsel %vm511_vm2, %v2842_v59, -inf  ;;  %5722 = vmatmul.mubr.msk.bf16.vlgmr.msra.gmra.mrb[76].mxu0 %vm511_vm2, %v2740_v49 }
 0x747   : > { %2857 = vmax.xlane.f32.xlu0 %v2856_v55  ;;  %v5706_v1 = vpop.f32.mrb[87].mxu1  ;;  %5733 = vmatprep.mubr.msk.bf16.mxu0 %vm6232_vm1, %v6231_v6 }
 0x74c   : > { %v2733_v11 = vpop.f32.mrb[88].mxu1 }
 0x74d   : > { %v2844_v15 = vsel %vm6509_vm3, 1e-09, %v2733_v11  ;;  %v5717_v24 = vpop.f32.mrb[89].mxu1 }
 0x74e   : > { %v2736_v50 = vpop.f32.mrb[90].mxu1  ;;  %v2862_v29 = vsel %vm511_vm2, %v2844_v15, -inf }
 0x74f   : > { %2863 = vmax.xlane.f32.xlu0 %v2862_v29  ;;  %v5718_v4 = vpop.f32.mrb[91].mxu1 }
 0x754   : > { %v2833_v32 = vpop.f32.mrb[92].mxu1 }
 0x755   : > { %v2846_v46 = vsel %vm6518_vm4, 1e-09, %v2833_v32  ;;  %v5729_v54 = vpop.f32.mrb[93].mxu1 }
 0x756   : > { %v2836_v62 = vpop.f32.mrb[94].mxu1  ;;  %v2868_v35 = vsel %vm511_vm2, %v2846_v46, -inf }
 0x757   : > { %2869 = vmax.xlane.f32.xlu0 %v2868_v35  ;;  %v5730_v0 = vpop.f32.mrb[95].mxu1 }
 0x7bc   : > { %v2849_v38 = vpop.xlane.xlu0 %2848 }
 0x7bd   : > { %v2871_v4 = vsub.f32 %v6949_v27, %v2849_v38 }
 0x7bf   : > { %v2879_v32 = vmul.f32 1.442695, %v2871_v4 }
 0x7c4   : > { %v2852_v36 = vpop.xlane.xlu1 %2851 }
 0x7c5   : > { %v2872_v12 = vsub.f32 %v2840_v63, %v2852_v36 }
 0x7c7   : > { %v2881_v44 = vmul.f32 1.442695, %v2872_v12 }
 0x7c9   : > { %6055 = vpow2.f32 %v2881_v44 }
 0x7cc   : > { %v2855_v40 = vpop.xlane.xlu0 %2854 }
 0x7d3   : > { %v6995_v28 = vpop.eup %6055 }
 0x7d4   : > { %v2858_v25 = vpop.xlane.xlu0 %2857  ;;  %v2898_v33 = vsel %vm511_vm2, %v6995_v28, 0.0 }
 0x7d5   : > { %v2874_v47 = vsub.f32 %v2842_v59, %v2858_v25  ;;  %2899 = vadd.xlane.f32.xlu0 %v2898_v33 }
 0x7d7   : > { %v2885_v48 = vmul.f32 1.442695, %v2874_v47 }
 0x7d9   : > { %6057 = vpow2.f32 %v2885_v48 }
 0x7dc   : > { %v2864_v49 = vpop.xlane.xlu0 %2863 }
 0x7dd   : > { %v2876_v52 = vsub.f32 %v2844_v15, %v2864_v49 }
 0x7df   : > { %v2889_v30 = vmul.f32 1.442695, %v2876_v52 }
 0x7e1   : > { %6059 = vpow2.f32 %v2889_v30 }
 0x7e3   : > { %v6999_v55 = vpop.eup %6057 }
 0x7e4   : > { %v2870_v63 = vpop.xlane.xlu0 %2869  ;;  %v2904_v1 = vsel %vm511_vm2, %v6999_v55, 0.0 }
 0x7e5   : > { %v2878_v11 = vsub.f32 %v2846_v46, %v2870_v63  ;;  %2905 = vadd.xlane.f32.xlu0 %v2904_v1  ;;  %v2873_v46 = vsub.f32 %v6974_v34, %v2855_v40 }
 0x7e7   : > { %v2893_v24 = vmul.f32 1.442695, %v2878_v11  ;;  %v2883_v62 = vmul.f32 1.442695, %v2873_v46 }
 0x7e9   : > { %6061 = vpow2.f32 %v2893_v24 }
 0x7ea   : > { %6063 = vpow2.f32 %v2879_v32 }
 0x7eb   : > { %v7003_v50 = vpop.eup %6059  ;;  %6065 = vpow2.f32 %v2883_v62 }
 0x7ec   : > { %v2910_v59 = vsel %vm511_vm2, %v7003_v50, 0.0 }
 0x7ed   : > { %2911 = vadd.xlane.f32.xlu0 %v2910_v59 }
 0x7f3   : > { %v7007_v29 = vpop.eup %6061 }
 0x7f4   : > { %v2916_v15 = vsel %vm511_vm2, %v7007_v29, 0.0  ;;  %v6064_v33 = vpop.eup %6063 }
 0x7f5   : > { %2917 = vadd.xlane.f32.xlu0 %v2916_v15  ;;  %v2895_v48 = vsel %vm511_vm2, %v6064_v33, 0.0  ;;  %v7032_v49 = vpop.eup %6065 }
 0x7f6   : > { %v2901_v52 = vsel %vm511_vm2, %v7032_v49, 0.0 }
 0x80b   : > { %2991 = vrot.lane.b32.xlu0 %v6363_v18, %s6241_s18 }
 0x80f   : > { %3135 = vrot.lane.b32.xlu0 %v6369_v20, %s6241_s18 }
 0x811   : > { %v2683_v54 = vpop.f32.mrb[72].mxu0 }
 0x812   : > { %v2843_v35 = vsel %vm6469_vm9, 1e-09, %v2683_v54  ;;  %v5711_v0 = vpop.f32.mrb[73].mxu0 }
 0x813   : > { %3231 = vrot.lane.b32.xlu0 %v6374_v22, %s6241_s18  ;;  %v2686_v27 = vpop.f32.mrb[74].mxu0  ;;  %v2859_v36 = vsel %vm511_vm2, %v2843_v35, -inf }
 0x814   : > { %2860 = vmax.xlane.f32.xlu1 %v2859_v36  ;;  %v5712_v12 = vpop.f32.mrb[75].mxu0 }
 0x817   : > { %3421 = vrot.lane.b32.xlu0 %v6357_v10, %s6242_s19 }
 0x819   : > { %v2783_v34 = vpop.f32.mrb[76].mxu0 }
 0x81a   : > { %v2845_v44 = vsel %vm6522_vm5, 1e-09, %v2783_v34  ;;  %v5723_v38 = vpop.f32.mrb[77].mxu0 }
 0x81b   : > { %3471 = vrot.lane.b32.xlu0 %v6363_v18, %s6242_s19  ;;  %v2786_v40 = vpop.f32.mrb[78].mxu0  ;;  %v2865_v25 = vsel %vm511_vm2, %v2845_v44, -inf }
 0x81c   : > { %2866 = vmax.xlane.f32.xlu1 %v2865_v25  ;;  %v5724_v47 = vpop.f32.mrb[79].mxu0 }
 0x81f   : > { %3521 = vrot.lane.b32.xlu0 %v6355_v8, %s6242_s19 }
 0x820   : > { %2896 = vadd.xlane.f32.xlu1 %v2895_v48 }
 0x823   : > { %3519 = vrot.lane.b32.xlu0 %v6355_v8, %s6243_s20 }
 0x824   : > { %2902 = vadd.xlane.f32.xlu1 %v2901_v52 }
 0x827   : > { %3621 = vrot.lane.b32.xlu0 %v6369_v20, %s6242_s19 }
 0x82b   : > { %3619 = vrot.lane.b32.xlu0 %v6369_v20, %s6243_s20 }
 0x82f   : > { %3721 = vrot.lane.b32.xlu0 %v6374_v22, %s6242_s19 }
 0x833   : > { %3719 = vrot.lane.b32.xlu0 %v6374_v22, %s6243_s20 }
 0x835   : > { %2943 = vrot.lane.b32.xlu1 %v6357_v10, %s6241_s18 }
 0x839   : > { %3039 = vrot.lane.b32.xlu1 %v6355_v8, %s6241_s18 }
 0x83d   : > { %3087 = vrot.lane.b32.xlu1 %v6361_v16, %s6241_s18 }
 0x841   : > { %3183 = vrot.lane.b32.xlu1 %v6366_v19, %s6241_s18 }
 0x862   : > { %v2900_v30 = vpop.xlane.xlu0 %2899 }
 0x863   : > { %6067 = vrcp.f32 %v2900_v30 }
 0x86d   : > { %v6068_v11 = vpop.eup %6067 }
 0x86e   : > { %v2928_v59 = vmul.f32 %v6068_v11, %v6995_v28 }
 0x870   : > { %v2936_v32 = vpack.c.bf16 %v2928_v59, %v2928_v59 }
 0x872   : > { %v2906_v63 = vpop.xlane.xlu0 %2905 }
 0x87a   : > { %v2912_v1 = vpop.xlane.xlu0 %2911 }
 0x882   : > { %v7054_v24 = vpop.xlane.xlu0 %2917 }
 0x886   : > { %v2992_v15 = vpop.permute.xlu0 %2991 }
 0x887   : > { %v2997_v4 = vsel %vm1003_vm7, %v2992_v15, 0 }
 0x888   : > { %5738 = vmatpush3.bf16.msra.mxu1 %v2997_v4 }
 0x889   : > { %5749 = vmatprep.subr.bf16.mxu1 %v6231_v6 }
 0x88b   : > { %5740 = vmatmul.mubr.msk.bf16.vlgmr.msra.gmra.mrb[96].mxu1 %vm511_vm2, %v2936_v32 }
 0x88c   : > { %5751 = vmatprep.mubr.msk.bf16.mxu1 %vm6232_vm1, %v6231_v6 }
 0x8a1   : > { %v2861_v46 = vpop.xlane.xlu1 %2860 }
 0x8a2   : > { %v2875_v54 = vsub.f32 %v2843_v35, %v2861_v46 }
 0x8a4   : > { %v2887_v62 = vmul.f32 1.442695, %v2875_v54 }
 0x8a6   : > { %6069 = vpow2.f32 %v2887_v62  ;;  %v3136_v62 = vpop.permute.xlu0 %3135 }
 0x8a7   : > { %6071 = vrcp.f32 %v2906_v63 }
 0x8a9   : > { %v2867_v0 = vpop.xlane.xlu1 %2866 }
 0x8aa   : > { %v2877_v27 = vsub.f32 %v2845_v44, %v2867_v0 }
 0x8ac   : > { %v2891_v36 = vmul.f32 1.442695, %v2877_v27  ;;  %v3141_v27 = vsel %vm1003_vm7, %v3136_v62, 0 }
 0x8ad   : > { %v2897_v28 = vpop.xlane.xlu1 %2896 }
 0x8ae   : > { %6073 = vpow2.f32 %v2891_v36 }
 0x8af   : > { %6075 = vrcp.f32 %v2897_v28 }
 0x8b0   : > { %v7062_v12 = vpop.eup %6069 }
 0x8b1   : > { %v2903_v34 = vpop.xlane.xlu1 %2902  ;;  %v2907_v38 = vsel %vm511_vm2, %v7062_v12, 0.0  ;;  %v6072_v25 = vpop.eup %6071 }
 0x8b2   : > { %2908 = vadd.xlane.f32.xlu1 %v2907_v38  ;;  %6077 = vrcp.f32 %v2903_v34  ;;  %v2930_v63 = vmul.f32 %v6072_v25, %v6999_v55 }
 0x8b3   : > { %6079 = vrcp.f32 %v2912_v1 }
 0x8b4   : > { %v2938_v46 = vpack.c.bf16 %v2930_v63, %v2930_v63  ;;  %6081 = vrcp.f32 %v7054_v24 }
 0x8b5   : > { %v2944_v40 = vpop.permute.xlu1 %2943 }
 0x8b6   : > { %v2949_v35 = vsel %vm1003_vm7, %v2944_v40, 0 }
 0x8b7   : > { %5732 = vmatpush3.bf16.msra.mxu0 %v2949_v35 }
 0x8b8   : > { %v7067_v44 = vpop.eup %6073  ;;  %5743 = vmatprep.subr.bf16.mxu0 %v6231_v6 }
 0x8b9   : > { %v6076_v47 = vpop.eup %6075  ;;  %v3040_v48 = vpop.permute.xlu1 %3039  ;;  %v2913_v52 = vsel %vm511_vm2, %v7067_v44, 0.0 }
 0x8ba   : > { %v2927_v30 = vmul.f32 %v6076_v47, %v6064_v33  ;;  %2914 = vadd.xlane.f32.xlu1 %v2913_v52  ;;  %v3045_v4 = vsel %vm1003_vm7, %v3040_v48, 0  ;;  %v3232_v47 = vpop.permute.xlu0 %3231 }
 0x8bb   : > { %v3237_v24 = vsel %vm1003_vm7, %v3232_v47, 0 }
 0x8bc   : > { %v2935_v11 = vpack.c.bf16 %v2927_v30, %v2927_v30  ;;  %v6078_v59 = vpop.eup %6077 }
 0x8bd   : > { %v3088_v15 = vpop.permute.xlu1 %3087  ;;  %v2929_v32 = vmul.f32 %v6078_v59, %v7032_v49  ;;  %v6080_v55 = vpop.eup %6079 }
 0x8be   : > { %5734 = vmatmul.mubr.msk.bf16.vlgmr.msra.gmra.mrb[80].mxu0 %vm511_vm2, %v2935_v11  ;;  %v3093_v1 = vsel %vm1003_vm7, %v3088_v15, 0  ;;  %v2932_v49 = vmul.f32 %v6080_v55, %v7003_v50  ;;  %v6082_v28 = vpop.eup %6081  ;;  %v3422_v11 = vpop.permute.xlu0 %3421 }
 0x8bf   : > { %5744 = vmatpush3.bf16.msra.mxu0 %v3045_v4  ;;  %5750 = vmatpush3.bf16.msra.mxu1 %v3093_v1  ;;  %v2937_v0 = vpack.c.bf16 %v2929_v32, %v2929_v32  ;;  %v2934_v40 = vmul.f32 %v6082_v28, %v7007_v29  ;;  %v486_v29 = vld [vmem:[%s7683_s4 + $0x8] sm:$0xf]  ;;  %v3427_v4 = vsel %vm511_vm2, %v3422_v11, 0 }
 0x8c0   : > { %5761 = vmatprep.subr.bf16.mxu1 %v6231_v6  ;;  %5745 = vmatprep.mubr.msk.bf16.mxu0 %vm6232_vm1, %v6231_v6  ;;  %v2940_v36 = vpack.c.bf16 %v2932_v49, %v2932_v49  ;;  %v3344_v32 = vsel %vm1003_vm7, %v486_v29, 0 }
 0x8c1   : > { %v3184_v33 = vpop.permute.xlu1 %3183  ;;  %5755 = vmatprep.subr.bf16.mxu0 %v6231_v6  ;;  %v2942_v30 = vpack.c.bf16 %v2934_v40, %v2934_v40 }
 0x8c2   : > { %v3189_v54 = vsel %vm1003_vm7, %v3184_v33, 0  ;;  %5752 = vmatmul.mubr.msk.bf16.vlgmr.msra.gmra.mrb[100].mxu1 %vm511_vm2, %v2938_v46  ;;  %v3472_v46 = vpop.permute.xlu0 %3471 }
 0x8c3   : > { %5762 = vmatpush3.bf16.msra.mxu1 %v3189_v54  ;;  %5763 = vmatprep.mubr.msk.bf16.mxu1 %vm6232_vm1, %v6231_v6  ;;  %v3477_v33 = vsel %vm511_vm2, %v3472_v46, 0 }
 0x8c4   : > { %5773 = vmatprep.subr.bf16.mxu1 %v6231_v6 }
 0x8c6   : > { %5746 = vmatmul.mubr.msk.bf16.vlgmr.msra.gmra.mrb[84].mxu0 %vm511_vm2, %v2937_v0 }
 0x8c7   : > { %5756 = vmatpush3.bf16.msra.mxu0 %v3141_v27  ;;  %5757 = vmatprep.mubr.msk.bf16.mxu0 %vm6232_vm1, %v6231_v6 }
 0x8c8   : > { %5767 = vmatprep.subr.bf16.mxu0 %v6231_v6 }
 0x8ca   : > { %5764 = vmatmul.mubr.msk.bf16.vlgmr.msra.gmra.mrb[104].mxu1 %vm511_vm2, %v2940_v36 }
 0x8cb   : > { %3279 = vrot.lane.b32.xlu1 %v6371_v21, %s6241_s18  ;;  %5775 = vmatprep.mubr.msk.bf16.mxu1 %vm6232_vm1, %v6231_v6  ;;  %s5188_s18 = sshll.u32 %s273_s11, 3 }
 0x8cc   : > { %s275_s28 = scalar_lea.vmem [#allocation2], %s5188_s18 }
 0x8cd   : > { %s5104_s9 = sshll.u32 %s275_s28, 4  ;;  %s7637_s9 = int_to_ptr.vmem [resolvable:$true] %s5104_s9 }
 0x8ce   : > { %p6174_p0 = scmp.lt.s32.totalorder %s7637_s9, %s6172_s16 }
 0x8cf   : > { %3419 = vrot.lane.b32.xlu1 %v6357_v10, %s6243_s20 }
 0x8d3   : > { %3469 = vrot.lane.b32.xlu1 %v6363_v18, %s6243_s20 }
 0x8d7   : > { %3571 = vrot.lane.b32.xlu1 %v6361_v16, %s6242_s19 }
 0x8db   : > { %3569 = vrot.lane.b32.xlu1 %v6361_v16, %s6243_s20 }
 0x8df   : > { %3671 = vrot.lane.b32.xlu1 %v6366_v19, %s6242_s19 }
 0x8e3   : > { %3669 = vrot.lane.b32.xlu1 %v6366_v19, %s6243_s20 }
 0x8e7   : > { %3771 = vrot.lane.b32.xlu1 %v6371_v21, %s6242_s19  ;;  %s6245_s19 = smov 8  }
 0x8eb   : > { %3769 = vrot.lane.b32.xlu1 %v6371_v21, %s6243_s20  ;;  %s6246_s20 = smov 24  }
 0x93f   : > { %v2909_v50 = vpop.xlane.xlu1 %2908 }
 0x940   : > { %6083 = vrcp.f32 %v2909_v50 }
 0x947   : > { %v2915_v34 = vpop.xlane.xlu1 %2914 }
 0x948   : > { %6085 = vrcp.f32 %v2915_v34 }
 0x94a   : > { %v6084_v38 = vpop.eup %6083 }
 0x94b   : > { %v2931_v35 = vmul.f32 %v6084_v38, %v7062_v12  ;;  %v3280_v25 = vpop.permute.xlu1 %3279 }
 0x94c   : > { %v3285_v48 = vsel %vm1003_vm7, %v3280_v25, 0 }
 0x94d   : > { %5774 = vmatpush3.bf16.msra.mxu1 %v3285_v48  ;;  %v2939_v52 = vpack.c.bf16 %v2931_v35, %v2931_v35 }
 0x94e   : > { %5789 = vmatprep.subr.bf16.mxu1 %v6231_v6 }
 0x94f   : > { %v3420_v63 = vpop.permute.xlu1 %3419  ;;  %5758 = vmatmul.mubr.msk.bf16.vlgmr.msra.gmra.mrb[88].mxu0 %vm511_vm2, %v2939_v52 }
 0x950   : > { %5768 = vmatpush3.bf16.msra.mxu0 %v3237_v24  ;;  %5776 = vmatmul.mubr.msk.bf16.vlgmr.msra.gmra.mrb[108].mxu1 %vm511_vm2, %v2942_v30 }
 0x951   : > { %5769 = vmatprep.mubr.msk.bf16.mxu0 %vm6232_vm1, %v6231_v6  ;;  %5791 = vmatprep.mubr.msk.bf16.mxu1 %vm6232_vm1, %v6231_v6 }
 0x952   : > { %v6086_v12 = vpop.eup %6085  ;;  %5925 = vmatprep.subr.msk.bf16.mxu0 %vm1003_vm7, %v486_v29 }
 0x953   : > { %v2933_v59 = vmul.f32 %v6086_v12, %v7067_v44  ;;  %v3470_v15 = vpop.permute.xlu1 %3469  ;;  %v3522_v12 = vpop.permute.xlu0 %3521 }
 0x955   : > { %v2941_v1 = vpack.c.bf16 %v2933_v59, %v2933_v59 }
 0x956   : > { %5790 = vmatpush3.bf16.xpose.msra.mxu1 %v3427_v4 }
 0x957   : > { %5770 = vmatmul.mubr.msk.bf16.vlgmr.msra.gmra.mrb[92].mxu0 %vm511_vm2, %v2941_v1  ;;  %5795 = vmatprep.subr.bf16.mxu1 %v6231_v6  ;;  %v3572_v55 = vpop.permute.xlu1 %3571  ;;  %v3527_v1 = vsel %vm511_vm2, %v3522_v12, 0 }
 0x958   : > { %5780 = vmatpush3.bf16.msra.mxu0 %v3344_v32  ;;  %v3577_v27 = vsel %vm511_vm2, %v3572_v55, 0 }
 0x959   : > { %5801 = vmatprep.subr.bf16.mxu0 %v6231_v6 }
 0x95b   : > { %v3570_v62 = vpop.permute.xlu1 %3569 }
 0x95d   : > { %5792 = vmatmul.mubr.msk.bf16.vlgmr.msra.gmra.mrb[112].mxu1 %vm511_vm2, %v3420_v63 }
 0x95e   : > { %v7137_v44 = vpop.f32.mrb[96].mxu1  ;;  %5796 = vmatpush3.bf16.xpose.msra.mxu1 %v3477_v33  ;;  %5797 = vmatprep.mubr.msk.bf16.mxu1 %vm6232_vm1, %v6231_v6 }
 0x95f   : > { %v5741_v54 = vpop.f32.mrb[97].mxu1  ;;  %5807 = vmatprep.subr.bf16.mxu1 %v6231_v6  ;;  %v3672_v36 = vpop.permute.xlu1 %3671 }
 0x960   : > { %v3036_v49 = vpop.f32.mrb[98].mxu1  ;;  %v3677_v28 = vsel %vm511_vm2, %v3672_v36, 0 }
 0x961   : > { %v5742_v0 = vpop.f32.mrb[99].mxu1 }
 0x963   : > { %v3670_v50 = vpop.permute.xlu1 %3669 }
 0x965   : > { %5798 = vmatmul.mubr.msk.bf16.vlgmr.msra.gmra.mrb[116].mxu1 %vm511_vm2, %v3470_v15 }
 0x966   : > { %5808 = vmatpush3.bf16.xpose.msra.mxu1 %v3577_v27  ;;  %5809 = vmatprep.mubr.msk.bf16.mxu1 %vm6232_vm1, %v6231_v6 }
 0x967   : > { %5819 = vmatprep.subr.bf16.mxu1 %v6231_v6  ;;  %v3772_v34 = vpop.permute.xlu1 %3771 }
 0x968   : > { %v3777_v38 = vsel %vm511_vm2, %v3772_v34, 0 }
 0x96b   : > { %v3770_v40 = vpop.permute.xlu1 %3769 }
 0x96d   : > { %5810 = vmatmul.mubr.msk.bf16.vlgmr.msra.gmra.mrb[120].mxu1 %vm511_vm2, %v3570_v62 }
 0x96e   : > { %5820 = vmatpush3.bf16.xpose.msra.mxu1 %v3677_v28  ;;  %5821 = vmatprep.mubr.msk.bf16.mxu1 %vm6232_vm1, %v6231_v6 }
 0x96f   : > { %5831 = vmatprep.subr.bf16.mxu1 %v6231_v6 }
 0x975   : > { %5822 = vmatmul.mubr.msk.bf16.vlgmr.msra.gmra.mrb[124].mxu1 %vm511_vm2, %v3670_v50 }
 0x976   : > { %5832 = vmatpush3.bf16.xpose.msra.mxu1 %v3777_v38  ;;  %5833 = vmatprep.mubr.msk.bf16.mxu1 %vm6232_vm1, %v6231_v6 }
 0x977   : > { %5843 = vmatprep.subr.bf16.mxu1 %v6231_v6 }
 0x97d   : > { %5834 = vmatmul.mubr.msk.bf16.vlgmr.msra.gmra.mrb[128].mxu1 %vm511_vm2, %v3770_v40  ;;  %v3520_v40 = vpop.permute.xlu0 %3519 }
 0x97e   : > { %5845 = vmatprep.mubr.msk.bf16.mxu1 %vm6232_vm1, %v6231_v6 }
 0x991   : > { %v7160_v35 = vpop.f32.mrb[80].mxu0 }
 0x992   : > { %v3327_v25 = vpack.c.bf16 %v7137_v44, %v7160_v35  ;;  %v5735_v47 = vpop.f32.mrb[81].mxu0 }
 0x993   : > { %v2988_v48 = vpop.f32.mrb[82].mxu0 }
 0x994   : > { %v5736_v52 = vpop.f32.mrb[83].mxu0  ;;  %5781 = vmatprep.mubr.msk.bf16.mxu0 %vm511_vm2, %v3327_v25 }
 0x995   : > { %v7165_v30 = vpop.f32.mrb[100].mxu1 }
 0x996   : > { %v5753_v24 = vpop.f32.mrb[101].mxu1 }
 0x997   : > { %v3132_v63 = vpop.f32.mrb[102].mxu1 }
 0x998   : > { %v5754_v29 = vpop.f32.mrb[103].mxu1  ;;  %v3622_v63 = vpop.permute.xlu0 %3621 }
 0x999   : > { %v7167_v11 = vpop.f32.mrb[84].mxu0 }
 0x99a   : > { %v3328_v59 = vpack.c.bf16 %v7165_v30, %v7167_v11  ;;  %v5747_v15 = vpop.f32.mrb[85].mxu0 }
 0x99b   : > { %v3084_v4 = vpop.f32.mrb[86].mxu0 }
 0x99c   : > { %v5748_v32 = vpop.f32.mrb[87].mxu0  ;;  %5782 = vmatmul.mubr.msk.bf16.vlgmr.msra.gmra.mrb[64].mxu0 %vm511_vm2, %v3328_v59 }
 0x99d   : > { %5802 = vmatpush3.bf16.xpose.msra.mxu0 %v3527_v1  ;;  %v7173_v46 = vpop.f32.mrb[104].mxu1  ;;  %v3620_v32 = vpop.permute.xlu0 %3619 }
 0x99e   : > { %7717 = vst [vmem:[#allocation9_spill] sm:$0xff] %v7173_v46  ;;  %v5765_v55 = vpop.f32.mrb[105].mxu1  ;;  %5813 = vmatprep.subr.bf16.mxu0 %v6231_v6 }
 0x99f   : > { %v3228_v33 = vpop.f32.mrb[106].mxu1  ;;  %v3627_v55 = vsel %vm511_vm2, %v3622_v63, 0 }
 0x9a0   : > { %v5766_v54 = vpop.f32.mrb[107].mxu1 }
 0xa22   : > { %v7176_v62 = vpop.f32.mrb[88].mxu0 }
 0xa23   : > { %v3329_v49 = vpack.c.bf16 %v7173_v46, %v7176_v62  ;;  %v5759_v0 = vpop.f32.mrb[89].mxu0  ;;  %v7180_v27 = vpop.f32.mrb[108].mxu1 }
 0xa24   : > { %7718 = vst [vmem:[#allocation10_spill] sm:$0xff] %v7180_v27  ;;  %v3180_v36 = vpop.f32.mrb[90].mxu0  ;;  %v5777_v50 = vpop.f32.mrb[109].mxu1 }
 0xa25   : > { %v5760_v28 = vpop.f32.mrb[91].mxu0  ;;  %v3324_v34 = vpop.f32.mrb[110].mxu1  ;;  %5785 = vmatprep.mubr.msk.bf16.mxu0 %vm511_vm2, %v3329_v49 }
 0xa26   : > { %v5778_v38 = vpop.f32.mrb[111].mxu1  ;;  %v3722_v49 = vpop.permute.xlu0 %3721 }
 0xa27   : > { %v3727_v28 = vsel %vm511_vm2, %v3722_v49, 0 }
 0xa2a   : > { %v7183_v25 = vpop.f32.mrb[92].mxu0 }
 0xa2b   : > { %v3330_v47 = vpack.c.bf16 %v7180_v27, %v7183_v25  ;;  %v5771_v48 = vpop.f32.mrb[93].mxu0 }
 0xa2c   : > { %v3276_v52 = vpop.f32.mrb[94].mxu0 }
 0xa2d   : > { %v5772_v24 = vpop.f32.mrb[95].mxu0  ;;  %5786 = vmatmul.mubr.msk.bf16.gmra.mrb[68].mxu0 %vm511_vm2, %v3330_v47  ;;  %v3720_v47 = vpop.permute.xlu0 %3719 }
 0xa2e   : > { %5803 = vmatprep.mubr.msk.bf16.mxu0 %vm6232_vm1, %v6231_v6 }
 0xa30   : > { %v3463_v29 = vpop.f32.mrb[112].mxu1 }
 0xa31   : > { %v3819_v12 = vsel %vm6449_vm8, 1e-09, %v3463_v29  ;;  %v5793_v59 = vpop.f32.mrb[113].mxu1 }
 0xa32   : > { %v3827_v15 = vsel %vm511_vm2, %v3819_v12, -inf  ;;  %v3466_v4 = vpop.f32.mrb[114].mxu1 }
 0xa33   : > { %3828 = vmax.xlane.f32.xlu0 %v3827_v15  ;;  %v5794_v1 = vpop.f32.mrb[115].mxu1 }
 0xa35   : > { %5804 = vmatmul.mubr.msk.bf16.vlgmr.msra.gmra.mrb[96].mxu0 %vm511_vm2, %v3520_v40 }
 0xa36   : > { %5814 = vmatpush3.bf16.xpose.msra.mxu0 %v3627_v55  ;;  %5815 = vmatprep.mubr.msk.bf16.mxu0 %vm6232_vm1, %v6231_v6 }
 0xa37   : > { %5825 = vmatprep.subr.bf16.mxu0 %v6231_v6 }
 0xa38   : > { %v3513_v33 = vpop.f32.mrb[116].mxu1 }
 0xa39   : > { %v3820_v53 = vsel %vm6473_vm10, 1e-09, %v3513_v33  ;;  %v5799_v54 = vpop.f32.mrb[117].mxu1 }
 0xa3a   : > { %v3830_v0 = vsel %vm511_vm2, %v3820_v53, -inf  ;;  %v3516_v36 = vpop.f32.mrb[118].mxu1 }
 0xa3b   : > { %3831 = vmax.xlane.f32.xlu1 %v3830_v0  ;;  %v5800_v50 = vpop.f32.mrb[119].mxu1 }
 0xa3d   : > { %5816 = vmatmul.mubr.msk.bf16.vlgmr.msra.gmra.mrb[100].mxu0 %vm511_vm2, %v3620_v32 }
 0xa3e   : > { %5826 = vmatpush3.bf16.xpose.msra.mxu0 %v3727_v28  ;;  %5827 = vmatprep.mubr.msk.bf16.mxu0 %vm6232_vm1, %v6231_v6 }
 0xa3f   : > { %5837 = vmatprep.subr.bf16.mxu0 %v6231_v6 }
 0xa40   : > { %v3613_v34 = vpop.f32.mrb[120].mxu1 }
 0xa41   : > { %v5811_v7 = vpop.f32.mrb[121].mxu1 }
 0xa42   : > { %v3616_v38 = vpop.f32.mrb[122].mxu1  ;;  %v3822_v7 = vsel %vm6500_vm15, 1e-09, %v3613_v34 }
 0xa43   : > { %v5812_v40 = vpop.f32.mrb[123].mxu1 }
 0xa45   : > { %5828 = vmatmul.mubr.msk.bf16.vlgmr.msra.gmra.mrb[104].mxu0 %vm511_vm2, %v3720_v47 }
 0xa46   : > { %5839 = vmatprep.mubr.msk.bf16.mxu0 %vm6232_vm1, %v6231_v6 }
 0xa48   : > { %v3713_v48 = vpop.f32.mrb[124].mxu1 }
 0xa49   : > { %v5823_v52 = vpop.f32.mrb[125].mxu1 }
 0xa4a   : > { %v3716_v24 = vpop.f32.mrb[126].mxu1 }
 0xa4b   : > { %v5824_v63 = vpop.f32.mrb[127].mxu1 }
 0xa50   : > { %v3813_v29 = vpop.f32.mrb[128].mxu1 }
 0xa51   : > { %v5835_v59 = vpop.f32.mrb[129].mxu1  ;;  %v3826_v63 = vsel %vm6518_vm4, 1e-09, %v3813_v29 }
 0xa52   : > { %v3816_v15 = vpop.f32.mrb[130].mxu1  ;;  %v3848_v61 = vsel %vm511_vm2, %v3826_v63, -inf }
 0xa53   : > { %v5836_v4 = vpop.f32.mrb[131].mxu1 }
 0xac0   : > { %v3829_v55 = vpop.xlane.xlu0 %3828 }
 0xac1   : > { %v3851_v54 = vsub.f32 %v3819_v12, %v3829_v55  ;;  %v3824_v12 = vsel %vm6509_vm3, 1e-09, %v3713_v48 }
 0xac2   : > { %v3842_v24 = vsel %vm511_vm2, %v3824_v12, -inf }
 0xac3   : > { %v3859_v40 = vmul.f32 1.442695, %v3851_v54 }
 0xac8   : > { %v3832_v1 = vpop.xlane.xlu1 %3831 }
 0xac9   : > { %v3852_v32 = vsub.f32 %v3820_v53, %v3832_v1  ;;  %v3836_v53 = vsel %vm511_vm2, %v3822_v7, -inf }
 0xacb   : > { %v3861_v49 = vmul.f32 1.442695, %v3852_v32 }
 0xacd   : > { %6087 = vpow2.f32 %v3861_v49 }
 0xace   : > { %6089 = vpow2.f32 %v3859_v40 }
 0xad7   : > { %v7224_v48 = vpop.eup %6087 }
 0xad8   : > { %v3878_v3 = vsel %vm511_vm2, %v7224_v48, 0.0  ;;  %v6090_v29 = vpop.eup %6089 }
 0xb08   : > { %v3563_v33 = vpop.f32.mrb[96].mxu0 }
 0xb09   : > { %v3821_v0 = vsel %vm6445_vm6, 1e-09, %v3563_v33  ;;  %v5805_v36 = vpop.f32.mrb[97].mxu0  ;;  %v3875_v33 = vsel %vm511_vm2, %v6090_v29, 0.0  ;;  %vm4469_vm6 = vcmask 7168  }
 0xb0a   : > { %v3833_v50 = vsel %vm511_vm2, %v3821_v0, -inf  ;;  %v3566_v28 = vpop.f32.mrb[98].mxu0 }
 0xb0b   : > { %3834 = vmax.xlane.f32.xlu0 %v3833_v50  ;;  %v5806_v38 = vpop.f32.mrb[99].mxu0 }
 0xb0f   : > { %3837 = vmax.xlane.f32.xlu0 %v3836_v53 }
 0xb10   : > { %v3663_v47 = vpop.f32.mrb[100].mxu0 }
 0xb11   : > { %v3823_v51 = vsel %vm6469_vm9, 1e-09, %v3663_v47  ;;  %v5817_v52 = vpop.f32.mrb[101].mxu0 }
 0xb12   : > { %v3839_v56 = vsel %vm511_vm2, %v3823_v51, -inf  ;;  %v3666_v34 = vpop.f32.mrb[102].mxu0 }
 0xb13   : > { %3843 = vmax.xlane.f32.xlu0 %v3842_v24  ;;  %3840 = vmax.xlane.f32.xlu1 %v3839_v56  ;;  %v5818_v59 = vpop.f32.mrb[103].mxu0 }
 0xb17   : > { %3849 = vmax.xlane.f32.xlu0 %v3848_v61 }
 0xb18   : > { %v3763_v15 = vpop.f32.mrb[104].mxu0 }
 0xb19   : > { %v3825_v5 = vsel %vm6522_vm5, 1e-09, %v3763_v15  ;;  %v5829_v4 = vpop.f32.mrb[105].mxu0 }
 0xb1a   : > { %v3845_v1 = vsel %vm511_vm2, %v3825_v5, -inf  ;;  %v3766_v32 = vpop.f32.mrb[106].mxu0 }
 0xb1b   : > { %3879 = vadd.xlane.f32.xlu0 %v3878_v3  ;;  %3846 = vmax.xlane.f32.xlu1 %v3845_v1  ;;  %v5830_v55 = vpop.f32.mrb[107].mxu0 }
 0xb1f   : > { %3876 = vadd.xlane.f32.xlu1 %v3875_v33 }
 0xb30   : > { %3923 = vrot.lane.b32.xlu1 %v6357_v10, %s6244_s29 }
 0xb34   : > { %4019 = vrot.lane.b32.xlu1 %v6355_v8, %s6244_s29 }
 0xb38   : > { %4067 = vrot.lane.b32.xlu1 %v6361_v16, %s6244_s29 }
 0xb3c   : > { %4163 = vrot.lane.b32.xlu1 %v6366_v19, %s6244_s29 }
 0xb98   : > { %v3835_v23 = vpop.xlane.xlu0 %3834 }
 0xb99   : > { %v3853_v54 = vsub.f32 %v3821_v0, %v3835_v23 }
 0xb9b   : > { %v3863_v49 = vmul.f32 1.442695, %v3853_v54 }
 0xb9c   : > { %v3838_v36 = vpop.xlane.xlu0 %3837 }
 0xb9d   : > { %6091 = vpow2.f32 %v3863_v49  ;;  %v3854_v50 = vsub.f32 %v3822_v7, %v3838_v36 }
 0xb9f   : > { %v3865_v28 = vmul.f32 1.442695, %v3854_v50 }
 0xba0   : > { %v3841_v38 = vpop.xlane.xlu1 %3840  ;;  %v3844_v40 = vpop.xlane.xlu0 %3843 }
 0xba1   : > { %6093 = vpow2.f32 %v3865_v28  ;;  %v3855_v10 = vsub.f32 %v3823_v51, %v3841_v38  ;;  %v3856_v53 = vsub.f32 %v3824_v12, %v3844_v40 }
 0xba3   : > { %v3867_v47 = vmul.f32 1.442695, %v3855_v10  ;;  %v3869_v8 = vmul.f32 1.442695, %v3856_v53 }
 0xba4   : > { %v3850_v52 = vpop.xlane.xlu0 %3849 }
 0xba5   : > { %6095 = vpow2.f32 %v3867_v47  ;;  %v3858_v16 = vsub.f32 %v3826_v63, %v3850_v52 }
 0xba6   : > { %6097 = vpow2.f32 %v3869_v8 }
 0xba7   : > { %v6092_v24 = vpop.eup %6091  ;;  %v3873_v19 = vmul.f32 1.442695, %v3858_v16 }
 0xba8   : > { %v3847_v56 = vpop.xlane.xlu1 %3846  ;;  %v3881_v0 = vsel %vm511_vm2, %v6092_v24, 0.0  ;;  %v3880_v38 = vpop.xlane.xlu0 %3879 }
 0xba9   : > { %6099 = vpow2.f32 %v3873_v19  ;;  %v3857_v34 = vsub.f32 %v3825_v5, %v3847_v56  ;;  %3882 = vadd.xlane.f32.xlu1 %v3881_v0 }
 0xbab   : > { %v7241_v7 = vpop.eup %6093  ;;  %v3871_v59 = vmul.f32 1.442695, %v3857_v34 }
 0xbac   : > { %v3877_v61 = vpop.xlane.xlu1 %3876  ;;  %v3884_v12 = vsel %vm511_vm2, %v7241_v7, 0.0 }
 0xbad   : > { %6101 = vpow2.f32 %v3871_v59  ;;  %3885 = vadd.xlane.f32.xlu0 %v3884_v12 }
 0xbae   : > { %6103 = vrcp.f32 %v3877_v61 }
 0xbaf   : > { %v6096_v51 = vpop.eup %6095 }
 0xbb0   : > { %v7245_v63 = vpop.eup %6097  ;;  %v3924_v15 = vpop.permute.xlu1 %3923  ;;  %v3887_v4 = vsel %vm511_vm2, %v6096_v51, 0.0 }
 0xbb1   : > { %v3929_v1 = vsel %vm1003_vm7, %v3924_v15, 0  ;;  %3888 = vadd.xlane.f32.xlu1 %v3887_v4  ;;  %v3890_v5 = vsel %vm511_vm2, %v7245_v63, 0.0 }
 0xbb2   : > { %3891 = vadd.xlane.f32.xlu0 %v3890_v5  ;;  %5838 = vmatpush3.bf16.msra.mxu0 %v3929_v1 }
 0xbb3   : > { %v7251_v32 = vpop.eup %6099  ;;  %5849 = vmatprep.subr.bf16.mxu0 %v6231_v6 }
 0xbb4   : > { %v3896_v3 = vsel %vm511_vm2, %v7251_v32, 0.0  ;;  %v4020_v49 = vpop.permute.xlu1 %4019 }
 0xbb5   : > { %v4025_v50 = vsel %vm1003_vm7, %v4020_v49, 0 }
 0xbb6   : > { %3897 = vadd.xlane.f32.xlu0 %v3896_v3 }
 0xbb7   : > { %v7256_v55 = vpop.eup %6101 }
 0xbb8   : > { %v6104_v33 = vpop.eup %6103  ;;  %v3893_v23 = vsel %vm511_vm2, %v7256_v55, 0.0 }
 0xbb9   : > { %v3907_v54 = vmul.f32 %v6104_v33, %v6090_v29  ;;  %3894 = vadd.xlane.f32.xlu1 %v3893_v23  ;;  %v4068_v29 = vpop.permute.xlu1 %4067 }
 0xbbb   : > { %v3915_v36 = vpack.c.bf16 %v3907_v54, %v3907_v54 }
 0xbbd   : > { %5840 = vmatmul.mubr.msk.bf16.vlgmr.msra.gmra.mrb[108].mxu0 %vm511_vm2, %v3915_v36  ;;  %v4164_v28 = vpop.permute.xlu1 %4163 }
 0xbbe   : > { %5850 = vmatpush3.bf16.msra.mxu0 %v4025_v50  ;;  %5851 = vmatprep.mubr.msk.bf16.mxu0 %vm6232_vm1, %v6231_v6  ;;  %v4169_v23 = vsel %vm1003_vm7, %v4164_v28, 0 }
 0xbbf   : > { %5861 = vmatprep.subr.bf16.mxu0 %v6231_v6 }
 0xbca   : > { %4259 = vrot.lane.b32.xlu1 %v6371_v21, %s6244_s29 }
 0xbcc   : > { %3971 = vrot.lane.b32.xlu0 %v6363_v18, %s6244_s29 }
 0xbd0   : > { %4115 = vrot.lane.b32.xlu0 %v6369_v20, %s6244_s29 }
 0xbd4   : > { %4211 = vrot.lane.b32.xlu0 %v6374_v22, %s6244_s29  ;;  %s5294_s29 = sshll.u32 %s6305_s25, 7  ;;  %s6167_s25 = scalar_lea.vmem %s7637_s9, 128 }
 0xbd5   : > { %s7635_s13 = scalar_lea.hbm %s7685_s6, %s5294_s29  ;;  %p6168_p11 = scmp.ne.s32.totalorder %s7637_s9, %s6167_s25 }
 0xbd7   : > { %p6169_p12 = pnand %p6168_p11, %p6322_p5 }
 0xbd9   : > { %p6170_p13 = pneg %p6169_p12 }
 0xc36   : > { %v3883_v40 = vpop.xlane.xlu1 %3882 }
 0xc37   : > { %6105 = vrcp.f32 %v3883_v40 }
 0xc38   : > { %6107 = vrcp.f32 %v3880_v38 }
 0xc3a   : > { %v3886_v10 = vpop.xlane.xlu0 %3885 }
 0xc3e   : > { %v3889_v53 = vpop.xlane.xlu1 %3888 }
 0xc3f   : > { %6109 = vrcp.f32 %v3889_v53  ;;  %v3892_v47 = vpop.xlane.xlu0 %3891 }
 0xc40   : > { %6111 = vrcp.f32 %v3886_v10 }
 0xc41   : > { %v6106_v21 = vpop.eup %6105 }
 0xc42   : > { %v3909_v8 = vmul.f32 %v6106_v21, %v6092_v24  ;;  %v6108_v18 = vpop.eup %6107 }
 0xc43   : > { %v3898_v52 = vpop.xlane.xlu0 %3897  ;;  %v3908_v20 = vmul.f32 %v6108_v18, %v7224_v48  ;;  %v4073_v48 = vsel %vm1003_vm7, %v4068_v29, 0 }
 0xc44   : > { %v3917_v16 = vpack.c.bf16 %v3909_v8, %v3909_v8 }
 0xc45   : > { %v3916_v24 = vpack.c.bf16 %v3908_v20, %v3908_v20 }
 0xc46   : > { %5852 = vmatmul.mubr.msk.bf16.vlgmr.msra.gmra.mrb[112].mxu0 %vm511_vm2, %v3917_v16  ;;  %v3895_v22 = vpop.xlane.xlu1 %3894 }
 0xc47   : > { %6113 = vrcp.f32 %v3895_v22  ;;  %v3972_v19 = vpop.permute.xlu0 %3971  ;;  %5863 = vmatprep.mubr.msk.bf16.mxu0 %vm6232_vm1, %v6231_v6 }
 0xc48   : > { %v3977_v56 = vsel %vm1003_vm7, %v3972_v19, 0  ;;  %6115 = vrcp.f32 %v3892_v47  ;;  %v487_v47 = vld [vmem:[%s7683_s4 + $0xc] sm:$0xf] }
 0xc49   : > { %v6110_v0 = vpop.eup %6109  ;;  %5844 = vmatpush3.bf16.msra.mxu1 %v3977_v56  ;;  %6117 = vrcp.f32 %v3898_v52  ;;  %v4324_v21 = vsel %vm1003_vm7, %v487_v47, 0 }
 0xc4a   : > { %v3911_v34 = vmul.f32 %v6110_v0, %v6096_v51  ;;  %5855 = vmatprep.subr.bf16.mxu1 %v6231_v6  ;;  %v6112_v59 = vpop.eup %6111  ;;  %v4260_v36 = vpop.permute.xlu1 %4259 }
 0xc4b   : > { %v4116_v61 = vpop.permute.xlu0 %4115  ;;  %v3910_v4 = vmul.f32 %v6112_v59, %v7241_v7  ;;  %v4265_v29 = vsel %vm1003_vm7, %v4260_v36, 0 }
 0xc4c   : > { %v4121_v12 = vsel %vm1003_vm7, %v4116_v61, 0  ;;  %5846 = vmatmul.mubr.msk.bf16.vlgmr.msra.gmra.mrb[132].mxu1 %vm511_vm2, %v3916_v24  ;;  %v3919_v15 = vpack.c.bf16 %v3911_v34, %v3911_v34 }
 0xc4d   : > { %5856 = vmatpush3.bf16.msra.mxu1 %v4073_v48  ;;  %5862 = vmatpush3.bf16.msra.mxu0 %v4121_v12  ;;  %v3918_v3 = vpack.c.bf16 %v3910_v4, %v3910_v4 }
 0xc4e   : > { %5873 = vmatprep.subr.bf16.mxu0 %v6231_v6  ;;  %5857 = vmatprep.mubr.msk.bf16.mxu1 %vm6232_vm1, %v6231_v6 }
 0xc4f   : > { %v4212_v51 = vpop.permute.xlu0 %4211  ;;  %5867 = vmatprep.subr.bf16.mxu1 %v6231_v6 }
 0xc50   : > { %v4217_v1 = vsel %vm1003_vm7, %v4212_v51, 0  ;;  %5864 = vmatmul.mubr.msk.bf16.vlgmr.msra.gmra.mrb[116].mxu0 %vm511_vm2, %v3919_v15 }
 0xc51   : > { %v6114_v5 = vpop.eup %6113  ;;  %5874 = vmatpush3.bf16.msra.mxu0 %v4217_v1  ;;  %5875 = vmatprep.mubr.msk.bf16.mxu0 %vm6232_vm1, %v6231_v6 }
 0xc52   : > { %v3913_v7 = vmul.f32 %v6114_v5, %v7256_v55  ;;  %v6116_v33 = vpop.eup %6115  ;;  %5926 = vmatprep.subr.msk.bf16.mxu0 %vm1003_vm7, %v487_v47 }
 0xc53   : > { %v3912_v49 = vmul.f32 %v6116_v33, %v7245_v63  ;;  %v6118_v55 = vpop.eup %6117 }
 0xc54   : > { %5858 = vmatmul.mubr.msk.bf16.vlgmr.msra.gmra.mrb[136].mxu1 %vm511_vm2, %v3918_v3  ;;  %v3921_v54 = vpack.c.bf16 %v3913_v7, %v3913_v7  ;;  %v3914_v28 = vmul.f32 %v6118_v55, %v7251_v32 }
 0xc55   : > { %5868 = vmatpush3.bf16.msra.mxu1 %v4169_v23  ;;  %5869 = vmatprep.mubr.msk.bf16.mxu1 %vm6232_vm1, %v6231_v6  ;;  %v3920_v50 = vpack.c.bf16 %v3912_v49, %v3912_v49 }
 0xc56   : > { %5879 = vmatprep.subr.bf16.mxu1 %v6231_v6  ;;  %v3922_v38 = vpack.c.bf16 %v3914_v28, %v3914_v28 }
 0xc58   : > { %5876 = vmatmul.mubr.msk.bf16.vlgmr.msra.gmra.mrb[120].mxu0 %vm511_vm2, %v3921_v54 }
 0xc59   : > { %5886 = vmatpush3.bf16.msra.mxu0 %v4324_v21 }
 0xc5c   : > { %5870 = vmatmul.mubr.msk.bf16.vlgmr.msra.gmra.mrb[140].mxu1 %vm511_vm2, %v3920_v50 }
 0xc5d   : > { %5880 = vmatpush3.bf16.msra.mxu1 %v4265_v29  ;;  %5881 = vmatprep.mubr.msk.bf16.mxu1 %vm6232_vm1, %v6231_v6 }
 0xc64   : > { %5882 = vmatmul.mubr.msk.bf16.vlgmr.msra.gmra.mrb[144].mxu1 %vm511_vm2, %v3922_v38 }
 0xc90   : > { %v7305_v63 = vpop.f32.mrb[108].mxu0 }
 0xc91   : > { %v5841_v40 = vpop.f32.mrb[109].mxu0 }
 0xc92   : > { %v3968_v10 = vpop.f32.mrb[110].mxu0 }
 0xc93   : > { %v5842_v53 = vpop.f32.mrb[111].mxu0 }
 0xc94   : > { %v5292_v53 = vld [vmem:[%s7684_s5] ss:$0 sm:$0xff] }
 0xd19   : > { %v7312_v6 = vpop.f32.mrb[112].mxu0 }
 0xd1a   : > { %v5853_v32 = vpop.f32.mrb[113].mxu0 }
 0xd1b   : > { %v4064_v8 = vpop.f32.mrb[114].mxu0 }
 0xd1c   : > { %v5854_v18 = vpop.f32.mrb[115].mxu0 }
 0xd1f   : > { %v7314_v52 = vpop.f32.mrb[132].mxu1 }
 0xd20   : > { %v4307_v16 = vpack.c.bf16 %v7314_v52, %v7305_v63  ;;  %v5847_v20 = vpop.f32.mrb[133].mxu1 }
 0xd21   : > { %v4016_v22 = vpop.f32.mrb[134].mxu1 }
 0xd22   : > { %v5848_v19 = vpop.f32.mrb[135].mxu1  ;;  %5887 = vmatprep.mubr.msk.bf16.mxu0 %vm511_vm2, %v4307_v16 }
 0xd23   : > { %v7319_v56 = vpop.f32.mrb[116].mxu0 }
 0xd24   : > { %7719 = vst [vmem:[#allocation11_spill] sm:$0xff] %v7319_v56  ;;  %v5865_v0 = vpop.f32.mrb[117].mxu0 }
 0xd25   : > { %v4160_v34 = vpop.f32.mrb[118].mxu0 }
 0xd26   : > { %v5866_v24 = vpop.f32.mrb[119].mxu0 }
 0xd27   : > { %v7321_v59 = vpop.f32.mrb[136].mxu1 }
 0xd28   : > { %v4308_v61 = vpack.c.bf16 %v7321_v59, %v7312_v6  ;;  %v5859_v48 = vpop.f32.mrb[137].mxu1 }
 0xd29   : > { %v4112_v12 = vpop.f32.mrb[138].mxu1 }
 0xd2a   : > { %v5860_v15 = vpop.f32.mrb[139].mxu1  ;;  %5888 = vmatmul.mubr.msk.bf16.vlgmr.msra.gmra.mrb[64].mxu0 %vm511_vm2, %v4308_v61 }
 0xd2b   : > { %v7326_v4 = vpop.f32.mrb[120].mxu0 }
 0xd2c   : > { %v5877_v51 = vpop.f32.mrb[121].mxu0 }
 0xd2d   : > { %v4256_v1 = vpop.f32.mrb[122].mxu0 }
 0xd2e   : > { %v5878_v5 = vpop.f32.mrb[123].mxu0 }
 0xd2f   : > { %v7328_v7 = vpop.f32.mrb[140].mxu1 }
 0xd30   : > { %7720 = vst [vmem:[#allocation12_spill] sm:$0xff] %v7328_v7  ;;  %v4309_v3 = vpack.c.bf16 %v7328_v7, %v7319_v56  ;;  %v5871_v33 = vpop.f32.mrb[141].mxu1 }
 0xd31   : > { %v4208_v23 = vpop.f32.mrb[142].mxu1 }
 0xd32   : > { %v5872_v54 = vpop.f32.mrb[143].mxu1  ;;  %5891 = vmatprep.mubr.msk.bf16.mxu0 %vm511_vm2, %v4309_v3 }
 0xd37   : > { %v7333_v49 = vpop.f32.mrb[144].mxu1 }
 0xd38   : > { %7721 = vst [vmem:[#allocation13_spill] sm:$0xff] %v7333_v49  ;;  %v4310_v36 = vpack.c.bf16 %v7333_v49, %v7326_v4  ;;  %v5883_v50 = vpop.f32.mrb[145].mxu1 }
 0xd39   : > { %v4304_v55 = vpop.f32.mrb[146].mxu1 }
 0xd3a   : > { %v5884_v29 = vpop.f32.mrb[147].mxu1  ;;  %5892 = vmatmul.mubr.msk.bf16.gmra.mrb[68].mxu0 %vm511_vm2, %v4310_v36 }
 0xdfd   : > { %v5889_v28 = vpop.f32.mrb[64].mxu0 }
 0xdfe   : > { %6119 = vtanh.f32 %v5889_v28  ;;  %v4360_v38 = vpop.f32.mrb[65].mxu0 }
 0xdff   : > { %6121 = vtanh.f32 %v4360_v38  ;;  %v5890_v40 = vpop.f32.mrb[66].mxu0  ;;  %v4447_v38 = vld [vmem:[%s7353_s17 + $0x10] sm:$0xff] }
 0xe00   : > { %v4363_v10 = vpop.f32.mrb[67].mxu0  ;;  %vm4455_vm1 = vcmp.eq.f32.partialorder %v4447_v38, 0.0 }
 0xe01   : > { %6123 = vtanh.f32 %v4363_v10  ;;  %v7360_v10 = vld [vmem:[%s7353_s17] sm:$0xff] }
 0xe02   : > { %6125 = vtanh.f32 %v5890_v40  ;;  %v7357_v40 = vld [vmem:[%s7353_s17 + $0x8] sm:$0xff]  ;;  %vm4453_vm8 = vcmp.eq.f32.partialorder %v7360_v10, 0.0 }
 0xe08   : > { %v6120_v47 = vpop.eup %6119 }
 0xe09   : > { %v6122_v21 = vpop.eup %6121  ;;  %v4415_v32 = vmul.f32 %v6120_v47, %v5292_v53 }
 0xe0a   : > { %v4413_v16 = vmul.f32 %v6122_v21, %v5292_v53 }
 0xe0b   : > { %v6124_v8 = vpop.eup %6123  ;;  %v4427_v18 = vsel %vm338_vm0, %v4415_v32, 0.0 }
 0xe0c   : > { %v6126_v20 = vpop.eup %6125  ;;  %4428 = vadd.xlane.f32.xlu0 %v4427_v18  ;;  %v4414_v22 = vmul.f32 %v6124_v8, %v5292_v53  ;;  %v4421_v61 = vsel %vm338_vm0, %v4413_v16, 0.0  ;;  %v7366_v18 = vld [vmem:[%s7353_s17 + $0x18] sm:$0xff] }
 0xe0d   : > { %v5893_v19 = vpop.f32.mrb[68].mxu0  ;;  %v4416_v48 = vmul.f32 %v6126_v20, %v5292_v53  ;;  %vm4456_vm9 = vcmp.eq.f32.partialorder %v7366_v18, 0.0 }
 0xe0e   : > { %6127 = vtanh.f32 %v5893_v19  ;;  %v4376_v0 = vpop.f32.mrb[69].mxu0  ;;  %v4424_v34 = vsel %vm338_vm0, %v4414_v22, 0.0 }
 0xe0f   : > { %6129 = vtanh.f32 %v4376_v0  ;;  %4425 = vadd.xlane.f32.xlu1 %v4424_v34  ;;  %v5894_v24 = vpop.f32.mrb[70].mxu0  ;;  %v4430_v15 = vsel %vm338_vm0, %v4416_v48, 0.0 }
 0xe10   : > { %6131 = vtanh.f32 %v5894_v24  ;;  %4422 = vadd.xlane.f32.xlu0 %v4421_v61  ;;  %v4379_v12 = vpop.f32.mrb[71].mxu0 }
 0xe11   : > { %6133 = vtanh.f32 %v4379_v12 }
 0xe14   : > { %4431 = vadd.xlane.f32.xlu0 %v4430_v15 }
 0xe18   : > { %v6128_v51 = vpop.eup %6127 }
 0xe19   : > { %v6130_v1 = vpop.eup %6129  ;;  %v4419_v36 = vmul.f32 %v6128_v51, %v5292_v53 }
 0xe1a   : > { %v6132_v5 = vpop.eup %6131  ;;  %v4417_v3 = vmul.f32 %v6130_v1, %v5292_v53 }
 0xe1b   : > { %v6134_v33 = vpop.eup %6133  ;;  %v4420_v55 = vmul.f32 %v6132_v5, %v5292_v53  ;;  %v4439_v29 = vsel %vm338_vm0, %v4419_v36, 0.0 }
 0xe1c   : > { %v4433_v23 = vsel %vm338_vm0, %v4417_v3, 0.0  ;;  %v4418_v54 = vmul.f32 %v6134_v33, %v5292_v53 }
 0xe1d   : > { %4434 = vadd.xlane.f32.xlu1 %v4433_v23  ;;  %v4442_v28 = vsel %vm338_vm0, %v4420_v55, 0.0  ;;  %v7373_v55 = vld [vmem:[%s7353_s17 + $0x20] sm:$0xff] }
 0xe1e   : > { %v4436_v50 = vsel %vm338_vm0, %v4418_v54, 0.0  ;;  %vm4454_vm0 = vcmp.eq.f32.partialorder %v7357_v40, 0.0  ;;  %vm4457_vm10 = vcmp.eq.f32.partialorder %v7373_v55, 0.0 }
 0xe1f   : > { %4437 = vadd.xlane.f32.xlu0 %v4436_v50 }
 0xe21   : > { %4440 = vadd.xlane.f32.xlu1 %v4439_v29 }
 0xe23   : > { %4443 = vadd.xlane.f32.xlu0 %v4442_v28 }
 0xe99   : > { %v4429_v53 = vpop.xlane.xlu0 %4428 }
 0xe9a   : > { %v4463_v47 = vsel %vm4455_vm1, -1e+09, %v4429_v53 }
 0xe9b   : > { %v4484_v21 = vsel %vm4469_vm6, %v4463_v47, -inf }
 0xe9c   : > { %v4485_v32 = vrot.slane %v4484_v21, 4  ;;  %v4426_v8 = vpop.xlane.xlu1 %4425 }
 0xe9d   : > { %v4462_v16 = vsel %vm4454_vm0, -1e+09, %v4426_v8  ;;  %v4423_v20 = vpop.xlane.xlu0 %4422  ;;  %vm4822_vm0 = vcmask 1041409  }
 0xe9e   : > { %v4486_v22 = vmax.f32 %v4484_v21, %v4485_v32  ;;  %v4477_v19 = vsel %vm4469_vm6, %v4462_v16, -inf  ;;  %v4461_v0 = vsel %vm4453_vm8, -1e+09, %v4423_v20  ;;  %v7376_v32 = vld [vmem:[%s7353_s17 + $0x28] sm:$0xff]  ;;  %vm4824_vm8 = vcmask 1042434  }
 0xe9f   : > { %v4478_v34 = vrot.slane %v4477_v19, 4  ;;  %v4470_v24 = vsel %vm4469_vm6, %v4461_v0, -inf  ;;  %vm4458_vm11 = vcmp.eq.f32.partialorder %v7376_v32, 0.0 }
 0xea0   : > { %v4487_v61 = vrot.slane %v4486_v22, 2  ;;  %v4471_v48 = vrot.slane %v4470_v24, 4 }
 0xea1   : > { %v4479_v12 = vmax.f32 %v4477_v19, %v4478_v34  ;;  %v4432_v15 = vpop.xlane.xlu0 %4431  ;;  %v7380_v19 = vld [vmem:[%s7353_s17 + $0x30] sm:$0xff] }
 0xea2   : > { %v4488_v51 = vmax.f32 %v4486_v22, %v4487_v61  ;;  %v4472_v1 = vmax.f32 %v4470_v24, %v4471_v48  ;;  %v4464_v5 = vsel %vm4456_vm9, -1e+09, %v4432_v15  ;;  %vm4459_vm12 = vcmp.eq.f32.partialorder %v7380_v19, 0.0 }
 0xea3   : > { %v4480_v3 = vrot.slane %v4479_v12, 2  ;;  %v4491_v33 = vsel %vm4469_vm6, %v4464_v5, -inf  ;;  %vm4826_vm9 = vcmask 1043459  }
 0xea4   : > { %v4489_v23 = vrot.slane %v4488_v51, 1  ;;  %v4473_v54 = vrot.slane %v4472_v1, 2  ;;  %v4492_v36 = vrot.slane %v4491_v33, 4 }
 0xea5   : > { %v4481_v50 = vmax.f32 %v4479_v12, %v4480_v3 }
 0xea6   : > { %v4490_v29 = vmax.f32 %v4488_v51, %v4489_v23  ;;  %v4474_v28 = vmax.f32 %v4472_v1, %v4473_v54  ;;  %v4493_v53 = vmax.f32 %v4491_v33, %v4492_v36  ;;  %v7387_v1 = vld [vmem:[%s7353_s17 + $0x38] sm:$0xff]  ;;  %v4636_v54 = vsel %vm4469_vm6, %v4447_v38, 0.0  ;;  %s6173_s17 = scalar_lea.vmem %s6172_s16, 256 }
 0xea7   : > { %v4482_v21 = vrot.slane %v4481_v50, 1  ;;  %vm4460_vm13 = vcmp.eq.f32.partialorder %v7387_v1, 0.0  ;;  %v4629_v38 = vsel %vm4469_vm6, %v7357_v40, 0.0  ;;  %v4637_v40 = vrot.slane %v4636_v54, 4  ;;  %p6175_p1 = scmp.lt.s32.totalorder %s6173_s17, %s6167_s25 }
 0xea8   : > { %v4528_v8 = vsub.f32 %v4463_v47, %v4490_v29  ;;  %v4475_v20 = vrot.slane %v4474_v28, 1  ;;  %v4494_v22 = vrot.slane %v4493_v53, 2 }
 0xea9   : > { %v4483_v34 = vmax.f32 %v4481_v50, %v4482_v21  ;;  %p6176_p2 = por %p6175_p1, %p6174_p0 }
 0xeaa   : > { %v4538_v24 = vmul.f32 1.442695, %v4528_v8  ;;  %v4476_v61 = vmax.f32 %v4474_v28, %v4475_v20  ;;  %v4495_v48 = vmax.f32 %v4493_v53, %v4494_v22  ;;  %v4435_v12 = vpop.xlane.xlu1 %4434 }
 0xeab   : > { %v4527_v15 = vsub.f32 %v4462_v16, %v4483_v34  ;;  %v7383_v51 = vsel %vm4457_vm10, -1e+09, %v4435_v12  ;;  %vm4828_vm10 = vcmask 1044484   ;;  %p6177_p3 = pnand %p6176_p2, %p6170_p13 }
 0xeac   : > { %6135 = vpow2.f32 %v4538_v24  ;;  %v4526_v47 = vsub.f32 %v4461_v0, %v4476_v61  ;;  %v4496_v3 = vrot.slane %v4495_v48, 1  ;;  %v4498_v33 = vsel %vm4469_vm6, %v7383_v51, -inf  ;;  %v4438_v23 = vpop.xlane.xlu0 %4437 }
 0xead   : > { %v4536_v36 = vmul.f32 1.442695, %v4527_v15  ;;  %v4499_v50 = vrot.slane %v4498_v33, 4  ;;  %v7392_v29 = vsel %vm4458_vm11, -1e+09, %v4438_v23  ;;  %vm4830_vm11 = vcmask 1045509  }
 0xeae   : > { %v4534_v16 = vmul.f32 1.442695, %v4526_v47  ;;  %v4497_v28 = vmax.f32 %v4495_v48, %v4496_v3  ;;  %v4505_v53 = vsel %vm4469_vm6, %v7392_v29, -inf  ;;  %v4441_v21 = vpop.xlane.xlu1 %4440 }
 0xeaf   : > { %6137 = vpow2.f32 %v4536_v36  ;;  %v4500_v0 = vmax.f32 %v4498_v33, %v4499_v50  ;;  %v4506_v8 = vrot.slane %v4505_v53, 4  ;;  %v7399_v20 = vsel %vm4459_vm12, -1e+09, %v4441_v21 }
 0xeb0   : > { %6139 = vpow2.f32 %v4534_v16  ;;  %v4529_v22 = vsub.f32 %v4464_v5, %v4497_v28  ;;  %v4512_v34 = vsel %vm4469_vm6, %v7399_v20, -inf  ;;  %v4444_v24 = vpop.xlane.xlu0 %4443  ;;  %v4630_v16 = vrot.slane %v4629_v38, 4 }
 0xeb1   : > { %v4501_v61 = vrot.slane %v4500_v0, 2  ;;  %v4507_v48 = vmax.f32 %v4505_v53, %v4506_v8  ;;  %v4513_v12 = vrot.slane %v4512_v34, 4  ;;  %v7405_v15 = vsel %vm4460_vm13, -1e+09, %v4444_v24 }
 0xeb2   : > { %v4540_v47 = vmul.f32 1.442695, %v4529_v22  ;;  %v4519_v3 = vsel %vm4469_vm6, %v7405_v15, -inf  ;;  %v4622_v53 = vsel %vm4469_vm6, %v7360_v10, 0.0  ;;  %vm4832_vm12 = vcmask 1046534  }
 0xeb3   : > { %v4502_v33 = vmax.f32 %v4500_v0, %v4501_v61  ;;  %v4508_v23 = vrot.slane %v4507_v48, 2  ;;  %v4514_v36 = vmax.f32 %v4512_v34, %v4513_v12  ;;  %v4520_v50 = vrot.slane %v4519_v3, 4 }
 0xeb4   : > { %6141 = vpow2.f32 %v4540_v47  ;;  %v4638_v34 = vadd.f32 %v4637_v40, %v4636_v54  ;;  %v4631_v12 = vadd.f32 %v4630_v16, %v4629_v38  ;;  %vm4834_vm13 = vcmask 1047559  }
 0xeb5   : > { %v4503_v5 = vrot.slane %v4502_v33, 1  ;;  %v4509_v28 = vmax.f32 %v4507_v48, %v4508_v23  ;;  %v4515_v21 = vrot.slane %v4514_v36, 2  ;;  %v4521_v49 = vmax.f32 %v4519_v3, %v4520_v50 }
 0xeb6   : > { %v7409_v27 = vpop.eup %6135  ;;  %v4623_v48 = vrot.slane %v4622_v53, 4  ;;  %v4632_v45 = vrot.slane %v4631_v12, 2 }
 0xeb7   : > { %v4564_v8 = vsel %vm4469_vm6, %v7409_v27, 0.0  ;;  %v4504_v22 = vmax.f32 %v4502_v33, %v4503_v5  ;;  %v4510_v0 = vrot.slane %v4509_v28, 1  ;;  %v4516_v24 = vmax.f32 %v4514_v36, %v4515_v21 }
 0xeb8   : > { %v4565_v61 = vrot.slane %v4564_v8, 4  ;;  %v4522_v26 = vrot.slane %v4521_v49, 2  ;;  %v4643_v33 = vsel %vm4469_vm6, %v7366_v18, 0.0 }
 0xeb9   : > { %v7415_v47 = vpop.eup %6137  ;;  %v4530_v3 = vsub.f32 %v7383_v51, %v4504_v22  ;;  %v4511_v23 = vmax.f32 %v4509_v28, %v4510_v0  ;;  %v4517_v50 = vrot.slane %v4516_v24, 1 }
 0xeba   : > { %v7418_v31 = vpop.eup %6139  ;;  %v4566_v10 = vadd.f32 %v4565_v61, %v4564_v8  ;;  %v4557_v7 = vsel %vm4469_vm6, %v7415_v47, 0.0  ;;  %v4523_v54 = vmax.f32 %v4521_v49, %v4522_v26  ;;  %v4624_v8 = vadd.f32 %v4623_v48, %v4622_v53 }
 0xebb   : > { %v4558_v36 = vrot.slane %v4557_v7, 4  ;;  %v4550_v38 = vsel %vm4469_vm6, %v7418_v31, 0.0  ;;  %v4542_v40 = vmul.f32 1.442695, %v4530_v3  ;;  %v4531_v16 = vsub.f32 %v7392_v29, %v4511_v23 }
 0xebc   : > { %v4567_v51 = vrot.slane %v4566_v10, 2  ;;  %v4551_v5 = vrot.slane %v4550_v38, 4  ;;  %v4518_v28 = vmax.f32 %v4516_v24, %v4517_v50  ;;  %v4524_v21 = vrot.slane %v4523_v54, 1 }
 0xebd   : > { %v4559_v22 = vadd.f32 %v4558_v36, %v4557_v7  ;;  %6143 = vpow2.f32 %v4542_v40  ;;  %v4544_v0 = vmul.f32 1.442695, %v4531_v16  ;;  %v4625_v48 = vrot.slane %v4624_v8, 2 }
 0xebe   : > { %v7427_v61 = vpop.eup %6141  ;;  %v4568_v46 = vadd.f32 %v4567_v51, %v4566_v10  ;;  %v4552_v18 = vadd.f32 %v4551_v5, %v4550_v38  ;;  %v4532_v26 = vsub.f32 %v7399_v20, %v4518_v28  ;;  %v4525_v49 = vmax.f32 %v4523_v54, %v4524_v21 }
 0xebf   : > { %v4560_v9 = vrot.slane %v4559_v22, 2  ;;  %v4571_v29 = vsel %vm4469_vm6, %v7427_v61, 0.0  ;;  %6145 = vpow2.f32 %v4544_v0  ;;  %v4644_v50 = vrot.slane %v4643_v33, 4 }
 0xec0   : > { %v4569_v3 = vrot.slane %v4568_v46, 1  ;;  %v4553_v24 = vrot.slane %v4552_v18, 2  ;;  %v4572_v23 = vrot.slane %v4571_v29, 4  ;;  %v4546_v7 = vmul.f32 1.442695, %v4532_v26 }
 0xec1   : > { %v4561_v53 = vadd.f32 %v4560_v9, %v4559_v22  ;;  %v4533_v36 = vsub.f32 %v7405_v15, %v4525_v49  ;;  %v4639_v54 = vrot.slane %v4638_v34, 2  ;;  %v4633_v51 = vadd.f32 %v4632_v45, %v4631_v12 }
 0xec2   : > { %v4554_v10 = vadd.f32 %v4553_v24, %v4552_v18  ;;  %v4573_v38 = vadd.f32 %v4572_v23, %v4571_v29  ;;  %6147 = vpow2.f32 %v4546_v7  ;;  %v4570_v20 = vadd.f32 %v4569_v3, %v4568_v46 }
 0xec3   : > { %v4562_v40 = vrot.slane %v4561_v53, 1  ;;  %v4548_v16 = vmul.f32 1.442695, %v4533_v36  ;;  %v4626_v21 = vadd.f32 %v4625_v48, %v4624_v8  ;;  %v4645_v56 = vadd.f32 %v4644_v50, %v4643_v33 }
 0xec4   : > { %v4555_v5 = vrot.slane %v4554_v10, 1  ;;  %v4574_v28 = vrot.slane %v4573_v38, 2  ;;  %v4640_v15 = vadd.f32 %v4639_v54, %v4638_v34  ;;  %v4634_v49 = vrot.slane %v4633_v51, 1 }
 0xec5   : > { %6149 = vpow2.f32 %v4548_v16  ;;  %v4563_v0 = vadd.f32 %v4562_v40, %v4561_v53  ;;  %v4664_v8 = vsel %vm4469_vm6, %v7380_v19, 0.0  ;;  %v4627_v33 = vrot.slane %v4626_v21, 1 }
 0xec6   : > { %v4575_v26 = vadd.f32 %v4574_v28, %v4573_v38  ;;  %v4556_v9 = vadd.f32 %v4555_v5, %v4554_v10  ;;  %6151 = vrcp.f32 %v4570_v20  ;;  %v4646_v29 = vrot.slane %v4645_v56, 2 }
 0xec7   : > { %v7433_v22 = vpop.eup %6143  ;;  %6153 = vrcp.f32 %v4563_v0  ;;  %v4641_v7 = vrot.slane %v4640_v15, 1  ;;  %v4650_v48 = vsel %vm4469_vm6, %v7373_v55, 0.0  ;;  %v4665_v50 = vrot.slane %v4664_v8, 4 }
 0xec8   : > { %v4576_v18 = vrot.slane %v4575_v26, 1  ;;  %v4578_v46 = vsel %vm4469_vm6, %v7433_v22, 0.0  ;;  %6155 = vrcp.f32 %v4556_v9  ;;  %v4635_v36 = vadd.f32 %v4634_v49, %v4633_v51 }
 0xec9   : > { %v7437_v45 = vpop.eup %6145  ;;  %v4579_v12 = vrot.slane %v4578_v46, 4  ;;  %v4628_v20 = vadd.f32 %v4627_v33, %v4626_v21  ;;  %v4647_v54 = vadd.f32 %v4646_v29, %v4645_v56  ;;  %v4651_v5 = vrot.slane %v4650_v48, 4 }
 0xeca   : > { %v4585_v3 = vsel %vm4469_vm6, %v7437_v45, 0.0  ;;  %v4577_v24 = vadd.f32 %v4576_v18, %v4575_v26  ;;  %v4642_v26 = vadd.f32 %v4641_v7, %v4640_v15  ;;  %v4657_v55 = vsel %vm4469_vm6, %v7376_v32, 0.0 }
 0xecb   : > { %v4580_v34 = vadd.f32 %v4579_v12, %v4578_v46  ;;  %v4586_v23 = vrot.slane %v4585_v3, 4  ;;  %v4666_v51 = vadd.f32 %v4665_v50, %v4664_v8  ;;  %vm4679_vm14 = vcmp.eq.f32.partialorder %v4635_v36, 0.0 }
 0xecc   : > { %v7443_v53 = vpop.eup %6147  ;;  %6157 = vrcp.f32 %v4577_v24  ;;  %vm4678_vm15 = vcmp.eq.f32.partialorder %v4628_v20, 0.0  ;;  %v4648_v15 = vrot.slane %v4647_v54, 1  ;;  %v4652_v24 = vadd.f32 %v4651_v5, %v4650_v48 }
 0xecd   : > { %v4581_v10 = vrot.slane %v4580_v34, 2  ;;  %v4587_v38 = vadd.f32 %v4586_v23, %v4585_v3  ;;  %v4592_v19 = vsel %vm4469_vm6, %v7443_v53, 0.0  ;;  %v4667_v8 = vrot.slane %v4666_v51, 2 }
 0xece   : > { %v4593_v40 = vrot.slane %v4592_v19, 4  ;;  %v4671_v50 = vsel %vm4469_vm6, %v7387_v1, 0.0  ;;  %vm4680_vm3 = vcmp.eq.f32.partialorder %v4642_v26, 0.0  ;;  %v4649_v5 = vadd.f32 %v4648_v15, %v4647_v54 }
 0xecf   : > { %v7449_v16 = vpop.eup %6149  ;;  %v4582_v28 = vadd.f32 %v4581_v10, %v4580_v34  ;;  %v4588_v0 = vrot.slane %v4587_v38, 2  ;;  %v4658_v34 = vrot.slane %v4657_v55, 4 }
 0xed0   : > { %v6152_v9 = vpop.eup %6151  ;;  %v4594_v18 = vadd.f32 %v4593_v40, %v4592_v19  ;;  %v4599_v46 = vsel %vm4469_vm6, %v7449_v16, 0.0  ;;  %vm4681_vm4 = vcmp.eq.f32.partialorder %v4649_v5, 0.0 }
 0xed1   : > { %v6154_v49 = vpop.eup %6153  ;;  %v4583_v12 = vrot.slane %v4582_v28, 1  ;;  %v4600_v21 = vrot.slane %v4599_v46, 4  ;;  %v4589_v33 = vadd.f32 %v4588_v0, %v4587_v38  ;;  %v4616_v38 = vmul.f32 %v6152_v9, %v7409_v27 }
 0xed2   : > { %v6156_v56 = vpop.eup %6155  ;;  %v4595_v29 = vrot.slane %v4594_v18, 2  ;;  %v4615_v3 = vmul.f32 %v6154_v49, %v7415_v47  ;;  %v4668_v49 = vadd.f32 %v4667_v8, %v4666_v51 }
 0xed3   : > { %v4601_v23 = vadd.f32 %v4600_v21, %v4599_v46  ;;  %v4614_v32 = vmul.f32 %v6156_v56, %v7418_v31  ;;  %v4584_v40 = vadd.f32 %v4583_v12, %v4582_v28  ;;  %v4590_v0 = vrot.slane %v4589_v33, 1 }
 0xed4   : > { %v4596_v7 = vadd.f32 %v4595_v29, %v4594_v18  ;;  %v4703_v10 = vsel %vm4679_vm14, 0.0, %v4615_v3  ;;  %v4653_v31 = vrot.slane %v4652_v24, 2  ;;  %v4659_v18 = vadd.f32 %v4658_v34, %v4657_v55 }
 0xed5   : > { %v4602_v19 = vrot.slane %v4601_v23, 2  ;;  %4717 = vperm.xlu0 %5984, %v4703_v10   ;;  %v4702_v36 = vsel %vm4678_vm15, 0.0, %v4614_v32  ;;  %v4672_v21 = vrot.slane %v4671_v50, 4  ;;  %v4704_v56 = vsel %vm4680_vm3, 0.0, %v4616_v38 }
 0xed6   : > { %v6158_v47 = vpop.eup %6157  ;;  %v4597_v48 = vrot.slane %v4596_v7, 1  ;;  %4712 = vperm.xlu1 %5983, %v4702_v36   ;;  %6159 = vrcp.f32 %v4584_v40  ;;  %v4591_v27 = vadd.f32 %v4590_v0, %v4589_v33  ;;  %v4654_v28 = vadd.f32 %v4653_v31, %v4652_v24 }
 0xed7   : > { %v4603_v46 = vadd.f32 %v4602_v19, %v4601_v23  ;;  %v4617_v29 = vmul.f32 %v6158_v47, %v7427_v61  ;;  %v4660_v9 = vrot.slane %v4659_v18, 2  ;;  %v4673_v12 = vadd.f32 %v4672_v21, %v4671_v50 }
 0xed8   : > { %v4598_v1 = vadd.f32 %v4597_v48, %v4596_v7  ;;  %v4669_v26 = vrot.slane %v4668_v49, 1  ;;  %v4655_v34 = vrot.slane %v4654_v28, 1  ;;  %vm4920_vm14 = vcmask 130112  }
 0xed9   : > { %v4604_v20 = vrot.slane %v4603_v46, 1  ;;  %v4705_v54 = vsel %vm4681_vm4, 0.0, %v4617_v29  ;;  %v4661_v51 = vadd.f32 %v4660_v9, %v4659_v18  ;;  %v4674_v3 = vrot.slane %v4673_v12, 2 }
 0xeda   : > { %4722 = vperm.xlu1 %5983, %v4704_v56   ;;  %6161 = vrcp.f32 %v4598_v1  ;;  %v4670_v15 = vadd.f32 %v4669_v26, %v4668_v49  ;;  %v4656_v8 = vadd.f32 %v4655_v34, %v4654_v28  ;;  %vm5004_vm15 = vcmask 195712  }
 0xedb   : > { %6163 = vrcp.f32 %v4591_v27  ;;  %v4605_v55 = vadd.f32 %v4604_v20, %v4603_v46  ;;  %v4675_v32 = vadd.f32 %v4674_v3, %v4673_v12  ;;  %v4662_v7 = vrot.slane %v4661_v51, 1 }
 0xedc   : > { %vm4684_vm5 = vcmp.eq.f32.partialorder %v4670_v15, 0.0  ;;  %vm4682_vm7 = vcmp.eq.f32.partialorder %v4656_v8, 0.0  ;;  %vm5088_vm3 = vcmask 261312  }
 0xedd   : > { %6165 = vrcp.f32 %v4605_v55  ;;  %v4663_v19 = vadd.f32 %v4662_v7, %v4661_v51  ;;  %v4676_v36 = vrot.slane %v4675_v32, 1 }
 0xede   : > { %4727 = vperm.xlu1 %5983, %v4705_v54  }
 0xedf   : > { %vm4683_vm1 = vcmp.eq.f32.partialorder %v4663_v19, 0.0  ;;  %v4677_v0 = vadd.f32 %v4676_v36, %v4675_v32 }
 0xee0   : > { %v6160_v61 = vpop.eup %6159 }
 0xee1   : > { %v4618_v50 = vmul.f32 %v6160_v61, %v7433_v22  ;;  %vm4685_vm6 = vcmp.eq.f32.partialorder %v4677_v0, 0.0 }
 0xee3   : > { %v4706_v38 = vsel %vm4682_vm7, 0.0, %v4618_v50 }
 0xee4   : > { %v6162_v23 = vpop.eup %6161 }
 0xee5   : > { %v4620_v33 = vmul.f32 %v6162_v23, %v7443_v53  ;;  %v6164_v10 = vpop.eup %6163 }
 0xee6   : > { %v4619_v40 = vmul.f32 %v6164_v10, %v7437_v45 }
 0xee7   : > { %v4708_v24 = vsel %vm4684_vm5, 0.0, %v4620_v33  ;;  %v6166_v47 = vpop.eup %6165 }
 0xee8   : > { %4742 = vperm.xlu1 %5983, %v4708_v24   ;;  %v4707_v48 = vsel %vm4683_vm1, 0.0, %v4619_v40  ;;  %v4621_v5 = vmul.f32 %v6166_v47, %v7449_v16 }
 0xeea   : > { %v4709_v53 = vsel %vm4685_vm6, 0.0, %v4621_v5 }
 0xeec   : > { %4732 = vperm.xlu1 %5983, %v4706_v38  }
 0xef0   : > { %4737 = vperm.xlu1 %5983, %v4707_v48  }
 0xef4   : > { %4747 = vperm.xlu1 %5983, %v4709_v53  }
 0xf54   : > { %v4718_v22 = vpop.permute.xlu0 %4717 }
 0xf55   : > { %v4751_v31 = vmul.f32 %v4718_v22, %v6713_v43  ;;  %v4839_v46 = vmul.f32 %v4718_v22, %v6917_v37  ;;  %v4923_v18 = vmul.f32 %v4718_v22, %v7137_v44  ;;  %v5007_v45 = vmul.f32 %v4718_v22, %v7314_v52  ;;  %v4713_v49 = vpop.permute.xlu1 %4712 }
 0xf56   : > { %v4750_v21 = vmul.f32 %v4713_v49, %v6709_v39  ;;  %v4838_v1 = vmul.f32 %v4713_v49, %v6913_v60  ;;  %v4922_v16 = vmul.f32 %v4713_v49, %v7160_v35  ;;  %v5006_v56 = vmul.f32 %v4713_v49, %v7305_v63 }
 0xf57   : > { %v4765_v29 = vsel %vm511_vm2, %v4751_v31, 0.0  ;;  %v4853_v20 = vsel %vm511_vm2, %v4839_v46, 0.0  ;;  %v4937_v43 = vsel %vm511_vm2, %v4923_v18, 0.0  ;;  %v5021_v37 = vsel %vm511_vm2, %v5007_v45, 0.0 }
 0xf58   : > { %v4766_v44 = vrot.slane %v4765_v29, 4  ;;  %v4854_v27 = vrot.slane %v4853_v20, 4  ;;  %v4938_v52 = vrot.slane %v4937_v43, 4  ;;  %v5022_v28 = vrot.slane %v5021_v37, 4 }
 0xf59   : > { %v4758_v39 = vsel %vm511_vm2, %v4750_v21, 0.0  ;;  %v4846_v60 = vsel %vm511_vm2, %v4838_v1, 0.0  ;;  %v4930_v35 = vsel %vm511_vm2, %v4922_v16, 0.0  ;;  %v5014_v63 = vsel %vm511_vm2, %v5006_v56, 0.0  ;;  %v4723_v48 = vpop.permute.xlu1 %4722 }
 0xf5a   : > { %v4767_v9 = vadd.f32 %v4766_v44, %v4765_v29  ;;  %v4855_v12 = vadd.f32 %v4854_v27, %v4853_v20  ;;  %v4939_v26 = vadd.f32 %v4938_v52, %v4937_v43  ;;  %v5023_v54 = vadd.f32 %v5022_v28, %v5021_v37 }
 0xf5b   : > { %v4759_v55 = vrot.slane %v4758_v39, 4  ;;  %v4847_v51 = vrot.slane %v4846_v60, 4  ;;  %v4931_v3 = vrot.slane %v4930_v35, 4  ;;  %v5015_v15 = vrot.slane %v5014_v63, 4 }
 0xf5c   : > { %v4768_v34 = vrot.slane %v4767_v9, 2  ;;  %v4856_v61 = vrot.slane %v4855_v12, 2  ;;  %v4940_v23 = vrot.slane %v4939_v26, 2  ;;  %v5024_v32 = vrot.slane %v5023_v54, 2 }
 0xf5d   : > { %v4760_v8 = vadd.f32 %v4759_v55, %v4758_v39  ;;  %v4848_v7 = vadd.f32 %v4847_v51, %v4846_v60  ;;  %v4932_v33 = vadd.f32 %v4931_v3, %v4930_v35  ;;  %v5016_v24 = vadd.f32 %v5015_v15, %v5014_v63  ;;  %v4728_v63 = vpop.permute.xlu1 %4727 }
 0xf5e   : > { %v4769_v50 = vadd.f32 %v4768_v34, %v4767_v9  ;;  %v4857_v10 = vadd.f32 %v4856_v61, %v4855_v12  ;;  %v4941_v19 = vadd.f32 %v4940_v23, %v4939_v26  ;;  %v5025_v36 = vadd.f32 %v5024_v32, %v5023_v54 }
 0xf5f   : > { %v4761_v38 = vrot.slane %v4760_v8, 2  ;;  %v4849_v40 = vrot.slane %v4848_v7, 2  ;;  %v4933_v47 = vrot.slane %v4932_v33, 2  ;;  %v5017_v0 = vrot.slane %v5016_v24, 2 }
 0xf60   : > { %v4770_v5 = vrot.slane %v4769_v50, 1  ;;  %v4858_v53 = vrot.slane %v4857_v10, 1  ;;  %v4942_v22 = vrot.slane %v4941_v19, 1  ;;  %v5026_v31 = vrot.slane %v5025_v36, 1 }
 0xf61   : > { %v4762_v46 = vadd.f32 %v4761_v38, %v4760_v8  ;;  %v4850_v18 = vadd.f32 %v4849_v40, %v4848_v7  ;;  %v4934_v45 = vadd.f32 %v4933_v47, %v4932_v33  ;;  %v5018_v49 = vadd.f32 %v5017_v0, %v5016_v24 }
 0xf62   : > { %v4771_v21 = vadd.f32 %v4770_v5, %v4769_v50  ;;  %v7482_v1 = vadd.f32 %v4858_v53, %v4857_v10  ;;  %v7484_v16 = vadd.f32 %v4942_v22, %v4941_v19  ;;  %v7486_v56 = vadd.f32 %v5026_v31, %v5025_v36 }
 0xf63   : > { %v4763_v29 = vrot.slane %v4762_v46, 1  ;;  %v4851_v20 = vrot.slane %v4850_v18, 1  ;;  %v4935_v43 = vrot.slane %v4934_v45, 1  ;;  %v4752_v37 = vmul.f32 %v4723_v48, %v6711_v42 }
 0xf64   : > { %v4840_v44 = vmul.f32 %v4723_v48, %v6915_v17  ;;  %v4924_v27 = vmul.f32 %v4723_v48, %v7167_v11  ;;  %v5008_v52 = vmul.f32 %v4723_v48, %v7312_v6  ;;  %v5019_v35 = vrot.slane %v5018_v49, 1 }
 0xf65   : > { %v4764_v28 = vadd.f32 %v4763_v29, %v4762_v46  ;;  %v7492_v39 = vadd.f32 %v4851_v20, %v4850_v18  ;;  %v7494_v60 = vadd.f32 %v4935_v43, %v4934_v45  ;;  %v4772_v9 = vsel %vm511_vm2, %v4752_v37, 0.0 }
 0xf66   : > { %v4860_v12 = vsel %vm511_vm2, %v4840_v44, 0.0  ;;  %v4944_v26 = vsel %vm511_vm2, %v4924_v27, 0.0  ;;  %v5028_v42 = vsel %vm511_vm2, %v5008_v52, 0.0  ;;  %v4773_v11 = vrot.slane %v4772_v9, 4 }
 0xf67   : > { %v4823_v17 = vsel %vm4822_vm0, %v4771_v21, %v4764_v28  ;;  %v4861_v54 = vrot.slane %v4860_v12, 4  ;;  %v4945_v6 = vrot.slane %v4944_v26, 4  ;;  %v5029_v55 = vrot.slane %v5028_v42, 4  ;;  %v4743_v31 = vpop.permute.xlu1 %4742 }
 0xf68   : > { %v4753_v51 = vmul.f32 %v4728_v63, %v6719_v58  ;;  %v4841_v3 = vmul.f32 %v4728_v63, %v6922_v2  ;;  %v4925_v15 = vmul.f32 %v4728_v63, %v7165_v30  ;;  %v4774_v34 = vadd.f32 %v4773_v11, %v4772_v9 }
 0xf69   : > { %v4862_v61 = vadd.f32 %v4861_v54, %v4860_v12  ;;  %v4946_v23 = vadd.f32 %v4945_v6, %v4944_v26  ;;  %v5009_v32 = vmul.f32 %v4728_v63, %v7321_v59  ;;  %v5030_v8 = vadd.f32 %v5029_v55, %v5028_v42 }
 0xf6a   : > { %v4779_v7 = vsel %vm511_vm2, %v4753_v51, 0.0  ;;  %v4867_v33 = vsel %vm511_vm2, %v4841_v3, 0.0  ;;  %v4951_v24 = vsel %vm511_vm2, %v4925_v15, 0.0  ;;  %v4775_v50 = vrot.slane %v4774_v34, 2 }
 0xf6b   : > { %v4863_v10 = vrot.slane %v4862_v61, 2  ;;  %v4947_v19 = vrot.slane %v4946_v23, 2  ;;  %v4780_v58 = vrot.slane %v4779_v7, 4  ;;  %v5031_v36 = vrot.slane %v5030_v8, 2  ;;  %v4733_v3 = vpop.permute.xlu1 %4732 }
 0xf6c   : > { %v4868_v2 = vrot.slane %v4867_v33, 4  ;;  %v4952_v38 = vrot.slane %v4951_v24, 4  ;;  %v5035_v30 = vsel %vm511_vm2, %v5009_v32, 0.0  ;;  %v4776_v40 = vadd.f32 %v4775_v50, %v4774_v34 }
 0xf6d   : > { %v4864_v47 = vadd.f32 %v4863_v10, %v4862_v61  ;;  %v4948_v0 = vadd.f32 %v4947_v19, %v4946_v23  ;;  %v4781_v59 = vadd.f32 %v4780_v58, %v4779_v7  ;;  %v5032_v48 = vadd.f32 %v5031_v36, %v5030_v8 }
 0xf6e   : > { %v4869_v5 = vadd.f32 %v4868_v2, %v4867_v33  ;;  %v4953_v53 = vadd.f32 %v4952_v38, %v4951_v24  ;;  %v5036_v22 = vrot.slane %v5035_v30, 4  ;;  %v4777_v46 = vrot.slane %v4776_v40, 1 }
 0xf6f   : > { %v4865_v18 = vrot.slane %v4864_v47, 1  ;;  %v4949_v45 = vrot.slane %v4948_v0, 1  ;;  %v4782_v21 = vrot.slane %v4781_v59, 2  ;;  %v7509_v29 = vadd.f32 %v5019_v35, %v5018_v49 }
 0xf70   : > { %v4870_v20 = vrot.slane %v4869_v5, 2  ;;  %v4954_v43 = vrot.slane %v4953_v53, 2  ;;  %v5037_v37 = vadd.f32 %v5036_v22, %v5035_v30  ;;  %v4778_v44 = vadd.f32 %v4777_v46, %v4776_v40 }
 0xf71   : > { %v7511_v27 = vadd.f32 %v4865_v18, %v4864_v47  ;;  %v5033_v52 = vrot.slane %v5032_v48, 1  ;;  %v4783_v28 = vadd.f32 %v4782_v21, %v4781_v59  ;;  %v7513_v63 = vadd.f32 %v4949_v45, %v4948_v0  ;;  %v4738_v18 = vpop.permute.xlu1 %4737 }
 0xf72   : > { %v4871_v9 = vadd.f32 %v4870_v20, %v4869_v5  ;;  %v4955_v12 = vadd.f32 %v4954_v43, %v4953_v53  ;;  %v5038_v26 = vrot.slane %v5037_v37, 2  ;;  %v7516_v42 = vsel %vm4824_vm8, %v4778_v44, %v4823_v17 }
 0xf73   : > { %v4784_v11 = vrot.slane %v4783_v28, 1  ;;  %v4756_v49 = vmul.f32 %v4743_v31, %v6727_v13  ;;  %v4844_v35 = vmul.f32 %v4743_v31, %v6931_v41  ;;  %v4928_v51 = vmul.f32 %v4743_v31, %v7183_v25 }
 0xf74   : > { %v4872_v54 = vrot.slane %v4871_v9, 1  ;;  %v4956_v6 = vrot.slane %v4955_v12, 1  ;;  %v5039_v55 = vadd.f32 %v5038_v26, %v5037_v37  ;;  %v7521_v15 = vadd.f32 %v5033_v52, %v5032_v48  ;;  %v7722_v48 = vld [vmem:[#allocation11_spill] sm:$0xff] }
 0xf75   : > { %v4800_v34 = vsel %vm511_vm2, %v4756_v49, 0.0  ;;  %v4888_v61 = vsel %vm511_vm2, %v4844_v35, 0.0  ;;  %v5012_v17 = vmul.f32 %v4743_v31, %v7326_v4  ;;  %v7526_v23 = vadd.f32 %v4784_v11, %v4783_v28  ;;  %v7724_v35 = vld [vmem:[#allocation7_spill] sm:$0xff] }
 0xf76   : > { %v7528_v32 = vadd.f32 %v4872_v54, %v4871_v9  ;;  %v7530_v13 = vadd.f32 %v4956_v6, %v4955_v12  ;;  %v4801_v41 = vrot.slane %v4800_v34, 4  ;;  %v4889_v8 = vrot.slane %v4888_v61, 4  ;;  %v7723_v12 = vld [vmem:[#allocation5_spill] sm:$0xff] }
 0xf77   : > { %v4972_v7 = vsel %vm511_vm2, %v4928_v51, 0.0  ;;  %v5056_v25 = vsel %vm511_vm2, %v5012_v17, 0.0  ;;  %v4754_v33 = vmul.f32 %v4733_v3, %v6717_v57  ;;  %v5040_v24 = vrot.slane %v5039_v55, 1  ;;  %v7725_v6 = vld [vmem:[#allocation9_spill] sm:$0xff] }
 0xf78   : > { %v4802_v50 = vadd.f32 %v4801_v41, %v4800_v34  ;;  %v4973_v10 = vrot.slane %v4972_v7, 4  ;;  %v5057_v19 = vrot.slane %v5056_v25, 4  ;;  %v4890_v58 = vadd.f32 %v4889_v8, %v4888_v61 }
 0xf79   : > { %v4786_v4 = vsel %vm511_vm2, %v4754_v33, 0.0  ;;  %v4842_v36 = vmul.f32 %v4733_v3, %v6929_v14  ;;  %v4926_v2 = vmul.f32 %v4733_v3, %v7176_v62  ;;  %v5010_v5 = vmul.f32 %v4733_v3, %v7722_v48  ;;  %v7727_v48 = vld [vmem:[#allocation6_spill] sm:$0xff] }
 0xf7a   : > { %v4803_v38 = vrot.slane %v4802_v50, 2  ;;  %v4974_v30 = vadd.f32 %v4973_v10, %v4972_v7  ;;  %v5058_v40 = vadd.f32 %v5057_v19, %v5056_v25  ;;  %v4787_v47 = vrot.slane %v4786_v4, 4  ;;  %v4748_v10 = vpop.permute.xlu1 %4747 }
 0xf7b   : > { %v4891_v0 = vrot.slane %v4890_v58, 2  ;;  %v4874_v59 = vsel %vm511_vm2, %v4842_v36, 0.0  ;;  %v4958_v57 = vsel %vm511_vm2, %v4926_v2, 0.0  ;;  %v7541_v45 = vadd.f32 %v5040_v24, %v5039_v55  ;;  %v7726_v36 = vld [vmem:[#allocation12_spill] sm:$0xff] }
 0xf7c   : > { %v4804_v53 = vadd.f32 %v4803_v38, %v4802_v50  ;;  %v4975_v22 = vrot.slane %v4974_v30, 2  ;;  %v5059_v31 = vrot.slane %v5058_v40, 2  ;;  %v4788_v46 = vadd.f32 %v4787_v47, %v4786_v4 }
 0xf7d   : > { %v4875_v14 = vrot.slane %v4874_v59, 4  ;;  %v4959_v62 = vrot.slane %v4958_v57, 4  ;;  %v5042_v21 = vsel %vm511_vm2, %v5010_v5, 0.0  ;;  %v7544_v43 = vadd.f32 %v4891_v0, %v4890_v58 }
 0xf7e   : > { %v4805_v20 = vrot.slane %v4804_v53, 1  ;;  %v7546_v37 = vadd.f32 %v4975_v22, %v4974_v30  ;;  %v4789_v44 = vrot.slane %v4788_v46, 2  ;;  %v5043_v9 = vrot.slane %v5042_v21, 4 }
 0xf7f   : > { %v4876_v52 = vadd.f32 %v4875_v14, %v4874_v59  ;;  %v4960_v28 = vadd.f32 %v4959_v62, %v4958_v57  ;;  %v4755_v26 = vmul.f32 %v4738_v18, %v7723_v12  ;;  %v7549_v11 = vadd.f32 %v5059_v31, %v5058_v40 }
 0xf80   : > { %v4790_v49 = vadd.f32 %v4789_v44, %v4788_v46  ;;  %v4843_v54 = vmul.f32 %v4738_v18, %v7724_v35  ;;  %v4927_v55 = vmul.f32 %v4738_v18, %v7725_v6  ;;  %v5044_v34 = vadd.f32 %v5043_v9, %v5042_v21  ;;  %v7729_v35 = vld [vmem:[#allocation10_spill] sm:$0xff] }
 0xf81   : > { %v4877_v51 = vrot.slane %v4876_v52, 2  ;;  %v4961_v3 = vrot.slane %v4960_v28, 2  ;;  %v4793_v61 = vsel %vm511_vm2, %v4755_v26, 0.0  ;;  %v7556_v19 = vadd.f32 %v4805_v20, %v4804_v53 }
 0xf82   : > { %v4791_v17 = vrot.slane %v4790_v49, 1  ;;  %v4794_v41 = vrot.slane %v4793_v61, 4  ;;  %v4881_v8 = vsel %vm511_vm2, %v4843_v54, 0.0  ;;  %v4965_v7 = vsel %vm511_vm2, %v4927_v55, 0.0 }
 0xf83   : > { %v4878_v25 = vadd.f32 %v4877_v51, %v4876_v52  ;;  %v4962_v33 = vadd.f32 %v4961_v3, %v4960_v28  ;;  %v5045_v24 = vrot.slane %v5044_v34, 2  ;;  %v4882_v50 = vrot.slane %v4881_v8, 4  ;;  %v7728_v28 = vld [vmem:[#allocation8_spill] sm:$0xff]  ;;  %v7730_v3 = vld [vmem:[#allocation13_spill] sm:$0xff] }
 0xf84   : > { %v4795_v58 = vadd.f32 %v4794_v41, %v4793_v61  ;;  %v4966_v4 = vrot.slane %v4965_v7, 4  ;;  %v5011_v2 = vmul.f32 %v4738_v18, %v7726_v36  ;;  %v4757_v5 = vmul.f32 %v4748_v10, %v7727_v48 }
 0xf85   : > { %v4879_v38 = vrot.slane %v4878_v25, 1  ;;  %v4963_v30 = vrot.slane %v4962_v33, 1  ;;  %v5046_v40 = vadd.f32 %v5045_v24, %v5044_v34  ;;  %v4883_v47 = vadd.f32 %v4882_v50, %v4881_v8 }
 0xf86   : > { %v4796_v0 = vrot.slane %v4795_v58, 2  ;;  %v4967_v59 = vadd.f32 %v4966_v4, %v4965_v7  ;;  %v5049_v57 = vsel %vm511_vm2, %v5011_v2, 0.0  ;;  %v7561_v22 = vadd.f32 %v4791_v17, %v4790_v49 }
 0xf87   : > { %v7563_v31 = vadd.f32 %v4879_v38, %v4878_v25  ;;  %v5047_v53 = vrot.slane %v5046_v40, 1  ;;  %v4884_v46 = vrot.slane %v4883_v47, 2  ;;  %v5050_v18 = vrot.slane %v5049_v57, 4 }
 0xf88   : > { %v4797_v14 = vadd.f32 %v4796_v0, %v4795_v58  ;;  %v4968_v62 = vrot.slane %v4967_v59, 2  ;;  %v4807_v21 = vsel %vm511_vm2, %v4757_v5, 0.0  ;;  %v7566_v20 = vadd.f32 %v4963_v30, %v4962_v33 }
 0xf89   : > { %v4885_v44 = vadd.f32 %v4884_v46, %v4883_v47  ;;  %v4808_v52 = vrot.slane %v4807_v21, 4  ;;  %v4845_v9 = vmul.f32 %v4748_v10, %v7728_v28  ;;  %v5048_v12 = vadd.f32 %v5047_v53, %v5046_v40 }
 0xf8a   : > { %v4798_v26 = vrot.slane %v4797_v14, 1  ;;  %v5051_v49 = vadd.f32 %v5050_v18, %v5049_v57  ;;  %v4929_v54 = vmul.f32 %v4748_v10, %v7729_v35  ;;  %v4969_v6 = vadd.f32 %v4968_v62, %v4967_v59 }
 0xf8b   : > { %v4809_v55 = vadd.f32 %v4808_v52, %v4807_v21  ;;  %v4895_v51 = vsel %vm511_vm2, %v4845_v9, 0.0  ;;  %v5013_v34 = vmul.f32 %v4748_v10, %v7730_v3  ;;  %v4886_v17 = vrot.slane %v4885_v44, 1 }
 0xf8c   : > { %v7572_v61 = vadd.f32 %v4798_v26, %v4797_v14  ;;  %v5052_v41 = vrot.slane %v5051_v49, 2  ;;  %v4896_v8 = vrot.slane %v4895_v51, 4  ;;  %v4979_v25 = vsel %vm511_vm2, %v4929_v54, 0.0 }
 0xf8d   : > { %v4810_v7 = vrot.slane %v4809_v55, 2  ;;  %v5063_v33 = vsel %vm511_vm2, %v5013_v34, 0.0  ;;  %v5061_v24 = vrot.slane %v7549_v11, 1  ;;  %v4980_v4 = vrot.slane %v4979_v25, 4 }
 0xf8e   : > { %v5053_v50 = vadd.f32 %v5052_v41, %v5051_v49  ;;  %v4897_v58 = vadd.f32 %v4896_v8, %v4895_v51  ;;  %v5064_v36 = vrot.slane %v5063_v33, 4  ;;  %v4970_v2 = vrot.slane %v4969_v6, 1 }
 0xf8f   : > { %v4811_v38 = vadd.f32 %v4810_v7, %v4809_v55  ;;  %v5062_v10 = vadd.f32 %v5061_v24, %v7549_v11  ;;  %v5078_v30 = vsel %vm4822_vm0, %v7486_v56, %v7509_v29  ;;  %v4981_v0 = vadd.f32 %v4980_v4, %v4979_v25 }
 0xf90   : > { %v5054_v40 = vrot.slane %v5053_v50, 1  ;;  %v4898_v47 = vrot.slane %v4897_v58, 2  ;;  %v5065_v59 = vadd.f32 %v5064_v36, %v5063_v33  ;;  %v5079_v57 = vsel %vm4824_vm8, %v7521_v15, %v5078_v30 }
 0xf91   : > { %v4887_v48 = vadd.f32 %v4886_v17, %v4885_v44  ;;  %v4893_v5 = vrot.slane %v7544_v43, 1  ;;  %v4910_v53 = vsel %vm4822_vm0, %v7482_v1, %v7492_v39  ;;  %v4982_v46 = vrot.slane %v4981_v0, 2 }
 0xf92   : > { %v5066_v11 = vrot.slane %v5065_v59, 2  ;;  %v5055_v14 = vadd.f32 %v5054_v40, %v5053_v50  ;;  %v5080_v56 = vsel %vm4826_vm9, %v7541_v45, %v5079_v57  ;;  %v4812_v29 = vrot.slane %v4811_v38, 1 }
 0xf93   : > { %v5081_v62 = vsel %vm4828_vm10, %v5048_v12, %v5080_v56  ;;  %v4894_v18 = vadd.f32 %v4893_v5, %v7544_v43  ;;  %v4899_v15 = vadd.f32 %v4898_v47, %v4897_v58  ;;  %v4911_v52 = vsel %vm4824_vm8, %v7511_v27, %v4910_v53 }
 0xf94   : > { %v5067_v21 = vadd.f32 %v5066_v11, %v5065_v59  ;;  %v5082_v44 = vsel %vm4830_vm11, %v5055_v14, %v5081_v62  ;;  %v4971_v1 = vadd.f32 %v4970_v2, %v4969_v6  ;;  %v4912_v45 = vsel %vm4826_vm9, %v7528_v32, %v4911_v52 }
 0xf95   : > { %v5083_v39 = vsel %vm4832_vm12, %v5062_v10, %v5082_v44  ;;  %v4900_v28 = vrot.slane %v4899_v15, 1  ;;  %v4977_v9 = vrot.slane %v7546_v37, 1  ;;  %v4913_v43 = vsel %vm4828_vm10, %v7563_v31, %v4912_v45 }
 0xf96   : > { %v5068_v12 = vrot.slane %v5067_v21, 1  ;;  %v4983_v26 = vadd.f32 %v4982_v46, %v4981_v0  ;;  %v4994_v27 = vsel %vm4822_vm0, %v7484_v16, %v7494_v60  ;;  %v4813_v49 = vadd.f32 %v4812_v29, %v4811_v38 }
 0xf97   : > { %v4901_v35 = vadd.f32 %v4900_v28, %v4899_v15  ;;  %v4914_v54 = vsel %vm4830_vm11, %v4887_v48, %v4913_v43  ;;  %v4995_v6 = vsel %vm4824_vm8, %v7513_v63, %v4994_v27  ;;  %v4978_v16 = vadd.f32 %v4977_v9, %v7546_v37 }
 0xf98   : > { %v5069_v32 = vadd.f32 %v5068_v12, %v5067_v21  ;;  %v4915_v55 = vsel %vm4832_vm12, %v4894_v18, %v4914_v54  ;;  %v4984_v51 = vrot.slane %v4983_v26, 1  ;;  %v4996_v3 = vsel %vm4826_vm9, %v7530_v13, %v4995_v6 }
 0xf99   : > { %v4916_v31 = vsel %vm4834_vm13, %v4901_v35, %v4915_v55  ;;  %v4997_v60 = vsel %vm4828_vm10, %v7566_v20, %v4996_v3  ;;  %v4827_v63 = vsel %vm4826_vm9, %v7526_v23, %v7516_v42 }
 0xf9a   : > { %v5084_v34 = vsel %vm4834_vm13, %v5069_v32, %v5083_v39  ;;  %4917 = vrot.lane.b32.xlu1 %v4916_v31, %s6245_s19  ;;  %v4985_v17 = vadd.f32 %v4984_v51, %v4983_v26  ;;  %v4998_v13 = vsel %vm4830_vm11, %v4971_v1, %v4997_v60  ;;  %v4829_v41 = vsel %vm4828_vm10, %v7561_v22, %v4827_v63 }
 0xf9b   : > { %5085 = vrot.lane.b32.xlu0 %v5084_v34, %s6246_s20  ;;  %v4999_v37 = vsel %vm4832_vm12, %v4978_v16, %v4998_v13  ;;  %v4831_v20 = vsel %vm4830_vm11, %v7572_v61, %v4829_v41 }
 0xf9c   : > { %v5000_v42 = vsel %vm4834_vm13, %v4985_v17, %v4999_v37  ;;  %v4833_v23 = vsel %vm4832_vm12, %v7556_v19, %v4831_v20 }
 0xf9d   : > { %v4835_v8 = vsel %vm4834_vm13, %v4813_v49, %v4833_v23 }
 0xf9e   : > { %5001 = vrot.lane.b32.xlu1 %v5000_v42, %s6247_s26  ;;  %4837 = vst.msk [vmem:[%s275_s28] sm:$0xff] %vm511_vm2, %v4835_v8 }
0x100c   : > { %v4918_v22 = vpop.permute.xlu1 %4917 }
0x100d   : > { %4921 = vst.msk [vmem:[%s275_s28] sm:$0xff] %vm4920_vm14, %v4918_v22  ;;  %v5086_v19 = vpop.permute.xlu0 %5085 }
0x1010   : > { %v5002_v61 = vpop.permute.xlu1 %5001 }
0x1011   : > { %5005 = vst.msk [vmem:[%s275_s28] sm:$0xff] %vm5004_vm15, %v5002_v61 }
0x1012   : > { %5089 = vst.msk [vmem:[%s275_s28] sm:$0xff] %vm5088_vm3, %v5086_v19 }
0x1013   : > { %6180 = shalt.err (!%p6177_p3)
}
0x1014   : > { %s6181_s11 = scalar_lea.hbm %s7635_s13, 128  ;;  %s6185_s20 = scalar_lea.hbm %s7685_s6, 256 }
0x1015   : > { %p6182_p4 = scmp.ne.s32.totalorder %s7635_s13, %s6181_s11  ;;  %p6186_p9 = scmp.lt.u32.totalorder %s7635_s13, %s7685_s6 }
0x1016   : > { %p6187_p10 = scmp.lt.u32.totalorder %s6185_s20, %s6181_s11  ;;  %p6189_p12 = scmp.lt.u32.totalorder %s6181_s11, %s7635_s13 }
0x1017   : > { %p6183_p7 = pnand %p6182_p4, %p6322_p5 }
0x1018   : > { %p6188_p11 = por %p6187_p10, %p6186_p9 }
0x1019   : > { %p6184_p8 = pneg %p6183_p7 }
0x101a   : > { %p6190_p13 = por %p6189_p12, %p6188_p11 }
0x101c   : > { %p6191_p0 = pnand %p6190_p13, %p6184_p8 }
0x101e   : > { %6194 = shalt.err (!%p6191_p0)
}
0x101f   : > { %5927 = dma.vmem_to_hbm [thread:$0]  (%p6322_p5), %s7637_s9, 128, %s7635_s13, %s5091_s14  }
0x1020 PF: > { %p5933_p1 = scmp.ge.s32.totalorder %s6229_s24, 2  ;;  %s5116_s29 = sand.u32 1, %s6217_s21  }
0x1021   : > { %s5117_s10 = scalar_lea.sflag [#allocation3], %s5116_s29 }
0x1022   : > { %p5930_p2 = pnand %p5933_p1, %p6326_p6 }
0x1024   : > { %6212 = dma.done.wait (!%p5930_p2), %s5117_s10, 128  }
0x1025   : > { %6214 = vsyncadd (!%p5930_p2), %s5117_s10, 4294967168  ;;  %p16_p3 = scmp.ge.s32.totalorder %s6309_s27, 4   ;;  %s7731_s21 = smov %s6221_s22 }
0x1026   : > { %s7732_s22 = smov %s6225_s23  ;;  %s7733_s23 = smov %s6320_s30 }
0x1027   : > { %s7734_s24 = smov %s6309_s27  ;;  %18 = sbr.rel (!%p16_p3) target bundleno = 3 (0x3), region = 85 }
0x102e   :  { %5122 = vsyncpa [#allocation3], 1 }
0x102f   :  { %5124 = vsyncpa [#allocation3 + $0x1], 1 }

</bundles_post_ra>
